<compile_context>
chip_gen: v7x
topology: tpu7x:2x2x1
jax: 0.10.0
libtpu: 0.0.40
codegen_flags: <defaults>
</compile_context>

<pallas_src>
import numpy as np
import jax
import jax.numpy as jnp
from jax import lax
from jax.experimental import pallas as pl
from jax.experimental.pallas import tpu as pltpu

LRELU_SLOPE = 0.1

# -----------------------------------------------------------------------------
# Stand-in configuration (cfg.model.mssbcqtd.* and ctor args) -- small & fixed.
# -----------------------------------------------------------------------------
FILTERS = 8
MAX_FILTERS = 32
FILTERS_SCALE = 1
DILATIONS = (1, 2, 4)
IN_CHANNELS = 1
OUT_CHANNELS = 1
SAMPLING_RATE = 16000
HOP_LENGTH = 64
N_OCTAVES = 3
BINS_PER_OCTAVE = 8
N_BINS = N_OCTAVES * BINS_PER_OCTAVE
CQT_KERNEL_LEN = 256          # fixed analysis frame length for the synthetic CQT


def get_2d_padding(kernel_size, dilation=(1, 1)):
    return (((kernel_size[0] - 1) * dilation[0]) // 2,
            ((kernel_size[1] - 1) * dilation[1]) // 2)


# -----------------------------------------------------------------------------
# Resample (fs -> 2*fs), polyphase form.
# TODO(synk): approximates torchaudio.transforms.Resample (hann-windowed sinc
# interpolation); not bit-exact with torchaudio.
# -----------------------------------------------------------------------------
def _make_resample_fir(width=6, rolloff=0.99):
    n = np.arange(-2 * width, 2 * width + 1, dtype=np.float64)   # 25 taps @ 2x rate
    cutoff = 0.25 * rolloff                                      # cycles/sample @ 2x rate
    win = 0.5 * (1.0 + np.cos(np.pi * n / (2 * width + 1)))
    h = 2.0 * (2.0 * cutoff) * np.sinc(2.0 * cutoff * n) * win
    return np.asarray(h, np.float32)


def resample_2x_polyphase(x, fir_even, fir_odd, pad_lo):
    # x: (B, N) -> (B, 2N).  Two small FIRs (even/odd output phases) instead of
    # zero-stuff + lhs_dilation, so no MACs are spent on inserted zeros.
    B = x.shape[0]
    x1 = x[:, None, :]
    ke, ko = fir_even.shape[0], fir_odd.shape[0]
    pe = pad_lo // 2
    po = pad_lo // 2 - 1
    y_e = lax.conv_general_dilated(
        x1, fir_even[None, None, :], (1,), [(pe, ke - 1 - pe)],
        dimension_numbers=("NCH", "OIH", "NCH"))[:, 0]
    y_o = lax.conv_general_dilated(
        x1, fir_odd[None, None, :], (1,), [(po, ko - 1 - po)],
        dimension_numbers=("NCH", "OIH", "NCH"))[:, 0]
    return jnp.stack([y_e, y_o], axis=-1).reshape(B, -1)


# -----------------------------------------------------------------------------
# CQT analysis kernels (output_format='Complex').
# TODO(synk): nnAudio CQT2010v2 (multi-rate, early-downsampled CQT) has no clean
# Pallas equivalent; implemented as a direct framed complex-kernel CQT matmul
# (same output layout: per-bin real/imag channels).
# -----------------------------------------------------------------------------
def _make_cqt_kernels(sr, fmin=32.70):
    L = CQT_KERNEL_LEN
    freqs = fmin * 2.0 ** (np.arange(N_BINS) / BINS_PER_OCTAVE)
    n = np.arange(L, dtype=np.float64)
    win = 0.5 - 0.5 * np.cos(2.0 * np.pi * n / (L - 1))
    phase = 2.0 * np.pi * freqs[:, None] * n[None, :] / sr
    kr = (win[None, :] * np.cos(phase)) / L               # (nb, L)
    ki = (-win[None, :] * np.sin(phase)) / L               # (nb, L)
    kmat = np.stack([kr, ki], axis=-1)                     # (nb, L, 2)
    # columns interleaved as bin*2 + {0: real, 1: imag}  == merged (freq, chan)
    kmat = np.transpose(kmat, (1, 0, 2)).reshape(L, 2 * N_BINS)
    return jnp.asarray(kmat, jnp.float32)


def frame_signal(x, L, hop):
    # Framing for the CQT without an XLA gather: pad, chunk to (.., hop) and
    # concatenate L//hop shifted contiguous chunk views.
    B, _ = x.shape
    assert L % hop == 0
    xp = jnp.pad(x, ((0, 0), (L // 2, L // 2)))            # pad_mode='constant'
    Np = xp.shape[1]
    T = (Np - L) // hop + 1
    ck = L // hop
    xp = xp[:, :(T - 1 + ck) * hop]
    chunks = xp.reshape(B, T - 1 + ck, hop)
    frames = jnp.concatenate([chunks[:, t:t + T] for t in range(ck)], axis=-1)
    return frames                                          # (B, T, L)


# -----------------------------------------------------------------------------
# Host-side weight preparation: each Conv2d becomes KH dense banded matrices of
# shape (W_in*Cin, W_out*Cout) that absorb the freq taps, freq zero-padding and
# freq stride; biases are pre-tiled to the merged (W_out*Cout) layout.
# -----------------------------------------------------------------------------
def _band_from_conv(wt, w_in, pad_w, stride_w):
    # wt: (Cout, Cin, KH, KW) float32 (PyTorch OIHW layout)
    cout, cin, kh, kw = wt.shape
    w_out = (w_in + 2 * pad_w - kw) // stride_w + 1
    band = np.zeros((kh, w_in * cin, w_out * cout), np.float32)
    for r in range(kh):
        for j in range(w_out):
            for t in range(kw):
                w = j * stride_w + t - pad_w
                if 0 <= w < w_in:
                    band[r, w * cin:(w + 1) * cin, j * cout:(j + 1) * cout] = \
                        wt[:, :, r, t].T
    return band, w_out


def _init_conv_oihw(key, cout, cin, kh, kw):
    # weight_norm is an identity reparameterization at init (g = ||v||), so the
    # synthetic weights are used directly.
    k1, k2 = jax.random.split(key)
    fan_in = cin * kh * kw
    w = np.asarray(jax.random.normal(k1, (cout, cin, kh, kw), jnp.float32))
    w = (w / np.sqrt(fan_in)).astype(np.float32)
    b = (0.01 * np.asarray(jax.random.normal(k2, (cout,), jnp.float32))).astype(np.float32)
    return w, b


# -----------------------------------------------------------------------------
# The fused Pallas kernel: CQT matmul + all banded conv layers, per batch element.
# -----------------------------------------------------------------------------
def _make_fused_kernel(layers):
    n_layers = len(layers)

    def kernel(*refs):
        frames_ref, kmat_ref, shift_ref = refs[0], refs[1], refs[2]
        w_refs = [refs[3 + 2 * i] for i in range(n_layers)]
        b_refs = [refs[4 + 2 * i] for i in range(n_layers)]
        out_refs = refs[3 + 2 * n_layers:]

        # ---- CQT analysis: one 256-deep MXU matmul over the framed audio.
        # kmat columns are interleaved (re, im) per bin, i.e. already the merged
        # (freq, channel) layout the banded conv weights expect.
        a = jnp.dot(frames_ref[0], kmat_ref[...],
                    preferred_element_type=jnp.float32)          # (T, 2*n_bins)

        def banded_conv(x, li):
            cfg = layers[li]
            wb, bias = w_refs[li], b_refs[li]
            acc = None
            for r in range(cfg["kh"]):
                off = r * cfg["dil_h"] - cfg["pad_h"]            # time-tap offset
                p = jnp.dot(x, wb[r], preferred_element_type=jnp.float32)
                if off != 0:
                    # 'same' time padding via a one-hot (T,T) shift matmul:
                    # rows that would read outside the signal are all-zero.
                    sidx = cfg["shift_base"] + (0 if off > 0 else 1)
                    p = jnp.dot(shift_ref[sidx], p,
                                preferred_element_type=jnp.float32)
                acc = p if acc is None else acc + p
            acc = acc + bias[...]
            if cfg["lrelu"]:
                acc = jnp.where(acc > 0, acc, LRELU_SLOPE * acc)
            return acc

        # conv_pres: 3 octave convs fused as one block-diagonal banded layer.
        a = banded_conv(a, 0)
        # main conv stack (+LeakyReLU); feature maps stored lane-dense (T, W*C).
        for li in range(1, n_layers - 1):
            a = banded_conv(a, li)
            out_refs[li - 1][0] = a
        # conv_post (no activation).
        a = banded_conv(a, n_layers - 1)
        out_refs[-1][0] = a

    return kernel


# -----------------------------------------------------------------------------
# Model
# -----------------------------------------------------------------------------
class DiscriminatorCQTPallas:
    def __init__(self, key):
        keys = iter(jax.random.split(key, 32))
        inc2 = IN_CHANNELS * 2
        self.kernel_size = (3, 9)
        self.stride = (1, 2)

        layers = []

        # --- conv_pres: three per-octave convs fused into one block-diagonal
        #     banded weight (identical to 3 independent convs + cat along freq).
        kh, kw = self.kernel_size
        ph, pw = get_2d_padding((kh, kw))
        band = np.zeros((kh, N_BINS * inc2, N_BINS * inc2), np.float32)
        bias = np.zeros((N_BINS * inc2,), np.float32)
        for o in range(N_OCTAVES):
            wt, bt = _init_conv_oihw(next(keys), inc2, inc2, kh, kw)
            b_o, w_out_o = _band_from_conv(wt, BINS_PER_OCTAVE, pw, 1)
            lo = o * BINS_PER_OCTAVE * inc2
            hi = lo + BINS_PER_OCTAVE * inc2
            band[:, lo:hi, lo:hi] = b_o
            bias[lo:hi] = np.tile(bt, w_out_o)
        layers.append(dict(wb=jnp.asarray(band), bias=jnp.asarray(bias[None, :]),
                           kh=kh, dil_h=1, pad_h=ph, lrelu=False,
                           w_out=N_BINS, cout=inc2))

        def add_layer(k, cin, cout, ksz, dil, stride_w, w_in, lrelu):
            khh, kww = ksz
            phh, pww = get_2d_padding(ksz, (dil, 1))
            wt, bt = _init_conv_oihw(k, cout, cin, khh, kww)
            bnd, w_out = _band_from_conv(wt, w_in, pww, stride_w)
            layers.append(dict(wb=jnp.asarray(bnd),
                               bias=jnp.asarray(np.tile(bt, w_out)[None, :]),
                               kh=khh, dil_h=dil, pad_h=phh, lrelu=lrelu,
                               w_out=w_out, cout=cout))
            return w_out

        # --- convs (conv + LeakyReLU each) ---
        w_cur = N_BINS
        w_cur = add_layer(next(keys), inc2, FILTERS, (3, 9), 1, 1, w_cur, True)
        in_chs = min(FILTERS_SCALE * FILTERS, MAX_FILTERS)
        for i, d in enumerate(DILATIONS):
            out_chs = min(FILTERS_SCALE ** (i + 1) * FILTERS, MAX_FILTERS)
            w_cur = add_layer(next(keys), in_chs, out_chs, (3, 9), d, 2, w_cur, True)
            in_chs = out_chs
        out_chs = min(FILTERS_SCALE ** (len(DILATIONS) + 1) * FILTERS, MAX_FILTERS)
        w_cur = add_layer(next(keys), in_chs, out_chs, (3, 3), 1, 1, w_cur, True)
        # --- conv_post (no activation) ---
        w_cur = add_layer(next(keys), out_chs, OUT_CHANNELS, (3, 3), 1, 1, w_cur, False)

        # every layer is a 'same' conv along time: h_out == T
        for l in layers:
            assert 2 * l["pad_h"] == l["dil_h"] * (l["kh"] - 1)

        # distinct time-shift amounts needed by the dilated 3-tap time kernels
        self.shift_offsets = sorted({l["dil_h"] for l in layers})
        for l in layers:
            l["shift_base"] = 2 * self.shift_offsets.index(l["dil_h"])
        self.layers = layers

        fir = _make_resample_fir()
        self.fir_even = jnp.asarray(fir[0::2])
        self.fir_odd = jnp.asarray(fir[1::2])
        self._fir_pad_lo = (fir.shape[0] - 1) // 2
        self.cqt_kmat = _make_cqt_kernels(sr=SAMPLING_RATE * 2)

    def __call__(self, x):
        # x: (B, N) mono audio, float32
        x = resample_2x_polyphase(x, self.fir_even, self.fir_odd, self._fir_pad_lo)
        frames = frame_signal(x, CQT_KERNEL_LEN, HOP_LENGTH)       # (B, T, L)
        B, T, L = frames.shape

        # one-hot (T, T) time-shift matrices (rows falling outside are all-zero);
        # built at trace time, tiny, and consumed by the MXU inside the kernel.
        smats = []
        for d in self.shift_offsets:
            smats.append(jnp.eye(T, k=d, dtype=jnp.float32))       # y[r] = x[r+d]
            smats.append(jnp.eye(T, k=-d, dtype=jnp.float32))      # y[r] = x[r-d]
        shift_mats = jnp.stack(smats, axis=0)                      # (2*ndist, T, T)

        layers = self.layers
        n_layers = len(layers)
        widths = [l["w_out"] * l["cout"] for l in layers]

        in_specs = [
            pl.BlockSpec((1, T, L), lambda b: (b, 0, 0)),            # framed audio
            pl.BlockSpec(self.cqt_kmat.shape, lambda b: (0, 0)),     # CQT kernels
            pl.BlockSpec(shift_mats.shape, lambda b: (0, 0, 0)),     # time shifts
        ]
        args = [frames, self.cqt_kmat, shift_mats]
        for l in layers:
            in_specs.append(pl.BlockSpec(l["wb"].shape, lambda b: (0, 0, 0)))
            in_specs.append(pl.BlockSpec(l["bias"].shape, lambda b: (0, 0)))
            args += [l["wb"], l["bias"]]

        out_widths = widths[1:]            # 5 feature maps + final conv_post output
        out_shape = tuple(jax.ShapeDtypeStruct((B, T, w), jnp.float32)
                          for w in out_widths)
        out_specs = tuple(pl.BlockSpec((1, T, w), lambda b: (b, 0, 0))
                          for w in out_widths)

        outs = pl.pallas_call(
            _make_fused_kernel(layers),
            out_shape=out_shape,
            grid=(B,),
            in_specs=in_specs,
            out_specs=out_specs,
            compiler_params=pltpu.CompilerParams(
                dimension_semantics=("parallel",)),   # one batch element per TC (v7x)
        )(*args)

        # un-flatten the lane-dense (T, w_out*Cout) stores back to NHWC
        fmap = [outs[i].reshape(B, T, layers[i + 1]["w_out"], layers[i + 1]["cout"])
                for i in range(n_layers - 2)]
        latent = outs[-1].reshape(B, T, layers[-1]["w_out"], layers[-1]["cout"])
        return latent, fmap


if __name__ == "__main__":
    model = DiscriminatorCQTPallas(jax.random.PRNGKey(42))
    x = jax.random.normal(jax.random.PRNGKey(0), (2, 1024), jnp.float32)  # (B, audio)

    fwd = jax.jit(model.__call__)
    latent_z, fmap = fwd(x)
    jax.block_until_ready((latent_z, fmap))

    # Expected shapes (NHWC): T=33 frames, freq 24 -> 12 -> 6 -> 3
    assert latent_z.shape == (2, 33, 3, OUT_CHANNELS), latent_z.shape
    assert len(fmap) == len(DILATIONS) + 2, len(fmap)
    assert fmap[0].shape == (2, 33, 24, FILTERS), fmap[0].shape
    assert fmap[1].shape == (2, 33, 12, FILTERS), fmap[1].shape
    assert fmap[3].shape == (2, 33, 3, FILTERS), fmap[3].shape
    print("KERNEL_OK")
</pallas_src>

<mosaic_0001>
module attributes {stable_mosaic.version = 11 : i64} {
  func.func @kernel(%arg0: i32, %arg1: memref<1x33x256xf32, #tpu.memory_space<vmem>>, %arg2: memref<256x48xf32, #tpu.memory_space<vmem>>, %arg3: memref<6x33x33xf32, #tpu.memory_space<vmem>>, %arg4: memref<3x48x48xf32, #tpu.memory_space<vmem>>, %arg5: memref<1x48xf32, #tpu.memory_space<vmem>>, %arg6: memref<3x48x192xf32, #tpu.memory_space<vmem>>, %arg7: memref<1x192xf32, #tpu.memory_space<vmem>>, %arg8: memref<3x192x96xf32, #tpu.memory_space<vmem>>, %arg9: memref<1x96xf32, #tpu.memory_space<vmem>>, %arg10: memref<3x96x48xf32, #tpu.memory_space<vmem>>, %arg11: memref<1x48xf32, #tpu.memory_space<vmem>>, %arg12: memref<3x48x24xf32, #tpu.memory_space<vmem>>, %arg13: memref<1x24xf32, #tpu.memory_space<vmem>>, %arg14: memref<3x24x24xf32, #tpu.memory_space<vmem>>, %arg15: memref<1x24xf32, #tpu.memory_space<vmem>>, %arg16: memref<3x24x3xf32, #tpu.memory_space<vmem>>, %arg17: memref<1x3xf32, #tpu.memory_space<vmem>>, %arg18: memref<1x33x192xf32, #tpu.memory_space<vmem>>, %arg19: memref<1x33x96xf32, #tpu.memory_space<vmem>>, %arg20: memref<1x33x48xf32, #tpu.memory_space<vmem>>, %arg21: memref<1x33x24xf32, #tpu.memory_space<vmem>>, %arg22: memref<1x33x24xf32, #tpu.memory_space<vmem>>, %arg23: memref<1x33x3xf32, #tpu.memory_space<vmem>>) attributes {dimension_semantics = [#tpu.dimension_semantics<parallel>], iteration_bounds = array<i64: 2>, scalar_prefetch = 0 : i64, scratch_operands = 0 : i64, tpu.core_type = #tpu.core_type<tc>, window_params = [{transform_indices = @transform_0, window_bounds = array<i64: 1, 33, 256>}, {pipeline_mode = #tpu.pipeline_mode<synchronous>, transform_indices = @transform_1, window_bounds = array<i64: 256, 48>}, {pipeline_mode = #tpu.pipeline_mode<synchronous>, transform_indices = @transform_2, window_bounds = array<i64: 6, 33, 33>}, {pipeline_mode = #tpu.pipeline_mode<synchronous>, transform_indices = @transform_3, window_bounds = array<i64: 3, 48, 48>}, {pipeline_mode = #tpu.pipeline_mode<synchronous>, transform_indices = @transform_4, window_bounds = array<i64: 1, 48>}, {pipeline_mode = #tpu.pipeline_mode<synchronous>, transform_indices = @transform_5, window_bounds = array<i64: 3, 48, 192>}, {pipeline_mode = #tpu.pipeline_mode<synchronous>, transform_indices = @transform_6, window_bounds = array<i64: 1, 192>}, {pipeline_mode = #tpu.pipeline_mode<synchronous>, transform_indices = @transform_7, window_bounds = array<i64: 3, 192, 96>}, {pipeline_mode = #tpu.pipeline_mode<synchronous>, transform_indices = @transform_8, window_bounds = array<i64: 1, 96>}, {pipeline_mode = #tpu.pipeline_mode<synchronous>, transform_indices = @transform_9, window_bounds = array<i64: 3, 96, 48>}, {pipeline_mode = #tpu.pipeline_mode<synchronous>, transform_indices = @transform_10, window_bounds = array<i64: 1, 48>}, {pipeline_mode = #tpu.pipeline_mode<synchronous>, transform_indices = @transform_11, window_bounds = array<i64: 3, 48, 24>}, {pipeline_mode = #tpu.pipeline_mode<synchronous>, transform_indices = @transform_12, window_bounds = array<i64: 1, 24>}, {pipeline_mode = #tpu.pipeline_mode<synchronous>, transform_indices = @transform_13, window_bounds = array<i64: 3, 24, 24>}, {pipeline_mode = #tpu.pipeline_mode<synchronous>, transform_indices = @transform_14, window_bounds = array<i64: 1, 24>}, {pipeline_mode = #tpu.pipeline_mode<synchronous>, transform_indices = @transform_15, window_bounds = array<i64: 3, 24, 3>}, {pipeline_mode = #tpu.pipeline_mode<synchronous>, transform_indices = @transform_16, window_bounds = array<i64: 1, 3>}, {transform_indices = @transform_17, window_bounds = array<i64: 1, 33, 192>}, {transform_indices = @transform_18, window_bounds = array<i64: 1, 33, 96>}, {transform_indices = @transform_19, window_bounds = array<i64: 1, 33, 48>}, {transform_indices = @transform_20, window_bounds = array<i64: 1, 33, 24>}, {transform_indices = @transform_21, window_bounds = array<i64: 1, 33, 24>}, {transform_indices = @transform_22, window_bounds = array<i64: 1, 33, 3>}]} {
    %c0 = arith.constant 0 : index
    %c0_0 = arith.constant 0 : index
    %c0_1 = arith.constant 0 : index
    %0 = vector.load %arg1[%c0, %c0_0, %c0_1] : memref<1x33x256xf32, #tpu.memory_space<vmem>>, vector<1x33x256xf32>
    %1 = vector.shape_cast %0 : vector<1x33x256xf32> to vector<33x256xf32>
    %c0_2 = arith.constant 0 : index
    %c0_3 = arith.constant 0 : index
    %2 = vector.load %arg2[%c0_2, %c0_3] : memref<256x48xf32, #tpu.memory_space<vmem>>, vector<256x48xf32>
    %cst = arith.constant dense<0.000000e+00> : vector<33x48xf32>
    %3 = tpu.matmul %1, %2, %cst {dimension_numbers = #tpu.dot_dimension_numbers<[1], [0], [0], [1], [0, 0, 1, 1], [], []>} : vector<33x256xf32>, vector<256x48xf32>, vector<33x48xf32> -> vector<33x48xf32>
    %c0_4 = arith.constant 0 : index
    %c0_5 = arith.constant 0 : index
    %c0_6 = arith.constant 0 : index
    %4 = vector.load %arg4[%c0_4, %c0_5, %c0_6] : memref<3x48x48xf32, #tpu.memory_space<vmem>>, vector<1x48x48xf32>
    %5 = vector.shape_cast %4 : vector<1x48x48xf32> to vector<48x48xf32>
    %cst_7 = arith.constant dense<0.000000e+00> : vector<33x48xf32>
    %6 = tpu.matmul %3, %5, %cst_7 {dimension_numbers = #tpu.dot_dimension_numbers<[1], [0], [0], [1], [0, 0, 1, 1], [], []>} : vector<33x48xf32>, vector<48x48xf32>, vector<33x48xf32> -> vector<33x48xf32>
    %c1 = arith.constant 1 : index
    %c0_8 = arith.constant 0 : index
    %c0_9 = arith.constant 0 : index
    %7 = vector.load %arg3[%c1, %c0_8, %c0_9] : memref<6x33x33xf32, #tpu.memory_space<vmem>>, vector<1x33x33xf32>
    %8 = vector.shape_cast %7 : vector<1x33x33xf32> to vector<33x33xf32>
    %cst_10 = arith.constant dense<0.000000e+00> : vector<33x48xf32>
    %9 = tpu.matmul %8, %6, %cst_10 {dimension_numbers = #tpu.dot_dimension_numbers<[1], [0], [0], [1], [0, 0, 1, 1], [], []>} : vector<33x33xf32>, vector<33x48xf32>, vector<33x48xf32> -> vector<33x48xf32>
    %c1_11 = arith.constant 1 : index
    %c0_12 = arith.constant 0 : index
    %c0_13 = arith.constant 0 : index
    %10 = vector.load %arg4[%c1_11, %c0_12, %c0_13] : memref<3x48x48xf32, #tpu.memory_space<vmem>>, vector<1x48x48xf32>
    %11 = vector.shape_cast %10 : vector<1x48x48xf32> to vector<48x48xf32>
    %cst_14 = arith.constant dense<0.000000e+00> : vector<33x48xf32>
    %12 = tpu.matmul %3, %11, %cst_14 {dimension_numbers = #tpu.dot_dimension_numbers<[1], [0], [0], [1], [0, 0, 1, 1], [], []>} : vector<33x48xf32>, vector<48x48xf32>, vector<33x48xf32> -> vector<33x48xf32>
    %13 = arith.addf %9, %12 : vector<33x48xf32>
    %c2 = arith.constant 2 : index
    %c0_15 = arith.constant 0 : index
    %c0_16 = arith.constant 0 : index
    %14 = vector.load %arg4[%c2, %c0_15, %c0_16] : memref<3x48x48xf32, #tpu.memory_space<vmem>>, vector<1x48x48xf32>
    %15 = vector.shape_cast %14 : vector<1x48x48xf32> to vector<48x48xf32>
    %cst_17 = arith.constant dense<0.000000e+00> : vector<33x48xf32>
    %16 = tpu.matmul %3, %15, %cst_17 {dimension_numbers = #tpu.dot_dimension_numbers<[1], [0], [0], [1], [0, 0, 1, 1], [], []>} : vector<33x48xf32>, vector<48x48xf32>, vector<33x48xf32> -> vector<33x48xf32>
    %c0_18 = arith.constant 0 : index
    %c0_19 = arith.constant 0 : index
    %c0_20 = arith.constant 0 : index
    %17 = vector.load %arg3[%c0_18, %c0_19, %c0_20] : memref<6x33x33xf32, #tpu.memory_space<vmem>>, vector<1x33x33xf32>
    %18 = vector.shape_cast %17 : vector<1x33x33xf32> to vector<33x33xf32>
    %cst_21 = arith.constant dense<0.000000e+00> : vector<33x48xf32>
    %19 = tpu.matmul %18, %16, %cst_21 {dimension_numbers = #tpu.dot_dimension_numbers<[1], [0], [0], [1], [0, 0, 1, 1], [], []>} : vector<33x33xf32>, vector<33x48xf32>, vector<33x48xf32> -> vector<33x48xf32>
    %20 = arith.addf %13, %19 : vector<33x48xf32>
    %c0_22 = arith.constant 0 : index
    %c0_23 = arith.constant 0 : index
    %21 = vector.load %arg5[%c0_22, %c0_23] : memref<1x48xf32, #tpu.memory_space<vmem>>, vector<1x48xf32>
    %22 = vector.broadcast %21 : vector<1x48xf32> to vector<33x48xf32>
    %23 = arith.addf %20, %22 : vector<33x48xf32>
    %c0_24 = arith.constant 0 : index
    %c0_25 = arith.constant 0 : index
    %c0_26 = arith.constant 0 : index
    %24 = vector.load %arg6[%c0_24, %c0_25, %c0_26] : memref<3x48x192xf32, #tpu.memory_space<vmem>>, vector<1x48x192xf32>
    %25 = vector.shape_cast %24 : vector<1x48x192xf32> to vector<48x192xf32>
    %cst_27 = arith.constant dense<0.000000e+00> : vector<33x192xf32>
    %26 = tpu.matmul %23, %25, %cst_27 {dimension_numbers = #tpu.dot_dimension_numbers<[1], [0], [0], [1], [0, 0, 1, 1], [], []>} : vector<33x48xf32>, vector<48x192xf32>, vector<33x192xf32> -> vector<33x192xf32>
    %c1_28 = arith.constant 1 : index
    %c0_29 = arith.constant 0 : index
    %c0_30 = arith.constant 0 : index
    %27 = vector.load %arg3[%c1_28, %c0_29, %c0_30] : memref<6x33x33xf32, #tpu.memory_space<vmem>>, vector<1x33x33xf32>
    %28 = vector.shape_cast %27 : vector<1x33x33xf32> to vector<33x33xf32>
    %cst_31 = arith.constant dense<0.000000e+00> : vector<33x192xf32>
    %29 = tpu.matmul %28, %26, %cst_31 {dimension_numbers = #tpu.dot_dimension_numbers<[1], [0], [0], [1], [0, 0, 1, 1], [], []>} : vector<33x33xf32>, vector<33x192xf32>, vector<33x192xf32> -> vector<33x192xf32>
    %c1_32 = arith.constant 1 : index
    %c0_33 = arith.constant 0 : index
    %c0_34 = arith.constant 0 : index
    %30 = vector.load %arg6[%c1_32, %c0_33, %c0_34] : memref<3x48x192xf32, #tpu.memory_space<vmem>>, vector<1x48x192xf32>
    %31 = vector.shape_cast %30 : vector<1x48x192xf32> to vector<48x192xf32>
    %cst_35 = arith.constant dense<0.000000e+00> : vector<33x192xf32>
    %32 = tpu.matmul %23, %31, %cst_35 {dimension_numbers = #tpu.dot_dimension_numbers<[1], [0], [0], [1], [0, 0, 1, 1], [], []>} : vector<33x48xf32>, vector<48x192xf32>, vector<33x192xf32> -> vector<33x192xf32>
    %33 = arith.addf %29, %32 : vector<33x192xf32>
    %c2_36 = arith.constant 2 : index
    %c0_37 = arith.constant 0 : index
    %c0_38 = arith.constant 0 : index
    %34 = vector.load %arg6[%c2_36, %c0_37, %c0_38] : memref<3x48x192xf32, #tpu.memory_space<vmem>>, vector<1x48x192xf32>
    %35 = vector.shape_cast %34 : vector<1x48x192xf32> to vector<48x192xf32>
    %cst_39 = arith.constant dense<0.000000e+00> : vector<33x192xf32>
    %36 = tpu.matmul %23, %35, %cst_39 {dimension_numbers = #tpu.dot_dimension_numbers<[1], [0], [0], [1], [0, 0, 1, 1], [], []>} : vector<33x48xf32>, vector<48x192xf32>, vector<33x192xf32> -> vector<33x192xf32>
    %c0_40 = arith.constant 0 : index
    %c0_41 = arith.constant 0 : index
    %c0_42 = arith.constant 0 : index
    %37 = vector.load %arg3[%c0_40, %c0_41, %c0_42] : memref<6x33x33xf32, #tpu.memory_space<vmem>>, vector<1x33x33xf32>
    %38 = vector.shape_cast %37 : vector<1x33x33xf32> to vector<33x33xf32>
    %cst_43 = arith.constant dense<0.000000e+00> : vector<33x192xf32>
    %39 = tpu.matmul %38, %36, %cst_43 {dimension_numbers = #tpu.dot_dimension_numbers<[1], [0], [0], [1], [0, 0, 1, 1], [], []>} : vector<33x33xf32>, vector<33x192xf32>, vector<33x192xf32> -> vector<33x192xf32>
    %40 = arith.addf %33, %39 : vector<33x192xf32>
    %c0_44 = arith.constant 0 : index
    %c0_45 = arith.constant 0 : index
    %41 = vector.load %arg7[%c0_44, %c0_45] : memref<1x192xf32, #tpu.memory_space<vmem>>, vector<1x192xf32>
    %42 = vector.broadcast %41 : vector<1x192xf32> to vector<33x192xf32>
    %43 = arith.addf %40, %42 : vector<33x192xf32>
    %cst_46 = arith.constant 0.000000e+00 : f32
    %44 = vector.broadcast %cst_46 : f32 to vector<33x192xf32>
    %45 = arith.cmpf ogt, %43, %44 : vector<33x192xf32>
    %cst_47 = arith.constant 1.000000e-01 : f32
    %46 = vector.broadcast %cst_47 : f32 to vector<33x192xf32>
    %47 = arith.mulf %46, %43 : vector<33x192xf32>
    %48 = arith.select %45, %43, %47 : vector<33x192xi1>, vector<33x192xf32>
    %c0_48 = arith.constant 0 : index
    %c0_49 = arith.constant 0 : index
    %c0_50 = arith.constant 0 : index
    %49 = vector.load %arg18[%c0_48, %c0_49, %c0_50] : memref<1x33x192xf32, #tpu.memory_space<vmem>>, vector<1x33x192xf32>
    %50 = vector.shape_cast %49 : vector<1x33x192xf32> to vector<33x192xf32>
    %51 = vector.shape_cast %48 : vector<33x192xf32> to vector<1x33x192xf32>
    tpu.vector_store %arg18[%c0_48, %c0_49, %c0_50], %51 {strides = array<i32>} : memref<1x33x192xf32, #tpu.memory_space<vmem>>, vector<1x33x192xf32>,
    %c0_51 = arith.constant 0 : index
    %c0_52 = arith.constant 0 : index
    %c0_53 = arith.constant 0 : index
    %52 = vector.load %arg8[%c0_51, %c0_52, %c0_53] : memref<3x192x96xf32, #tpu.memory_space<vmem>>, vector<1x192x96xf32>
    %53 = vector.shape_cast %52 : vector<1x192x96xf32> to vector<192x96xf32>
    %cst_54 = arith.constant dense<0.000000e+00> : vector<33x96xf32>
    %54 = tpu.matmul %48, %53, %cst_54 {dimension_numbers = #tpu.dot_dimension_numbers<[1], [0], [0], [1], [0, 0, 1, 1], [], []>} : vector<33x192xf32>, vector<192x96xf32>, vector<33x96xf32> -> vector<33x96xf32>
    %c1_55 = arith.constant 1 : index
    %c0_56 = arith.constant 0 : index
    %c0_57 = arith.constant 0 : index
    %55 = vector.load %arg3[%c1_55, %c0_56, %c0_57] : memref<6x33x33xf32, #tpu.memory_space<vmem>>, vector<1x33x33xf32>
    %56 = vector.shape_cast %55 : vector<1x33x33xf32> to vector<33x33xf32>
    %cst_58 = arith.constant dense<0.000000e+00> : vector<33x96xf32>
    %57 = tpu.matmul %56, %54, %cst_58 {dimension_numbers = #tpu.dot_dimension_numbers<[1], [0], [0], [1], [0, 0, 1, 1], [], []>} : vector<33x33xf32>, vector<33x96xf32>, vector<33x96xf32> -> vector<33x96xf32>
    %c1_59 = arith.constant 1 : index
    %c0_60 = arith.constant 0 : index
    %c0_61 = arith.constant 0 : index
    %58 = vector.load %arg8[%c1_59, %c0_60, %c0_61] : memref<3x192x96xf32, #tpu.memory_space<vmem>>, vector<1x192x96xf32>
    %59 = vector.shape_cast %58 : vector<1x192x96xf32> to vector<192x96xf32>
    %cst_62 = arith.constant dense<0.000000e+00> : vector<33x96xf32>
    %60 = tpu.matmul %48, %59, %cst_62 {dimension_numbers = #tpu.dot_dimension_numbers<[1], [0], [0], [1], [0, 0, 1, 1], [], []>} : vector<33x192xf32>, vector<192x96xf32>, vector<33x96xf32> -> vector<33x96xf32>
    %61 = arith.addf %57, %60 : vector<33x96xf32>
    %c2_63 = arith.constant 2 : index
    %c0_64 = arith.constant 0 : index
    %c0_65 = arith.constant 0 : index
    %62 = vector.load %arg8[%c2_63, %c0_64, %c0_65] : memref<3x192x96xf32, #tpu.memory_space<vmem>>, vector<1x192x96xf32>
    %63 = vector.shape_cast %62 : vector<1x192x96xf32> to vector<192x96xf32>
    %cst_66 = arith.constant dense<0.000000e+00> : vector<33x96xf32>
    %64 = tpu.matmul %48, %63, %cst_66 {dimension_numbers = #tpu.dot_dimension_numbers<[1], [0], [0], [1], [0, 0, 1, 1], [], []>} : vector<33x192xf32>, vector<192x96xf32>, vector<33x96xf32> -> vector<33x96xf32>
    %c0_67 = arith.constant 0 : index
    %c0_68 = arith.constant 0 : index
    %c0_69 = arith.constant 0 : index
    %65 = vector.load %arg3[%c0_67, %c0_68, %c0_69] : memref<6x33x33xf32, #tpu.memory_space<vmem>>, vector<1x33x33xf32>
    %66 = vector.shape_cast %65 : vector<1x33x33xf32> to vector<33x33xf32>
    %cst_70 = arith.constant dense<0.000000e+00> : vector<33x96xf32>
    %67 = tpu.matmul %66, %64, %cst_70 {dimension_numbers = #tpu.dot_dimension_numbers<[1], [0], [0], [1], [0, 0, 1, 1], [], []>} : vector<33x33xf32>, vector<33x96xf32>, vector<33x96xf32> -> vector<33x96xf32>
    %68 = arith.addf %61, %67 : vector<33x96xf32>
    %c0_71 = arith.constant 0 : index
    %c0_72 = arith.constant 0 : index
    %69 = vector.load %arg9[%c0_71, %c0_72] : memref<1x96xf32, #tpu.memory_space<vmem>>, vector<1x96xf32>
    %70 = vector.broadcast %69 : vector<1x96xf32> to vector<33x96xf32>
    %71 = arith.addf %68, %70 : vector<33x96xf32>
    %cst_73 = arith.constant 0.000000e+00 : f32
    %72 = vector.broadcast %cst_73 : f32 to vector<33x96xf32>
    %73 = arith.cmpf ogt, %71, %72 : vector<33x96xf32>
    %cst_74 = arith.constant 1.000000e-01 : f32
    %74 = vector.broadcast %cst_74 : f32 to vector<33x96xf32>
    %75 = arith.mulf %74, %71 : vector<33x96xf32>
    %76 = arith.select %73, %71, %75 : vector<33x96xi1>, vector<33x96xf32>
    %c0_75 = arith.constant 0 : index
    %c0_76 = arith.constant 0 : index
    %c0_77 = arith.constant 0 : index
    %77 = vector.load %arg19[%c0_75, %c0_76, %c0_77] : memref<1x33x96xf32, #tpu.memory_space<vmem>>, vector<1x33x96xf32>
    %78 = vector.shape_cast %77 : vector<1x33x96xf32> to vector<33x96xf32>
    %79 = vector.shape_cast %76 : vector<33x96xf32> to vector<1x33x96xf32>
    tpu.vector_store %arg19[%c0_75, %c0_76, %c0_77], %79 {strides = array<i32>} : memref<1x33x96xf32, #tpu.memory_space<vmem>>, vector<1x33x96xf32>,
    %c0_78 = arith.constant 0 : index
    %c0_79 = arith.constant 0 : index
    %c0_80 = arith.constant 0 : index
    %80 = vector.load %arg10[%c0_78, %c0_79, %c0_80] : memref<3x96x48xf32, #tpu.memory_space<vmem>>, vector<1x96x48xf32>
    %81 = vector.shape_cast %80 : vector<1x96x48xf32> to vector<96x48xf32>
    %cst_81 = arith.constant dense<0.000000e+00> : vector<33x48xf32>
    %82 = tpu.matmul %76, %81, %cst_81 {dimension_numbers = #tpu.dot_dimension_numbers<[1], [0], [0], [1], [0, 0, 1, 1], [], []>} : vector<33x96xf32>, vector<96x48xf32>, vector<33x48xf32> -> vector<33x48xf32>
    %c3 = arith.constant 3 : index
    %c0_82 = arith.constant 0 : index
    %c0_83 = arith.constant 0 : index
    %83 = vector.load %arg3[%c3, %c0_82, %c0_83] : memref<6x33x33xf32, #tpu.memory_space<vmem>>, vector<1x33x33xf32>
    %84 = vector.shape_cast %83 : vector<1x33x33xf32> to vector<33x33xf32>
    %cst_84 = arith.constant dense<0.000000e+00> : vector<33x48xf32>
    %85 = tpu.matmul %84, %82, %cst_84 {dimension_numbers = #tpu.dot_dimension_numbers<[1], [0], [0], [1], [0, 0, 1, 1], [], []>} : vector<33x33xf32>, vector<33x48xf32>, vector<33x48xf32> -> vector<33x48xf32>
    %c1_85 = arith.constant 1 : index
    %c0_86 = arith.constant 0 : index
    %c0_87 = arith.constant 0 : index
    %86 = vector.load %arg10[%c1_85, %c0_86, %c0_87] : memref<3x96x48xf32, #tpu.memory_space<vmem>>, vector<1x96x48xf32>
    %87 = vector.shape_cast %86 : vector<1x96x48xf32> to vector<96x48xf32>
    %cst_88 = arith.constant dense<0.000000e+00> : vector<33x48xf32>
    %88 = tpu.matmul %76, %87, %cst_88 {dimension_numbers = #tpu.dot_dimension_numbers<[1], [0], [0], [1], [0, 0, 1, 1], [], []>} : vector<33x96xf32>, vector<96x48xf32>, vector<33x48xf32> -> vector<33x48xf32>
    %89 = arith.addf %85, %88 : vector<33x48xf32>
    %c2_89 = arith.constant 2 : index
    %c0_90 = arith.constant 0 : index
    %c0_91 = arith.constant 0 : index
    %90 = vector.load %arg10[%c2_89, %c0_90, %c0_91] : memref<3x96x48xf32, #tpu.memory_space<vmem>>, vector<1x96x48xf32>
    %91 = vector.shape_cast %90 : vector<1x96x48xf32> to vector<96x48xf32>
    %cst_92 = arith.constant dense<0.000000e+00> : vector<33x48xf32>
    %92 = tpu.matmul %76, %91, %cst_92 {dimension_numbers = #tpu.dot_dimension_numbers<[1], [0], [0], [1], [0, 0, 1, 1], [], []>} : vector<33x96xf32>, vector<96x48xf32>, vector<33x48xf32> -> vector<33x48xf32>
    %c2_93 = arith.constant 2 : index
    %c0_94 = arith.constant 0 : index
    %c0_95 = arith.constant 0 : index
    %93 = vector.load %arg3[%c2_93, %c0_94, %c0_95] : memref<6x33x33xf32, #tpu.memory_space<vmem>>, vector<1x33x33xf32>
    %94 = vector.shape_cast %93 : vector<1x33x33xf32> to vector<33x33xf32>
    %cst_96 = arith.constant dense<0.000000e+00> : vector<33x48xf32>
    %95 = tpu.matmul %94, %92, %cst_96 {dimension_numbers = #tpu.dot_dimension_numbers<[1], [0], [0], [1], [0, 0, 1, 1], [], []>} : vector<33x33xf32>, vector<33x48xf32>, vector<33x48xf32> -> vector<33x48xf32>
    %96 = arith.addf %89, %95 : vector<33x48xf32>
    %c0_97 = arith.constant 0 : index
    %c0_98 = arith.constant 0 : index
    %97 = vector.load %arg11[%c0_97, %c0_98] : memref<1x48xf32, #tpu.memory_space<vmem>>, vector<1x48xf32>
    %98 = vector.broadcast %97 : vector<1x48xf32> to vector<33x48xf32>
    %99 = arith.addf %96, %98 : vector<33x48xf32>
    %cst_99 = arith.constant 0.000000e+00 : f32
    %100 = vector.broadcast %cst_99 : f32 to vector<33x48xf32>
    %101 = arith.cmpf ogt, %99, %100 : vector<33x48xf32>
    %cst_100 = arith.constant 1.000000e-01 : f32
    %102 = vector.broadcast %cst_100 : f32 to vector<33x48xf32>
    %103 = arith.mulf %102, %99 : vector<33x48xf32>
    %104 = arith.select %101, %99, %103 : vector<33x48xi1>, vector<33x48xf32>
    %c0_101 = arith.constant 0 : index
    %c0_102 = arith.constant 0 : index
    %c0_103 = arith.constant 0 : index
    %105 = vector.load %arg20[%c0_101, %c0_102, %c0_103] : memref<1x33x48xf32, #tpu.memory_space<vmem>>, vector<1x33x48xf32>
    %106 = vector.shape_cast %105 : vector<1x33x48xf32> to vector<33x48xf32>
    %107 = vector.shape_cast %104 : vector<33x48xf32> to vector<1x33x48xf32>
    tpu.vector_store %arg20[%c0_101, %c0_102, %c0_103], %107 {strides = array<i32>} : memref<1x33x48xf32, #tpu.memory_space<vmem>>, vector<1x33x48xf32>,
    %c0_104 = arith.constant 0 : index
    %c0_105 = arith.constant 0 : index
    %c0_106 = arith.constant 0 : index
    %108 = vector.load %arg12[%c0_104, %c0_105, %c0_106] : memref<3x48x24xf32, #tpu.memory_space<vmem>>, vector<1x48x24xf32>
    %109 = vector.shape_cast %108 : vector<1x48x24xf32> to vector<48x24xf32>
    %cst_107 = arith.constant dense<0.000000e+00> : vector<33x24xf32>
    %110 = tpu.matmul %104, %109, %cst_107 {dimension_numbers = #tpu.dot_dimension_numbers<[1], [0], [0], [1], [0, 0, 1, 1], [], []>} : vector<33x48xf32>, vector<48x24xf32>, vector<33x24xf32> -> vector<33x24xf32>
    %c5 = arith.constant 5 : index
    %c0_108 = arith.constant 0 : index
    %c0_109 = arith.constant 0 : index
    %111 = vector.load %arg3[%c5, %c0_108, %c0_109] : memref<6x33x33xf32, #tpu.memory_space<vmem>>, vector<1x33x33xf32>
    %112 = vector.shape_cast %111 : vector<1x33x33xf32> to vector<33x33xf32>
    %cst_110 = arith.constant dense<0.000000e+00> : vector<33x24xf32>
    %113 = tpu.matmul %112, %110, %cst_110 {dimension_numbers = #tpu.dot_dimension_numbers<[1], [0], [0], [1], [0, 0, 1, 1], [], []>} : vector<33x33xf32>, vector<33x24xf32>, vector<33x24xf32> -> vector<33x24xf32>
    %c1_111 = arith.constant 1 : index
    %c0_112 = arith.constant 0 : index
    %c0_113 = arith.constant 0 : index
    %114 = vector.load %arg12[%c1_111, %c0_112, %c0_113] : memref<3x48x24xf32, #tpu.memory_space<vmem>>, vector<1x48x24xf32>
    %115 = vector.shape_cast %114 : vector<1x48x24xf32> to vector<48x24xf32>
    %cst_114 = arith.constant dense<0.000000e+00> : vector<33x24xf32>
    %116 = tpu.matmul %104, %115, %cst_114 {dimension_numbers = #tpu.dot_dimension_numbers<[1], [0], [0], [1], [0, 0, 1, 1], [], []>} : vector<33x48xf32>, vector<48x24xf32>, vector<33x24xf32> -> vector<33x24xf32>
    %117 = arith.addf %113, %116 : vector<33x24xf32>
    %c2_115 = arith.constant 2 : index
    %c0_116 = arith.constant 0 : index
    %c0_117 = arith.constant 0 : index
    %118 = vector.load %arg12[%c2_115, %c0_116, %c0_117] : memref<3x48x24xf32, #tpu.memory_space<vmem>>, vector<1x48x24xf32>
    %119 = vector.shape_cast %118 : vector<1x48x24xf32> to vector<48x24xf32>
    %cst_118 = arith.constant dense<0.000000e+00> : vector<33x24xf32>
    %120 = tpu.matmul %104, %119, %cst_118 {dimension_numbers = #tpu.dot_dimension_numbers<[1], [0], [0], [1], [0, 0, 1, 1], [], []>} : vector<33x48xf32>, vector<48x24xf32>, vector<33x24xf32> -> vector<33x24xf32>
    %c4 = arith.constant 4 : index
    %c0_119 = arith.constant 0 : index
    %c0_120 = arith.constant 0 : index
    %121 = vector.load %arg3[%c4, %c0_119, %c0_120] : memref<6x33x33xf32, #tpu.memory_space<vmem>>, vector<1x33x33xf32>
    %122 = vector.shape_cast %121 : vector<1x33x33xf32> to vector<33x33xf32>
    %cst_121 = arith.constant dense<0.000000e+00> : vector<33x24xf32>
    %123 = tpu.matmul %122, %120, %cst_121 {dimension_numbers = #tpu.dot_dimension_numbers<[1], [0], [0], [1], [0, 0, 1, 1], [], []>} : vector<33x33xf32>, vector<33x24xf32>, vector<33x24xf32> -> vector<33x24xf32>
    %124 = arith.addf %117, %123 : vector<33x24xf32>
    %c0_122 = arith.constant 0 : index
    %c0_123 = arith.constant 0 : index
    %125 = vector.load %arg13[%c0_122, %c0_123] : memref<1x24xf32, #tpu.memory_space<vmem>>, vector<1x24xf32>
    %126 = vector.broadcast %125 : vector<1x24xf32> to vector<33x24xf32>
    %127 = arith.addf %124, %126 : vector<33x24xf32>
    %cst_124 = arith.constant 0.000000e+00 : f32
    %128 = vector.broadcast %cst_124 : f32 to vector<33x24xf32>
    %129 = arith.cmpf ogt, %127, %128 : vector<33x24xf32>
    %cst_125 = arith.constant 1.000000e-01 : f32
    %130 = vector.broadcast %cst_125 : f32 to vector<33x24xf32>
    %131 = arith.mulf %130, %127 : vector<33x24xf32>
    %132 = arith.select %129, %127, %131 : vector<33x24xi1>, vector<33x24xf32>
    %c0_126 = arith.constant 0 : index
    %c0_127 = arith.constant 0 : index
    %c0_128 = arith.constant 0 : index
    %133 = vector.load %arg21[%c0_126, %c0_127, %c0_128] : memref<1x33x24xf32, #tpu.memory_space<vmem>>, vector<1x33x24xf32>
    %134 = vector.shape_cast %133 : vector<1x33x24xf32> to vector<33x24xf32>
    %135 = vector.shape_cast %132 : vector<33x24xf32> to vector<1x33x24xf32>
    tpu.vector_store %arg21[%c0_126, %c0_127, %c0_128], %135 {strides = array<i32>} : memref<1x33x24xf32, #tpu.memory_space<vmem>>, vector<1x33x24xf32>,
    %c0_129 = arith.constant 0 : index
    %c0_130 = arith.constant 0 : index
    %c0_131 = arith.constant 0 : index
    %136 = vector.load %arg14[%c0_129, %c0_130, %c0_131] : memref<3x24x24xf32, #tpu.memory_space<vmem>>, vector<1x24x24xf32>
    %137 = vector.shape_cast %136 : vector<1x24x24xf32> to vector<24x24xf32>
    %cst_132 = arith.constant dense<0.000000e+00> : vector<33x24xf32>
    %138 = tpu.matmul %132, %137, %cst_132 {dimension_numbers = #tpu.dot_dimension_numbers<[1], [0], [0], [1], [0, 0, 1, 1], [], []>} : vector<33x24xf32>, vector<24x24xf32>, vector<33x24xf32> -> vector<33x24xf32>
    %c1_133 = arith.constant 1 : index
    %c0_134 = arith.constant 0 : index
    %c0_135 = arith.constant 0 : index
    %139 = vector.load %arg3[%c1_133, %c0_134, %c0_135] : memref<6x33x33xf32, #tpu.memory_space<vmem>>, vector<1x33x33xf32>
    %140 = vector.shape_cast %139 : vector<1x33x33xf32> to vector<33x33xf32>
    %cst_136 = arith.constant dense<0.000000e+00> : vector<33x24xf32>
    %141 = tpu.matmul %140, %138, %cst_136 {dimension_numbers = #tpu.dot_dimension_numbers<[1], [0], [0], [1], [0, 0, 1, 1], [], []>} : vector<33x33xf32>, vector<33x24xf32>, vector<33x24xf32> -> vector<33x24xf32>
    %c1_137 = arith.constant 1 : index
    %c0_138 = arith.constant 0 : index
    %c0_139 = arith.constant 0 : index
    %142 = vector.load %arg14[%c1_137, %c0_138, %c0_139] : memref<3x24x24xf32, #tpu.memory_space<vmem>>, vector<1x24x24xf32>
    %143 = vector.shape_cast %142 : vector<1x24x24xf32> to vector<24x24xf32>
    %cst_140 = arith.constant dense<0.000000e+00> : vector<33x24xf32>
    %144 = tpu.matmul %132, %143, %cst_140 {dimension_numbers = #tpu.dot_dimension_numbers<[1], [0], [0], [1], [0, 0, 1, 1], [], []>} : vector<33x24xf32>, vector<24x24xf32>, vector<33x24xf32> -> vector<33x24xf32>
    %145 = arith.addf %141, %144 : vector<33x24xf32>
    %c2_141 = arith.constant 2 : index
    %c0_142 = arith.constant 0 : index
    %c0_143 = arith.constant 0 : index
    %146 = vector.load %arg14[%c2_141, %c0_142, %c0_143] : memref<3x24x24xf32, #tpu.memory_space<vmem>>, vector<1x24x24xf32>
    %147 = vector.shape_cast %146 : vector<1x24x24xf32> to vector<24x24xf32>
    %cst_144 = arith.constant dense<0.000000e+00> : vector<33x24xf32>
    %148 = tpu.matmul %132, %147, %cst_144 {dimension_numbers = #tpu.dot_dimension_numbers<[1], [0], [0], [1], [0, 0, 1, 1], [], []>} : vector<33x24xf32>, vector<24x24xf32>, vector<33x24xf32> -> vector<33x24xf32>
    %c0_145 = arith.constant 0 : index
    %c0_146 = arith.constant 0 : index
    %c0_147 = arith.constant 0 : index
    %149 = vector.load %arg3[%c0_145, %c0_146, %c0_147] : memref<6x33x33xf32, #tpu.memory_space<vmem>>, vector<1x33x33xf32>
    %150 = vector.shape_cast %149 : vector<1x33x33xf32> to vector<33x33xf32>
    %cst_148 = arith.constant dense<0.000000e+00> : vector<33x24xf32>
    %151 = tpu.matmul %150, %148, %cst_148 {dimension_numbers = #tpu.dot_dimension_numbers<[1], [0], [0], [1], [0, 0, 1, 1], [], []>} : vector<33x33xf32>, vector<33x24xf32>, vector<33x24xf32> -> vector<33x24xf32>
    %152 = arith.addf %145, %151 : vector<33x24xf32>
    %c0_149 = arith.constant 0 : index
    %c0_150 = arith.constant 0 : index
    %153 = vector.load %arg15[%c0_149, %c0_150] : memref<1x24xf32, #tpu.memory_space<vmem>>, vector<1x24xf32>
    %154 = vector.broadcast %153 : vector<1x24xf32> to vector<33x24xf32>
    %155 = arith.addf %152, %154 : vector<33x24xf32>
    %cst_151 = arith.constant 0.000000e+00 : f32
    %156 = vector.broadcast %cst_151 : f32 to vector<33x24xf32>
    %157 = arith.cmpf ogt, %155, %156 : vector<33x24xf32>
    %cst_152 = arith.constant 1.000000e-01 : f32
    %158 = vector.broadcast %cst_152 : f32 to vector<33x24xf32>
    %159 = arith.mulf %158, %155 : vector<33x24xf32>
    %160 = arith.select %157, %155, %159 : vector<33x24xi1>, vector<33x24xf32>
    %c0_153 = arith.constant 0 : index
    %c0_154 = arith.constant 0 : index
    %c0_155 = arith.constant 0 : index
    %161 = vector.load %arg22[%c0_153, %c0_154, %c0_155] : memref<1x33x24xf32, #tpu.memory_space<vmem>>, vector<1x33x24xf32>
    %162 = vector.shape_cast %161 : vector<1x33x24xf32> to vector<33x24xf32>
    %163 = vector.shape_cast %160 : vector<33x24xf32> to vector<1x33x24xf32>
    tpu.vector_store %arg22[%c0_153, %c0_154, %c0_155], %163 {strides = array<i32>} : memref<1x33x24xf32, #tpu.memory_space<vmem>>, vector<1x33x24xf32>,
    %c0_156 = arith.constant 0 : index
    %c0_157 = arith.constant 0 : index
    %c0_158 = arith.constant 0 : index
    %164 = vector.load %arg16[%c0_156, %c0_157, %c0_158] : memref<3x24x3xf32, #tpu.memory_space<vmem>>, vector<1x24x3xf32>
    %165 = vector.shape_cast %164 : vector<1x24x3xf32> to vector<24x3xf32>
    %cst_159 = arith.constant dense<0.000000e+00> : vector<33x3xf32>
    %166 = tpu.matmul %160, %165, %cst_159 {dimension_numbers = #tpu.dot_dimension_numbers<[1], [0], [0], [1], [0, 0, 1, 1], [], []>} : vector<33x24xf32>, vector<24x3xf32>, vector<33x3xf32> -> vector<33x3xf32>
    %c1_160 = arith.constant 1 : index
    %c0_161 = arith.constant 0 : index
    %c0_162 = arith.constant 0 : index
    %167 = vector.load %arg3[%c1_160, %c0_161, %c0_162] : memref<6x33x33xf32, #tpu.memory_space<vmem>>, vector<1x33x33xf32>
    %168 = vector.shape_cast %167 : vector<1x33x33xf32> to vector<33x33xf32>
    %cst_163 = arith.constant dense<0.000000e+00> : vector<33x3xf32>
    %169 = tpu.matmul %168, %166, %cst_163 {dimension_numbers = #tpu.dot_dimension_numbers<[1], [0], [0], [1], [0, 0, 1, 1], [], []>} : vector<33x33xf32>, vector<33x3xf32>, vector<33x3xf32> -> vector<33x3xf32>
    %c1_164 = arith.constant 1 : index
    %c0_165 = arith.constant 0 : index
    %c0_166 = arith.constant 0 : index
    %170 = vector.load %arg16[%c1_164, %c0_165, %c0_166] : memref<3x24x3xf32, #tpu.memory_space<vmem>>, vector<1x24x3xf32>
    %171 = vector.shape_cast %170 : vector<1x24x3xf32> to vector<24x3xf32>
    %cst_167 = arith.constant dense<0.000000e+00> : vector<33x3xf32>
    %172 = tpu.matmul %160, %171, %cst_167 {dimension_numbers = #tpu.dot_dimension_numbers<[1], [0], [0], [1], [0, 0, 1, 1], [], []>} : vector<33x24xf32>, vector<24x3xf32>, vector<33x3xf32> -> vector<33x3xf32>
    %173 = arith.addf %169, %172 : vector<33x3xf32>
    %c2_168 = arith.constant 2 : index
    %c0_169 = arith.constant 0 : index
    %c0_170 = arith.constant 0 : index
    %174 = vector.load %arg16[%c2_168, %c0_169, %c0_170] : memref<3x24x3xf32, #tpu.memory_space<vmem>>, vector<1x24x3xf32>
    %175 = vector.shape_cast %174 : vector<1x24x3xf32> to vector<24x3xf32>
    %cst_171 = arith.constant dense<0.000000e+00> : vector<33x3xf32>
    %176 = tpu.matmul %160, %175, %cst_171 {dimension_numbers = #tpu.dot_dimension_numbers<[1], [0], [0], [1], [0, 0, 1, 1], [], []>} : vector<33x24xf32>, vector<24x3xf32>, vector<33x3xf32> -> vector<33x3xf32>
    %c0_172 = arith.constant 0 : index
    %c0_173 = arith.constant 0 : index
    %c0_174 = arith.constant 0 : index
    %177 = vector.load %arg3[%c0_172, %c0_173, %c0_174] : memref<6x33x33xf32, #tpu.memory_space<vmem>>, vector<1x33x33xf32>
    %178 = vector.shape_cast %177 : vector<1x33x33xf32> to vector<33x33xf32>
    %cst_175 = arith.constant dense<0.000000e+00> : vector<33x3xf32>
    %179 = tpu.matmul %178, %176, %cst_175 {dimension_numbers = #tpu.dot_dimension_numbers<[1], [0], [0], [1], [0, 0, 1, 1], [], []>} : vector<33x33xf32>, vector<33x3xf32>, vector<33x3xf32> -> vector<33x3xf32>
    %180 = arith.addf %173, %179 : vector<33x3xf32>
    %c0_176 = arith.constant 0 : index
    %c0_177 = arith.constant 0 : index
    %181 = vector.load %arg17[%c0_176, %c0_177] : memref<1x3xf32, #tpu.memory_space<vmem>>, vector<1x3xf32>
    %182 = vector.broadcast %181 : vector<1x3xf32> to vector<33x3xf32>
    %183 = arith.addf %180, %182 : vector<33x3xf32>
    %c0_178 = arith.constant 0 : index
    %c0_179 = arith.constant 0 : index
    %c0_180 = arith.constant 0 : index
    %184 = vector.load %arg23[%c0_178, %c0_179, %c0_180] : memref<1x33x3xf32, #tpu.memory_space<vmem>>, vector<1x33x3xf32>
    %185 = vector.shape_cast %184 : vector<1x33x3xf32> to vector<33x3xf32>
    %186 = vector.shape_cast %183 : vector<33x3xf32> to vector<1x33x3xf32>
    tpu.vector_store %arg23[%c0_178, %c0_179, %c0_180], %186 {strides = array<i32>} : memref<1x33x3xf32, #tpu.memory_space<vmem>>, vector<1x33x3xf32>,
    return
  }
  func.func @transform_0(%arg0: i32) -> (i32, i32, i32) {
    %c0_i32 = arith.constant 0 : i32
    %c0_i32_0 = arith.constant 0 : i32
    %c0_i32_1 = arith.constant 0 : i32
    return %arg0, %c0_i32, %c0_i32_0 : i32, i32, i32
  }
  func.func @transform_1(%arg0: i32) -> (i32, i32) {
    %c0_i32 = arith.constant 0 : i32
    %c0_i32_0 = arith.constant 0 : i32
    %c0_i32_1 = arith.constant 0 : i32
    return %c0_i32, %c0_i32_0 : i32, i32
  }
  func.func @transform_2(%arg0: i32) -> (i32, i32, i32) {
    %c0_i32 = arith.constant 0 : i32
    %c0_i32_0 = arith.constant 0 : i32
    %c0_i32_1 = arith.constant 0 : i32
    %c0_i32_2 = arith.constant 0 : i32
    return %c0_i32, %c0_i32_0, %c0_i32_1 : i32, i32, i32
  }
  func.func @transform_3(%arg0: i32) -> (i32, i32, i32) {
    %c0_i32 = arith.constant 0 : i32
    %c0_i32_0 = arith.constant 0 : i32
    %c0_i32_1 = arith.constant 0 : i32
    %c0_i32_2 = arith.constant 0 : i32
    return %c0_i32, %c0_i32_0, %c0_i32_1 : i32, i32, i32
  }
  func.func @transform_4(%arg0: i32) -> (i32, i32) {
    %c0_i32 = arith.constant 0 : i32
    %c0_i32_0 = arith.constant 0 : i32
    %c0_i32_1 = arith.constant 0 : i32
    return %c0_i32, %c0_i32_0 : i32, i32
  }
  func.func @transform_5(%arg0: i32) -> (i32, i32, i32) {
    %c0_i32 = arith.constant 0 : i32
    %c0_i32_0 = arith.constant 0 : i32
    %c0_i32_1 = arith.constant 0 : i32
    %c0_i32_2 = arith.constant 0 : i32
    return %c0_i32, %c0_i32_0, %c0_i32_1 : i32, i32, i32
  }
  func.func @transform_6(%arg0: i32) -> (i32, i32) {
    %c0_i32 = arith.constant 0 : i32
    %c0_i32_0 = arith.constant 0 : i32
    %c0_i32_1 = arith.constant 0 : i32
    return %c0_i32, %c0_i32_0 : i32, i32
  }
  func.func @transform_7(%arg0: i32) -> (i32, i32, i32) {
    %c0_i32 = arith.constant 0 : i32
    %c0_i32_0 = arith.constant 0 : i32
    %c0_i32_1 = arith.constant 0 : i32
    %c0_i32_2 = arith.constant 0 : i32
    return %c0_i32, %c0_i32_0, %c0_i32_1 : i32, i32, i32
  }
  func.func @transform_8(%arg0: i32) -> (i32, i32) {
    %c0_i32 = arith.constant 0 : i32
    %c0_i32_0 = arith.constant 0 : i32
    %c0_i32_1 = arith.constant 0 : i32
    return %c0_i32, %c0_i32_0 : i32, i32
  }
  func.func @transform_9(%arg0: i32) -> (i32, i32, i32) {
    %c0_i32 = arith.constant 0 : i32
    %c0_i32_0 = arith.constant 0 : i32
    %c0_i32_1 = arith.constant 0 : i32
    %c0_i32_2 = arith.constant 0 : i32
    return %c0_i32, %c0_i32_0, %c0_i32_1 : i32, i32, i32
  }
  func.func @transform_10(%arg0: i32) -> (i32, i32) {
    %c0_i32 = arith.constant 0 : i32
    %c0_i32_0 = arith.constant 0 : i32
    %c0_i32_1 = arith.constant 0 : i32
    return %c0_i32, %c0_i32_0 : i32, i32
  }
  func.func @transform_11(%arg0: i32) -> (i32, i32, i32) {
    %c0_i32 = arith.constant 0 : i32
    %c0_i32_0 = arith.constant 0 : i32
    %c0_i32_1 = arith.constant 0 : i32
    %c0_i32_2 = arith.constant 0 : i32
    return %c0_i32, %c0_i32_0, %c0_i32_1 : i32, i32, i32
  }
  func.func @transform_12(%arg0: i32) -> (i32, i32) {
    %c0_i32 = arith.constant 0 : i32
    %c0_i32_0 = arith.constant 0 : i32
    %c0_i32_1 = arith.constant 0 : i32
    return %c0_i32, %c0_i32_0 : i32, i32
  }
  func.func @transform_13(%arg0: i32) -> (i32, i32, i32) {
    %c0_i32 = arith.constant 0 : i32
    %c0_i32_0 = arith.constant 0 : i32
    %c0_i32_1 = arith.constant 0 : i32
    %c0_i32_2 = arith.constant 0 : i32
    return %c0_i32, %c0_i32_0, %c0_i32_1 : i32, i32, i32
  }
  func.func @transform_14(%arg0: i32) -> (i32, i32) {
    %c0_i32 = arith.constant 0 : i32
    %c0_i32_0 = arith.constant 0 : i32
    %c0_i32_1 = arith.constant 0 : i32
    return %c0_i32, %c0_i32_0 : i32, i32
  }
  func.func @transform_15(%arg0: i32) -> (i32, i32, i32) {
    %c0_i32 = arith.constant 0 : i32
    %c0_i32_0 = arith.constant 0 : i32
    %c0_i32_1 = arith.constant 0 : i32
    %c0_i32_2 = arith.constant 0 : i32
    return %c0_i32, %c0_i32_0, %c0_i32_1 : i32, i32, i32
  }
  func.func @transform_16(%arg0: i32) -> (i32, i32) {
    %c0_i32 = arith.constant 0 : i32
    %c0_i32_0 = arith.constant 0 : i32
    %c0_i32_1 = arith.constant 0 : i32
    return %c0_i32, %c0_i32_0 : i32, i32
  }
  func.func @transform_17(%arg0: i32) -> (i32, i32, i32) {
    %c0_i32 = arith.constant 0 : i32
    %c0_i32_0 = arith.constant 0 : i32
    %c0_i32_1 = arith.constant 0 : i32
    return %arg0, %c0_i32, %c0_i32_0 : i32, i32, i32
  }
  func.func @transform_18(%arg0: i32) -> (i32, i32, i32) {
    %c0_i32 = arith.constant 0 : i32
    %c0_i32_0 = arith.constant 0 : i32
    %c0_i32_1 = arith.constant 0 : i32
    return %arg0, %c0_i32, %c0_i32_0 : i32, i32, i32
  }
  func.func @transform_19(%arg0: i32) -> (i32, i32, i32) {
    %c0_i32 = arith.constant 0 : i32
    %c0_i32_0 = arith.constant 0 : i32
    %c0_i32_1 = arith.constant 0 : i32
    return %arg0, %c0_i32, %c0_i32_0 : i32, i32, i32
  }
  func.func @transform_20(%arg0: i32) -> (i32, i32, i32) {
    %c0_i32 = arith.constant 0 : i32
    %c0_i32_0 = arith.constant 0 : i32
    %c0_i32_1 = arith.constant 0 : i32
    return %arg0, %c0_i32, %c0_i32_0 : i32, i32, i32
  }
  func.func @transform_21(%arg0: i32) -> (i32, i32, i32) {
    %c0_i32 = arith.constant 0 : i32
    %c0_i32_0 = arith.constant 0 : i32
    %c0_i32_1 = arith.constant 0 : i32
    return %arg0, %c0_i32, %c0_i32_0 : i32, i32, i32
  }
  func.func @transform_22(%arg0: i32) -> (i32, i32, i32) {
    %c0_i32 = arith.constant 0 : i32
    %c0_i32_0 = arith.constant 0 : i32
    %c0_i32_1 = arith.constant 0 : i32
    return %arg0, %c0_i32, %c0_i32_0 : i32, i32, i32
  }
}

</mosaic_0001>

<bundles_post_ra>
// kernel: a_call__.1
= control target key start
LH: loop header
LB: loop body
LE: loop exit
PB: predicated region body
PF: predicated region fallthrough
CT: control target
= control target key end

     0   :  { %s8976_s0 = inlined_call_operand.vmem [shape: f32[2,33,256], index: 0, kind: input, shape index: {}]   ;;  %s8977_s1 = inlined_call_operand.vmem [shape: f32[256,48], index: 1, kind: input, shape index: {}]   ;;  %s8978_s2 = inlined_call_operand.vmem [shape: f32[6,33,33], index: 2, kind: input, shape index: {}]   ;;  %s8979_s3 = inlined_call_operand.vmem [shape: f32[3,48,48], index: 3, kind: input, shape index: {}]   ;;  %s8980_s4 = inlined_call_operand.vmem [shape: f32[1,48], index: 4, kind: input, shape index: {}]   ;;  %s8981_s5 = inlined_call_operand.vmem [shape: f32[3,48,192], index: 5, kind: input, shape index: {}]   ;;  %s8982_s6 = inlined_call_operand.vmem [shape: f32[1,192], index: 6, kind: input, shape index: {}]   ;;  %s8983_s7 = inlined_call_operand.vmem [shape: f32[3,192,96], index: 7, kind: input, shape index: {}]   ;;  %s8984_s8 = inlined_call_operand.vmem [shape: f32[1,96], index: 8, kind: input, shape index: {}]   ;;  %s8985_s9 = inlined_call_operand.vmem [shape: f32[3,96,48], index: 9, kind: input, shape index: {}]   ;;  %s8986_s10 = inlined_call_operand.vmem [shape: f32[1,48], index: 10, kind: input, shape index: {}]   ;;  %s8987_s11 = inlined_call_operand.vmem [shape: f32[3,48,24], index: 11, kind: input, shape index: {}]   ;;  %s8988_s12 = inlined_call_operand.vmem [shape: f32[1,24], index: 12, kind: input, shape index: {}]   ;;  %s8989_s13 = inlined_call_operand.vmem [shape: f32[3,24,24], index: 13, kind: input, shape index: {}]   ;;  %s8990_s14 = inlined_call_operand.vmem [shape: f32[1,24], index: 14, kind: input, shape index: {}]   ;;  %s8991_s15 = inlined_call_operand.vmem [shape: f32[3,24,3], index: 15, kind: input, shape index: {}]   ;;  %s8992_s16 = inlined_call_operand.vmem [shape: f32[1,3], index: 16, kind: input, shape index: {}]   ;;  %s8993_s17 = inlined_call_operand.vmem [shape: f32[2,33,192], index: 17, kind: output, shape index: {0}]   ;;  %s8994_s18 = inlined_call_operand.vmem [shape: f32[2,33,96], index: 18, kind: output, shape index: {1}]   ;;  %s8995_s19 = inlined_call_operand.vmem [shape: f32[2,33,48], index: 19, kind: output, shape index: {2}]   ;;  %s8996_s20 = inlined_call_operand.vmem [shape: f32[2,33,24], index: 20, kind: output, shape index: {3}]   ;;  %s8997_s21 = inlined_call_operand.vmem [shape: f32[2,33,24], index: 21, kind: output, shape index: {4}]   ;;  %s8998_s22 = inlined_call_operand.vmem [shape: f32[2,33,3], index: 22, kind: output, shape index: {5}]  }
   0x1   :  { %9005 = sst [smem:[#allocation3_spill]] %s8976_s0 }
   0x2   :  { %9006 = sst [smem:[#allocation4_spill]] %s8977_s1 }
   0x3   :  { %9007 = sst [smem:[#allocation5_spill]] %s8978_s2 }
   0x4   :  { %9008 = sst [smem:[#allocation6_spill]] %s8979_s3  ;;  %s7128_s3 = smov 0  }
   0x5   :  { %9009 = sst [smem:[#allocation7_spill]] %s8980_s4 }
   0x6   :  { %9010 = sst [smem:[#allocation8_spill]] %s8981_s5 }
   0x7   :  { %9011 = sst [smem:[#allocation9_spill]] %s8982_s6 }
   0x8   :  { %9012 = sst [smem:[#allocation10_spill]] %s8998_s22 }
   0x9 LB: > { %9013 = sst [smem:[#allocation2_spill]] %s7008_s3  ;;  %s5153_s28 = sadd.s32 4294967295, %s7008_s3   ;;  %s7008_s3 = sphi %s7128_s3, %s33_s3  }
   0xa   : > { %p5157_p0 = scmp.ge.s32.totalorder %s7008_s3, 1  ;;  %p623_p1 = scmp.lt.s32.totalorder %s7008_s3, 3 }
   0xc   : > { %p624_p2 = pnand %p5157_p0, %p623_p1 }
   0xd   : > { %s9014_s4 = sld [smem:[#allocation4_spill]] (!%p624_p2)  ;;  %p710_p3 = scmp.lt.s32.totalorder (!%p624_p2), %s5153_s28, 1  ;;  %v7010_v7 = vmov (!%p624_p2), 0.0|0.0   ;;  %vm7011_vm0 = vmmov (!%p624_p2), 0   ;;  %vm883_vm1 = vcmask (!%p624_p2), 392192   ;;  %vm1108_vm2 = vcmask (!%p624_p2), 1040384  }
   0xe   : > { %627 = sbr.rel (%p624_p2) target bundleno = 3855 (0xf0f), region = 88  ;;  %6605 = vmatprep.subr.bf16.mxu1 (!%p624_p2), %v7010_v7  ;;  %s9015_s6 = sld [smem:[#allocation3_spill]] (!%p624_p2)  ;;  %vm1092_vm3 = vcmask (!%p624_p2), 269312   ;;  %vm2032_vm6 = vcmask (!%p624_p2), 523264   ;;  %vm2041_vm15 = vcmask (!%p624_p2), 516096  }
   0xf   : > { %s9016_s1 = sld [smem:[#allocation6_spill]] (!%p624_p2)  ;;  %s9019_s24 = sld [smem:[#allocation8_spill]] (!%p624_p2) }
  0x10   : > { %s9020_s0 = sld [smem:[#allocation7_spill]] (!%p624_p2)  ;;  %s9021_s22 = sld [smem:[#allocation9_spill]] (!%p624_p2) }
  0x13   : > { %v771_v0 = vld [vmem:[%s9014_s4 + $0x80] sm:$0xff] (!%p624_p2)  ;;  %v772_v1 = vld [vmem:[%s9014_s4 + $0x88] sm:$0xff] (!%p624_p2)  ;;  %v773_v5 = vld [vmem:[%s9014_s4 + $0x90] sm:$0xff] (!%p624_p2) }
  0x14   : > { %v755_v2 = vld [vmem:[%s9014_s4] sm:$0xff] (!%p624_p2)  ;;  %v6573_v3 = vpack.c.bf16 (!%p624_p2), %v772_v1, %v771_v0  ;;  %v756_v4 = vld [vmem:[%s9014_s4 + $0x8] sm:$0xff] (!%p624_p2)  ;;  %v774_v6 = vld [vmem:[%s9014_s4 + $0x98] sm:$0xff] (!%p624_p2) }
  0x15   : > { %v6575_v8 = vpack.c.bf16 %v756_v4, %v755_v2  ;;  %v6577_v9 = vpack.c.bf16 %v774_v6, %v773_v5  ;;  %v757_v10 = vld [vmem:[%s9014_s4 + $0x10] sm:$0xff]  ;;  %v758_v11 = vld [vmem:[%s9014_s4 + $0x18] sm:$0xff]  ;;  %v775_v12 = vld [vmem:[%s9014_s4 + $0xa0] sm:$0xff]  ;;  %s9026_s28 = smov (!%p710_p3, %s5153_s28), 1  ;;  %v7012_v4 = vmov 0.0  }
  0x16   : > { %6574 = vmatprep.subr.bf16.mxu0 %v6573_v3  ;;  %v776_v13 = vld [vmem:[%s9014_s4 + $0xa8] sm:$0xff]  ;;  %v6579_v14 = vpack.c.bf16 %v758_v11, %v757_v10  ;;  %s9004_s25 = smul.u32 80, %s9026_s28  ;;  %v759_v16 = vld [vmem:[%s9014_s4 + $0x20] sm:$0xff]  ;;  %v777_v18 = vld [vmem:[%s9014_s4 + $0xb0] sm:$0xff]  ;;  %5880 = vmatprep.mubr.msk.f32.mxu1 %vm7011_vm0, %v7012_v4 }
  0x17   : > { %6576 = vmatpush3.bf16.msra.mxu0 %v6575_v8  ;;  %v6581_v15 = vpack.c.bf16 %v776_v13, %v775_v12  ;;  %v760_v17 = vld [vmem:[%s9014_s4 + $0x28] sm:$0xff]  ;;  %v778_v19 = vld [vmem:[%s9014_s4 + $0xb8] sm:$0xff]  ;;  %v761_v22 = vld [vmem:[%s9014_s4 + $0x30] sm:$0xff] }
  0x18   : > { %6578 = vmatprep.subr.bf16.mxu0 %v6577_v9  ;;  %s7187_s3 = scalar_lea.vmem %s9015_s6, %s9004_s25  ;;  %v6583_v20 = vpack.c.bf16 %v760_v17, %v759_v16  ;;  %v6585_v21 = vpack.c.bf16 %v778_v19, %v777_v18  ;;  %v762_v23 = vld [vmem:[%s9014_s4 + $0x38] sm:$0xff]  ;;  %v779_v24 = vld [vmem:[%s9014_s4 + $0xc0] sm:$0xff]  ;;  %v780_v25 = vld [vmem:[%s9014_s4 + $0xc8] sm:$0xff]  ;;  %s9022_s25 = smul.u32 80, %s9026_s28 }
  0x19   : > { %v746_v26 = vld [vmem:[%s7187_s3 + $0x8] sm:$0xff]  ;;  %v6587_v27 = vpack.c.bf16 %v762_v23, %v761_v22  ;;  %v763_v28 = vld [vmem:[%s9014_s4 + $0x40] sm:$0xff]  ;;  %v6589_v29 = vpack.c.bf16 %v780_v25, %v779_v24  ;;  %v781_v31 = vld [vmem:[%s9014_s4 + $0xd0] sm:$0xff]  ;;  %s8187_s6 = smul.u32 40, %s9026_s28 }
  0x1a   : > { %851 = vmatprep.mubr.f32.mxu0 %v746_v26  ;;  %v764_v30 = vld [vmem:[%s9014_s4 + $0x48] sm:$0xff]  ;;  %v782_v32 = vld [vmem:[%s9014_s4 + $0xd8] sm:$0xff]  ;;  %v877_v33 = vld [vmem:[%s9016_s1] sm:$0xff]  ;;  %s7829_s5 = scalar_lea.vmem %s8993_s17, %s9022_s25 }
  0x1b   : > { %6580 = vmatpush3.bf16.msra.mxu0 %v6579_v14  ;;  %v878_v34 = vld [vmem:[%s9016_s1 + $0x8] sm:$0xff]  ;;  %v879_v35 = vld [vmem:[%s9016_s1 + $0x10] sm:$0xff]  ;;  %v880_v37 = vld [vmem:[%s9016_s1 + $0x18] sm:$0xff]  ;;  %v6591_v38 = vpack.c.bf16 %v764_v30, %v763_v28  ;;  %v6593_v39 = vpack.c.bf16 %v782_v32, %v781_v31  ;;  %s8201_s28 = scalar_lea.vmem %s8994_s18, %s8187_s6  ;;  %s8445_s29 = scalar_lea.vmem %s8995_s19, %s8187_s6 }
  0x1c   : > { %6582 = vmatprep.subr.bf16.mxu0 %v6581_v15  ;;  %v6606_v36 = vpack.c.bf16 %v878_v34, %v877_v33  ;;  %v765_v40 = vld [vmem:[%s9014_s4 + $0x50] sm:$0xff]  ;;  %v766_v41 = vld [vmem:[%s9014_s4 + $0x58] sm:$0xff]  ;;  %v6609_v42 = vpack.c.bf16 %v880_v37, %v879_v35  ;;  %v783_v43 = vld [vmem:[%s9014_s4 + $0xe0] sm:$0xff]  ;;  %s8848_s25 = scalar_lea.vmem %s8997_s21, %s8187_s6 }
  0x1d   : > { %v784_v44 = vld [vmem:[%s9014_s4 + $0xe8] sm:$0xff]  ;;  %v6595_v45 = vpack.c.bf16 %v766_v41, %v765_v40  ;;  %v767_v47 = vld [vmem:[%s9014_s4 + $0x60] sm:$0xff]  ;;  %v785_v49 = vld [vmem:[%s9014_s4 + $0xf0] sm:$0xff] }
  0x1e   : > { %6607 = vmatpush3.bf16.msra.mxu1 %v6606_v36  ;;  %v6597_v46 = vpack.c.bf16 %v784_v44, %v783_v43  ;;  %v768_v48 = vld [vmem:[%s9014_s4 + $0x68] sm:$0xff]  ;;  %v786_v50 = vld [vmem:[%s9014_s4 + $0xf8] sm:$0xff]  ;;  %v769_v53 = vld [vmem:[%s9014_s4 + $0x70] sm:$0xff] }
  0x1f   : > { %6584 = vmatpush3.bf16.msra.mxu0 %v6583_v20  ;;  %6608 = vmatprep.subr.bf16.mxu1 %v7010_v7  ;;  %v6599_v51 = vpack.c.bf16 %v768_v48, %v767_v47  ;;  %v6601_v52 = vpack.c.bf16 %v786_v50, %v785_v49  ;;  %v770_v54 = vld [vmem:[%s9014_s4 + $0x78] sm:$0xff]  ;;  %v745_v56 = vld [vmem:[%s7187_s3] sm:$0xff]  ;;  %v747_v58 = vld [vmem:[%s7187_s3 + $0x10] sm:$0xff] }
  0x20   : > { %6586 = vmatprep.subr.bf16.mxu0 %v6585_v21  ;;  %v6603_v55 = vpack.c.bf16 %v770_v54, %v769_v53  ;;  %v748_v57 = vld [vmem:[%s7187_s3 + $0x18] sm:$0xff]  ;;  %v750_v59 = vld [vmem:[%s7187_s3 + $0x28] sm:$0xff]  ;;  %v749_v60 = vld [vmem:[%s7187_s3 + $0x20] sm:$0xff] }
  0x21   : > { %v752_v61 = vld [vmem:[%s7187_s3 + $0x38] sm:$0xff]  ;;  %v751_v62 = vld [vmem:[%s7187_s3 + $0x30] sm:$0xff]  ;;  %v754_v63 = vld [vmem:[%s7187_s3 + $0x48] sm:$0x1] }
  0x22   : > { %6610 = vmatpush3.bf16.msra.mxu1 %v6609_v42  ;;  %v753_v0 = vld [vmem:[%s7187_s3 + $0x40] sm:$0x1]  ;;  %v882_v2 = vld [vmem:[%s9016_s1 + $0x28] sm:$0xff]  ;;  %v5175_v5 = vld [vmem:[%s9016_s1 + $0x30] sm:$0xff]  ;;  %s9017_s3 = sld [smem:[#allocation5_spill]] }
  0x23   : > { %6588 = vmatpush3.bf16.msra.mxu0 %v6587_v27  ;;  %6611 = vmatprep.subr.bf16.mxu1 %v7010_v7  ;;  %v881_v1 = vld [vmem:[%s9016_s1 + $0x20] sm:$0xff]  ;;  %v5176_v6 = vld [vmem:[%s9016_s1 + $0x38] sm:$0xff]  ;;  %v5178_v13 = vld [vmem:[%s9016_s1 + $0x48] sm:$0xff] }
  0x24   : > { %6590 = vmatprep.subr.bf16.mxu0 %v6589_v29  ;;  %v6612_v3 = vpack.c.bf16 %v882_v2, %v881_v1  ;;  %v6615_v10 = vpack.c.bf16 %v5176_v6, %v5175_v5  ;;  %v5177_v12 = vld [vmem:[%s9016_s1 + $0x40] sm:$0xff]  ;;  %v5179_v18 = vld [vmem:[%s9016_s1 + $0x50] sm:$0xff]  ;;  %v5180_v19 = vld [vmem:[%s9016_s1 + $0x58] sm:$0xff] }
  0x25   : > { %v6618_v16 = vpack.c.bf16 %v5178_v13, %v5177_v12  ;;  %v6621_v22 = vpack.c.bf16 %v5180_v19, %v5179_v18  ;;  %v5192_v30 = vld [vmem:[%s9016_s1 + $0x60] sm:$0xff]  ;;  %v5193_v31 = vld [vmem:[%s9016_s1 + $0x68] sm:$0xff]  ;;  %v5194_v33 = vld [vmem:[%s9016_s1 + $0x70] sm:$0xff] }
  0x26   : > { %6613 = vmatpush3.bf16.msra.mxu1 %v6612_v3  ;;  %v6630_v32 = vpack.c.bf16 %v5193_v31, %v5192_v30  ;;  %v5195_v34 = vld [vmem:[%s9016_s1 + $0x78] sm:$0xff]  ;;  %v5196_v36 = vld [vmem:[%s9016_s1 + $0x80] sm:$0xff]  ;;  %v5197_v37 = vld [vmem:[%s9016_s1 + $0x88] sm:$0xff] }
  0x27   : > { %6592 = vmatpush3.bf16.msra.mxu0 %v6591_v38  ;;  %6614 = vmatprep.subr.bf16.mxu1 %v7010_v7  ;;  %v6633_v35 = vpack.c.bf16 %v5195_v34, %v5194_v33  ;;  %v6636_v38 = vpack.c.bf16 %v5197_v37, %v5196_v36  ;;  %v5215_v30 = vld [vmem:[%s9019_s24 + $0x60] sm:$0xff]  ;;  %v5217_v31 = vld [vmem:[%s9019_s24 + $0x70] sm:$0xff]  ;;  %v1436_v34 = vld [vmem:[%s9019_s24 + $0x38] sm:$0xff] }
  0x28   : > { %6594 = vmatprep.subr.bf16.mxu0 %v6593_v39  ;;  %s9018_s2 = smov %s9017_s3  ;;  %v6658_v33 = vpack.c.bf16 %v5217_v31, %v5215_v30  ;;  %v5222_v36 = vld [vmem:[%s9019_s24 + $0x98] sm:$0xff] }
  0x29   : > { %v7382_v54 = vld [vmem:[%s9018_s2 + $0x30] sm:$0xff]  ;;  %v7456_v19 = vld [vmem:[%s9018_s2 + $0x18] sm:$0xff] }
  0x2a   : > { %v7447_v18 = vld [vmem:[%s9018_s2 + $0x10] sm:$0xff]  ;;  %v5246_v30 = vld [vmem:[%s9019_s24 + $0xf8] sm:$0xff] }
  0x2b   : > { %6596 = vmatpush3.bf16.msra.mxu0 %v6595_v45 }
  0x2c   : > { %6598 = vmatprep.subr.bf16.mxu0 %v6597_v46 }
  0x2f   : > { %6600 = vmatpush3.bf16.msra.mxu0 %v6599_v51  ;;  %v7369_v51 = vld [vmem:[%s9017_s3 + $0x28] sm:$0xff] }
  0x30   : > { %6602 = vmatprep.subr.bf16.mxu0 %v6601_v52 }
  0x33   : > { %6604 = vmatpush3.bf16.msra.mxu0 %v6603_v55 }
  0x34   : > { %6623 = vmatprep.subr.bf16.mxu0 %v7010_v7 }
  0x36   : > { %852 = vmatmul.mubr.f32.vlgmr.msra.gmra.mrb[0].mxu0 %v745_v56 }
  0x37   : > { %856 = vmatprep.mubr.f32.mxu0 %v748_v57  ;;  %v7393_v57 = vld [vmem:[%s9018_s2 + $0x38] sm:$0xff] }
  0x3a   : > { %857 = vmatmul.mubr.f32.gmra.mrb[2].mxu0 %v747_v58 }
  0x3b   : > { %861 = vmatprep.mubr.f32.mxu0 %v750_v59 }
  0x3e   : > { %862 = vmatmul.mubr.f32.gmra.mrb[4].mxu0 %v749_v60  ;;  %v7404_v60 = vld [vmem:[%s9018_s2 + $0x40] sm:$0xff] }
  0x3f   : > { %866 = vmatprep.mubr.f32.mxu0 %v752_v61 }
  0x42   : > { %867 = vmatmul.mubr.f32.gmra.mrb[6].mxu0 %v751_v62 }
  0x43   : > { %871 = vmatprep.mubr.f32.mxu0 %v754_v63  ;;  %v7415_v63 = vld [vmem:[%s9018_s2 + $0x48] sm:$0x1] }
  0x46   : > { %872 = vmatmul.mubr.f32.gmra.mrb[8].mxu0 %v753_v0 }
  0x47   : > { %5932 = vmatprep.mubr.msk.f32.mxu0 %vm7011_vm0, %v7012_v4 }
 0x109   : > { %v5568_v8 = vpop.f32.mrb[0].mxu0 }
 0x10a   : > { %v5569_v9 = vpop.f32.mrb[1].mxu0 }
 0x10b   : > { %v5570_v11 = vadd.f32 %v5569_v9, %v5568_v8 }
 0x10d   : > { %v5571_v14 = vpop.f32.mrb[2].mxu0  ;;  %5881 = vmatmul.mubr.msk.f32.vlgmr.msra.gmra.mrb[0].mxu1 %vm883_vm1, %v5570_v11 }
 0x10e   : > { %v5572_v15 = vpop.f32.mrb[3].mxu0  ;;  %5883 = vmatprep.mubr.msk.f32.mxu1 %vm7011_vm0, %v7012_v4  ;;  %6616 = vmatpush3.bf16.msra.mxu1 %v6615_v10 }
 0x10f   : > { %v5573_v17 = vadd.f32 %v5572_v15, %v5571_v14  ;;  %6617 = vmatprep.subr.bf16.mxu1 %v7010_v7 }
 0x111   : > { %v5574_v20 = vpop.f32.mrb[4].mxu0  ;;  %5884 = vmatmul.mubr.msk.f32.gmra.mrb[2].mxu1 %vm883_vm1, %v5573_v17 }
 0x112   : > { %v5575_v21 = vpop.f32.mrb[5].mxu0  ;;  %5886 = vmatprep.mubr.msk.f32.mxu1 %vm7011_vm0, %v7012_v4  ;;  %6619 = vmatpush3.bf16.msra.mxu1 %v6618_v16  ;;  %v7428_v16 = vld [vmem:[%s9018_s2] sm:$0xff] }
 0x113   : > { %v5576_v23 = vadd.f32 %v5575_v21, %v5574_v20  ;;  %6620 = vmatprep.subr.bf16.mxu1 %v7010_v7  ;;  %v7465_v20 = vld [vmem:[%s9018_s2 + $0x20] sm:$0x1]  ;;  %v1430_v21 = vld [vmem:[%s9019_s24 + $0x8] sm:$0xff] }
 0x115   : > { %v5577_v24 = vpop.f32.mrb[6].mxu0  ;;  %5887 = vmatmul.mubr.msk.f32.gmra.mrb[4].mxu1 %vm883_vm1, %v5576_v23 }
 0x116   : > { %v5578_v25 = vpop.f32.mrb[7].mxu0  ;;  %5889 = vmatprep.mubr.msk.f32.mxu1 %vm7011_vm0, %v7012_v4  ;;  %6622 = vmatpush3.bf16.msra.mxu1 %v6621_v22  ;;  %v1432_v22 = vld [vmem:[%s9019_s24 + $0x18] sm:$0xff] }
 0x117   : > { %v5579_v26 = vadd.f32 %v5578_v25, %v5577_v24  ;;  %6629 = vmatprep.subr.bf16.mxu1 %v7010_v7  ;;  %v6644_v24 = vpack.c.bf16 %v1432_v22, %v1430_v21  ;;  %v1431_v25 = vld [vmem:[%s9019_s24 + $0x10] sm:$0xff] }
 0x119   : > { %v5580_v27 = vpop.f32.mrb[8].mxu0  ;;  %5890 = vmatmul.mubr.msk.f32.gmra.mrb[6].mxu1 %vm883_vm1, %v5579_v26 }
 0x11a   : > { %v5581_v28 = vpop.f32.mrb[9].mxu0  ;;  %5892 = vmatprep.mubr.msk.f32.mxu1 %vm7011_vm0, %v7012_v4 }
 0x11b   : > { %v5582_v29 = vadd.f32 %v5581_v28, %v5580_v27  ;;  %v5218_v27 = vld [vmem:[%s9019_s24 + $0x78] sm:$0xff] }
 0x11d   : > { %5893 = vmatmul.mubr.msk.f32.gmra.mrb[8].mxu1 %vm883_vm1, %v5582_v29 }
 0x11e   : > { %5907 = vmatprep.mubr.msk.f32.mxu1 %vm7011_vm0, %v7012_v4 }
 0x121   : > { %5908 = vmatmul.mubr.msk.f32.vlgmr.msra.gmra.mrb[10].mxu1 %vm883_vm1, %v5570_v11 }
 0x122   : > { %5910 = vmatprep.mubr.msk.f32.mxu1 %vm7011_vm0, %v7012_v4  ;;  %6631 = vmatpush3.bf16.msra.mxu1 %v6630_v32  ;;  %v1434_v32 = vld [vmem:[%s9019_s24 + $0x28] sm:$0xff] }
 0x123   : > { %6632 = vmatprep.subr.bf16.mxu1 %v7010_v7  ;;  %v6648_v37 = vpack.c.bf16 %v1436_v34, %v1434_v32 }
 0x125   : > { %5911 = vmatmul.mubr.msk.f32.gmra.mrb[12].mxu1 %vm883_vm1, %v5573_v17 }
 0x126   : > { %5913 = vmatprep.mubr.msk.f32.mxu1 %vm7011_vm0, %v7012_v4  ;;  %6634 = vmatpush3.bf16.msra.mxu1 %v6633_v35  ;;  %v5220_v35 = vld [vmem:[%s9019_s24 + $0x88] sm:$0xff] }
 0x127   : > { %6635 = vmatprep.subr.bf16.mxu1 %v7010_v7 }
 0x129   : > { %5914 = vmatmul.mubr.msk.f32.gmra.mrb[14].mxu1 %vm883_vm1, %v5576_v23 }
 0x12a   : > { %5916 = vmatprep.mubr.msk.f32.mxu1 %vm7011_vm0, %v7012_v4  ;;  %6637 = vmatpush3.bf16.msra.mxu1 %v6636_v38  ;;  %v6660_v38 = vpack.c.bf16 %v5222_v36, %v5220_v35  ;;  %v5243_v35 = vld [vmem:[%s9019_s24 + $0xe0] sm:$0xff]  ;;  %v5245_v36 = vld [vmem:[%s9019_s24 + $0xf0] sm:$0xff] }
 0x12b   : > { %6645 = vmatprep.subr.bf16.mxu1 %v6644_v24 }
 0x12d   : > { %5917 = vmatmul.mubr.msk.f32.gmra.mrb[16].mxu1 %vm883_vm1, %v5579_v26 }
 0x12e   : > { %5919 = vmatprep.mubr.msk.f32.mxu1 %vm7011_vm0, %v7012_v4 }
 0x131   : > { %5920 = vmatmul.mubr.msk.f32.gmra.mrb[18].mxu1 %vm883_vm1, %v5582_v29 }
 0x132   : > { %5959 = vmatprep.mubr.msk.f32.mxu1 %vm7011_vm0, %v7012_v4 }
 0x135   : > { %5960 = vmatmul.mubr.msk.f32.vlgmr.msra.gmra.mrb[20].mxu1 %vm883_vm1, %v5570_v11 }
 0x136   : > { %5962 = vmatprep.mubr.msk.f32.mxu1 %vm7011_vm0, %v7012_v4 }
 0x139   : > { %5963 = vmatmul.mubr.msk.f32.gmra.mrb[22].mxu1 %vm883_vm1, %v5573_v17  ;;  %v7438_v17 = vld [vmem:[%s9018_s2 + $0x8] sm:$0xff] }
 0x13a   : > { %5965 = vmatprep.mubr.msk.f32.mxu1 %vm7011_vm0, %v7012_v4 }
 0x13d   : > { %5966 = vmatmul.mubr.msk.f32.gmra.mrb[24].mxu1 %vm883_vm1, %v5576_v23  ;;  %v1429_v23 = vld [vmem:[%s9019_s24] sm:$0xff] }
 0x13e   : > { %5968 = vmatprep.mubr.msk.f32.mxu1 %vm7011_vm0, %v7012_v4  ;;  %v6646_v28 = vpack.c.bf16 %v1431_v25, %v1429_v23 }
 0x140   : > { %6647 = vmatpush1.bf16.msra.mxu1 %v6646_v28 }
 0x141   : > { %5969 = vmatmul.mubr.msk.f32.gmra.mrb[26].mxu1 %vm883_vm1, %v5579_v26  ;;  %v5216_v26 = vld [vmem:[%s9019_s24 + $0x68] sm:$0xff]  ;;  %6649 = vmatprep.subr.bf16.mxu1 %v6648_v37 }
 0x142   : > { %5971 = vmatprep.mubr.msk.f32.mxu1 %vm7011_vm0, %v7012_v4 }
 0x145   : > { %5972 = vmatmul.mubr.msk.f32.gmra.mrb[28].mxu1 %vm883_vm1, %v5582_v29  ;;  %v6656_v29 = vpack.c.bf16 %v5218_v27, %v5216_v26 }
 0x146   : > { %1520 = vmatprep.mubr.f32.mxu1 %v7012_v4 }
 0x1e0   : > { %v965_v39 = vpop.f32.mrb[0].mxu1 }
 0x1e1   : > { %v5882_v40 = vpop.f32.mrb[1].mxu1 }
 0x1e2   : > { %v1435_v40 = vld [vmem:[%s9019_s24 + $0x30] sm:$0xff] }
 0x1e4   : > { %v970_v41 = vpop.f32.mrb[2].mxu1 }
 0x1e5   : > { %v6624_v42 = vpack.c.bf16 %v970_v41, %v965_v39  ;;  %v5885_v43 = vpop.f32.mrb[3].mxu1  ;;  %v1433_v39 = vld [vmem:[%s9019_s24 + $0x20] sm:$0xff] }
 0x1e6   : > { %v5219_v41 = vld [vmem:[%s9019_s24 + $0x80] sm:$0xff]  ;;  %v5221_v43 = vld [vmem:[%s9019_s24 + $0x90] sm:$0xff] }
 0x1e7   : > { %6625 = vmatpush3.bf16.msra.mxu0 %v6624_v42  ;;  %v6650_v42 = vpack.c.bf16 %v1435_v40, %v1433_v39  ;;  %v5248_v39 = vld [vmem:[%s9019_s24 + $0x108] sm:$0xff]  ;;  %v5250_v40 = vld [vmem:[%s9019_s24 + $0x118] sm:$0xff] }
 0x1e8   : > { %v975_v44 = vpop.f32.mrb[4].mxu1  ;;  %6626 = vmatprep.subr.bf16.mxu0 %v7010_v7 }
 0x1e9   : > { %v5888_v45 = vpop.f32.mrb[5].mxu1  ;;  %6651 = vmatpush1.bf16.msra.mxu1 %v6650_v42  ;;  %v6682_v42 = vpack.c.bf16 %v5245_v36, %v5243_v35  ;;  %v2062_v35 = vld [vmem:[%s8983_s7 + $0x98] sm:$0xff] }
 0x1ea   : > { %v1438_v45 = vld [vmem:[%s9019_s24 + $0x48] sm:$0xff] }
 0x1ec   : > { %v980_v46 = vpop.f32.mrb[6].mxu1 }
 0x1ed   : > { %v6627_v47 = vpack.c.bf16 %v980_v46, %v975_v44  ;;  %v5891_v48 = vpop.f32.mrb[7].mxu1  ;;  %v6662_v44 = vpack.c.bf16 %v5221_v43, %v5219_v41  ;;  %v1440_v46 = vld [vmem:[%s9019_s24 + $0x58] sm:$0xff] }
 0x1ee   : > { %v6652_v48 = vpack.c.bf16 %v1440_v46, %v1438_v45  ;;  %v5247_v45 = vld [vmem:[%s9019_s24 + $0x100] sm:$0xff]  ;;  %v5249_v46 = vld [vmem:[%s9019_s24 + $0x110] sm:$0xff] }
 0x1ef   : > { %6628 = vmatpush3.bf16.msra.mxu0 %v6627_v47  ;;  %v5224_v47 = vld [vmem:[%s9019_s24 + $0xa8] sm:$0xff] }
 0x1f0   : > { %v985_v49 = vpop.f32.mrb[8].mxu1  ;;  %5930 = vmatprep.subr.mxu0 %v7012_v4  ;;  %6653 = vmatprep.subr.bf16.mxu1 %v6652_v48 }
 0x1f1   : > { %v5894_v50 = vpop.f32.mrb[9].mxu1 }
 0x1f2   : > { %v1437_v50 = vld [vmem:[%s9019_s24 + $0x40] sm:$0xff] }
 0x1f3   : > { %5931 = vmatpush3.msk.msra.mxu0 %vm1108_vm2, %v985_v49  ;;  %v5226_v49 = vld [vmem:[%s9019_s24 + $0xb8] sm:$0xff] }
 0x1f4   : > { %v7372_v52 = vpop.f32.mrb[10].mxu1  ;;  %5933 = vmatmul.mubr.msk.f32.vlgmr.msra.gmra.mrb[10].mxu0 %vm1092_vm3, %v7369_v51  ;;  %6638 = vmatprep.subr.bf16.mxu0 %v7010_v7 }
 0x1f5   : > { %v5909_v53 = vpop.f32.mrb[11].mxu1  ;;  %5935 = vmatprep.mubr.msk.f32.mxu0 %vm7011_vm0, %v7012_v4 }
 0x1f6   : > { %v1439_v53 = vld [vmem:[%s9019_s24 + $0x50] sm:$0xff] }
 0x1f8   : > { %v7384_v55 = vpop.f32.mrb[12].mxu1  ;;  %5936 = vmatmul.mubr.msk.f32.gmra.mrb[12].mxu0 %vm1092_vm3, %v7382_v54 }
 0x1f9   : > { %v5912_v56 = vpop.f32.mrb[13].mxu1  ;;  %5938 = vmatprep.mubr.msk.f32.mxu0 %vm7011_vm0, %v7012_v4 }
 0x1fa   : > { %v6664_v56 = vpack.c.bf16 %v5226_v49, %v5224_v47 }
 0x1fc   : > { %v7395_v58 = vpop.f32.mrb[14].mxu1  ;;  %5939 = vmatmul.mubr.msk.f32.gmra.mrb[14].mxu0 %vm1092_vm3, %v7393_v57 }
 0x1fd   : > { %v5915_v59 = vpop.f32.mrb[15].mxu1  ;;  %5941 = vmatprep.mubr.msk.f32.mxu0 %vm7011_vm0, %v7012_v4 }
 0x1fe   : > { %v6654_v59 = vpack.c.bf16 %v1439_v53, %v1437_v50  ;;  %v6686_v50 = vpack.c.bf16 %v5249_v46, %v5247_v45 }
 0x200   : > { %v7406_v61 = vpop.f32.mrb[16].mxu1  ;;  %5942 = vmatmul.mubr.msk.f32.gmra.mrb[16].mxu0 %vm1092_vm3, %v7404_v60  ;;  %6655 = vmatpush1.bf16.msra.mxu1 %v6654_v59 }
 0x201   : > { %v5918_v62 = vpop.f32.mrb[17].mxu1  ;;  %5944 = vmatprep.mubr.msk.f32.mxu0 %vm7011_vm0, %v7012_v4 }
 0x202   : > { %v5223_v62 = vld [vmem:[%s9019_s24 + $0xa0] sm:$0xff] }
 0x204   : > { %v7417_v0 = vpop.f32.mrb[18].mxu1  ;;  %5945 = vmatmul.mubr.msk.f32.gmra.mrb[18].mxu0 %vm1092_vm3, %v7415_v63 }
 0x205   : > { %v5921_v1 = vpop.f32.mrb[19].mxu1  ;;  %5984 = vmatprep.mubr.msk.f32.mxu0 %vm7011_vm0, %v7012_v4 }
 0x206   : > { %v5225_v1 = vld [vmem:[%s9019_s24 + $0xb0] sm:$0xff] }
 0x208   : > { %v1275_v2 = vpop.f32.mrb[20].mxu1 }
 0x209   : > { %v5961_v3 = vpop.f32.mrb[21].mxu1 }
 0x20a   : > { %v5240_v3 = vld [vmem:[%s9019_s24 + $0xc8] sm:$0xff] }
 0x20c   : > { %v1280_v5 = vpop.f32.mrb[22].mxu1 }
 0x20d   : > { %v6639_v6 = vpack.c.bf16 %v1280_v5, %v1275_v2  ;;  %v5964_v8 = vpop.f32.mrb[23].mxu1  ;;  %v6666_v2 = vpack.c.bf16 %v5225_v1, %v5223_v62  ;;  %v5242_v5 = vld [vmem:[%s9019_s24 + $0xd8] sm:$0xff] }
 0x20f   : > { %6640 = vmatpush3.bf16.msra.mxu0 %v6639_v6  ;;  %v6676_v6 = vpack.c.bf16 %v5242_v5, %v5240_v3 }
 0x210   : > { %v1285_v9 = vpop.f32.mrb[24].mxu1  ;;  %6641 = vmatprep.subr.bf16.mxu0 %v7010_v7 }
 0x211   : > { %v5967_v10 = vpop.f32.mrb[25].mxu1  ;;  %6677 = vmatprep.subr.bf16.mxu1 %v6676_v6  ;;  %v2043_v6 = vld [vmem:[%s8983_s7] sm:$0xff] }
 0x214   : > { %v1290_v11 = vpop.f32.mrb[26].mxu1 }
 0x215   : > { %v6642_v12 = vpack.c.bf16 %v1290_v11, %v1285_v9  ;;  %v5970_v13 = vpop.f32.mrb[27].mxu1 }
 0x217   : > { %6643 = vmatpush3.bf16.msra.mxu0 %v6642_v12 }
 0x218   : > { %v1295_v14 = vpop.f32.mrb[28].mxu1  ;;  %5982 = vmatprep.subr.mxu0 %v7012_v4 }
 0x219   : > { %v5973_v15 = vpop.f32.mrb[29].mxu1 }
 0x21b   : > { %5983 = vmatpush3.msk.msra.mxu0 %vm1108_vm2, %v1295_v14 }
 0x21c   : > { %5985 = vmatmul.mubr.msk.f32.vlgmr.msra.gmra.mrb[20].mxu0 %vm1092_vm3, %v7428_v16  ;;  %6657 = vmatprep.subr.bf16.mxu0 %v6656_v29 }
 0x21d   : > { %5987 = vmatprep.mubr.msk.f32.mxu0 %vm7011_vm0, %v7012_v4  ;;  %6659 = vmatpush1.bf16.msra.mxu0 %v6658_v33 }
 0x21e   : > { %6661 = vmatprep.subr.bf16.mxu0 %v6660_v38 }
 0x220   : > { %5988 = vmatmul.mubr.msk.f32.gmra.mrb[22].mxu0 %vm1092_vm3, %v7438_v17 }
 0x221   : > { %5990 = vmatprep.mubr.msk.f32.mxu0 %vm7011_vm0, %v7012_v4  ;;  %6663 = vmatpush1.bf16.msra.mxu0 %v6662_v44  ;;  %v6684_v44 = vpack.c.bf16 %v5250_v40, %v5248_v39 }
 0x222   : > { %6665 = vmatprep.subr.bf16.mxu0 %v6664_v56 }
 0x224   : > { %5991 = vmatmul.mubr.msk.f32.gmra.mrb[24].mxu0 %vm1092_vm3, %v7447_v18 }
 0x225   : > { %5993 = vmatprep.mubr.msk.f32.mxu0 %vm7011_vm0, %v7012_v4  ;;  %6667 = vmatpush1.bf16.msra.mxu0 %v6666_v2 }
 0x228   : > { %5994 = vmatmul.mubr.msk.f32.gmra.mrb[26].mxu0 %vm1092_vm3, %v7456_v19 }
 0x229   : > { %5996 = vmatprep.mubr.msk.f32.mxu0 %vm7011_vm0, %v7012_v4 }
 0x22c   : > { %5997 = vmatmul.mubr.msk.f32.gmra.mrb[28].mxu0 %vm1092_vm3, %v7465_v20 }
 0x22d   : > { %1628 = vmatprep.mubr.f32.mxu0 %v7012_v4 }
 0x2c7   : > { %v1178_v8 = vpop.f32.mrb[10].mxu0 }
 0x2c8   : > { %v1179_v9 = vadd.f32 %v1178_v8, %v7372_v52  ;;  %v5934_v10 = vpop.f32.mrb[11].mxu0  ;;  %v5209_v52 = vld [vmem:[%s9020_s0] ss:$0 sm:$0xff]  ;;  %v2044_v8 = vld [vmem:[%s8983_s7 + $0x8] sm:$0xff]  ;;  %s8644_s0 = scalar_lea.vmem %s8996_s20, %s8187_s6 }
 0x2c9   : > { %v2045_v10 = vld [vmem:[%s8983_s7 + $0x10] sm:$0xff] }
 0x2cb   : > { %v1183_v11 = vpop.f32.mrb[12].mxu0 }
 0x2cc   : > { %v1184_v12 = vadd.f32 %v1183_v11, %v7384_v55  ;;  %v5937_v13 = vpop.f32.mrb[13].mxu0  ;;  %v5239_v55 = vld [vmem:[%s9019_s24 + $0xc0] sm:$0xff]  ;;  %v2046_v11 = vld [vmem:[%s8983_s7 + $0x18] sm:$0xff] }
 0x2cd   : > { %v2047_v13 = vld [vmem:[%s8983_s7 + $0x20] sm:$0xff] }
 0x2cf   : > { %v1188_v14 = vpop.f32.mrb[14].mxu0 }
 0x2d0   : > { %v1189_v15 = vadd.f32 %v1188_v14, %v7395_v58  ;;  %v5940_v21 = vpop.f32.mrb[15].mxu0  ;;  %v5241_v58 = vld [vmem:[%s9019_s24 + $0xd0] sm:$0xff]  ;;  %v2048_v14 = vld [vmem:[%s8983_s7 + $0x28] sm:$0xff] }
 0x2d1   : > { %v6678_v32 = vpack.c.bf16 %v5241_v58, %v5239_v55  ;;  %v2049_v21 = vld [vmem:[%s8983_s7 + $0x30] sm:$0xff]  ;;  %v2055_v55 = vld [vmem:[%s8983_s7 + $0x60] sm:$0xff]  ;;  %v2056_v58 = vld [vmem:[%s8983_s7 + $0x68] sm:$0xff] }
 0x2d3   : > { %v1193_v22 = vpop.f32.mrb[16].mxu0 }
 0x2d4   : > { %v1194_v23 = vadd.f32 %v1193_v22, %v7406_v61  ;;  %v5943_v24 = vpop.f32.mrb[17].mxu0  ;;  %v2050_v22 = vld [vmem:[%s8983_s7 + $0x38] sm:$0xff] }
 0x2d5   : > { %v2051_v24 = vld [vmem:[%s8983_s7 + $0x40] sm:$0xff] }
 0x2d7   : > { %v1198_v25 = vpop.f32.mrb[18].mxu0 }
 0x2d8   : > { %v1199_v26 = vadd.f32 %v1198_v25, %v7417_v0  ;;  %v5946_v27 = vpop.f32.mrb[19].mxu0  ;;  %v5244_v0 = vld [vmem:[%s9019_s24 + $0xe8] sm:$0xff] }
 0x2d9   : > { %v6680_v34 = vpack.c.bf16 %v5246_v30, %v5244_v0  ;;  %v2052_v25 = vld [vmem:[%s8983_s7 + $0x48] sm:$0xff]  ;;  %v2053_v27 = vld [vmem:[%s8983_s7 + $0x50] sm:$0xff]  ;;  %v2058_v0 = vld [vmem:[%s8983_s7 + $0x78] sm:$0xff] }
 0x2ef   : > { %v1388_v28 = vpop.f32.mrb[20].mxu0 }
 0x2f0   : > { %v1412_v29 = vadd.f32 %v1388_v28, %v1179_v9  ;;  %v5986_v61 = vpop.f32.mrb[21].mxu0  ;;  %v6697_v9 = vpack.c.bf16 %v2044_v8, %v2043_v6  ;;  %v2054_v28 = vld [vmem:[%s8983_s7 + $0x58] sm:$0xff] }
 0x2f1   : > { %v2057_v61 = vld [vmem:[%s8983_s7 + $0x70] sm:$0xff] }
 0x2f2   : > { %v1424_v31 = vadd.f32 %v5209_v52, %v1412_v29  ;;  %v6715_v29 = vpack.c.bf16 %v2056_v58, %v2055_v55  ;;  %v6718_v30 = vpack.c.bf16 %v2058_v0, %v2057_v61  ;;  %v5284_v55 = vld [vmem:[%s8983_s7 + $0x118] sm:$0xff] }
 0x2f3   : > { %v1393_v33 = vpop.f32.mrb[22].mxu0  ;;  %v5288_v0 = vld [vmem:[%s8983_s7 + $0x138] sm:$0xff] }
 0x2f4   : > { %v1413_v37 = vadd.f32 %v1393_v33, %v1184_v12  ;;  %v5989_v38 = vpop.f32.mrb[23].mxu0  ;;  %5210 = vmatmul.mubr.msk.f32.vlgmr.msra.gmra.mrb[30].mxu1 %vm883_vm1, %v1424_v31  ;;  %5227 = vmatmul.mubr.msk.f32.vlgmr.msra.gmra.mrb[30].mxu0 %vm883_vm1, %v1424_v31  ;;  %v6700_v12 = vpack.c.bf16 %v2046_v11, %v2045_v10 }
 0x2f5   : > { %1526 = vmatprep.mubr.f32.mxu1 %v7012_v4  ;;  %1634 = vmatprep.mubr.f32.mxu0 %v7012_v4 }
 0x2f6   : > { %v1425_v41 = vadd.f32 %v5209_v52, %v1413_v37  ;;  %6679 = vmatpush1.bf16.msra.mxu1 %v6678_v32  ;;  %v2060_v32 = vld [vmem:[%s8983_s7 + $0x88] sm:$0xff] }
 0x2f7   : > { %v1398_v43 = vpop.f32.mrb[24].mxu0  ;;  %6681 = vmatprep.subr.bf16.mxu1 %v6680_v34  ;;  %v2061_v34 = vld [vmem:[%s8983_s7 + $0x90] sm:$0xff] }
 0x2f8   : > { %v1414_v47 = vadd.f32 %v1398_v43, %v1189_v15  ;;  %v5992_v48 = vpop.f32.mrb[25].mxu0  ;;  %5211 = vmatmul.mubr.msk.f32.gmra.mrb[32].mxu1 %vm883_vm1, %v1425_v41  ;;  %5228 = vmatmul.mubr.msk.f32.gmra.mrb[32].mxu0 %vm883_vm1, %v1425_v41  ;;  %v6703_v15 = vpack.c.bf16 %v2048_v14, %v2047_v13  ;;  %v6724_v36 = vpack.c.bf16 %v2062_v35, %v2061_v34  ;;  %v5274_v13 = vld [vmem:[%s8983_s7 + $0xc8] sm:$0xff]  ;;  %v5291_v34 = vld [vmem:[%s8983_s7 + $0x150] sm:$0xff]  ;;  %v5292_v35 = vld [vmem:[%s8983_s7 + $0x158] sm:$0xff] }
 0x2f9   : > { %1532 = vmatprep.mubr.f32.mxu1 %v7012_v4  ;;  %1640 = vmatprep.mubr.f32.mxu0 %v7012_v4 }
 0x2fa   : > { %v1426_v49 = vadd.f32 %v5209_v52, %v1414_v47  ;;  %6683 = vmatpush1.bf16.msra.mxu1 %v6682_v42 }
 0x2fb   : > { %v1403_v53 = vpop.f32.mrb[26].mxu0  ;;  %6685 = vmatprep.subr.bf16.mxu1 %v6684_v44 }
 0x2fc   : > { %v1415_v56 = vadd.f32 %v1403_v53, %v1194_v23  ;;  %v5995_v59 = vpop.f32.mrb[27].mxu0  ;;  %5212 = vmatmul.mubr.msk.f32.gmra.mrb[34].mxu1 %vm883_vm1, %v1426_v49  ;;  %5229 = vmatmul.mubr.msk.f32.gmra.mrb[34].mxu0 %vm883_vm1, %v1426_v49  ;;  %v6706_v23 = vpack.c.bf16 %v2050_v22, %v2049_v21  ;;  %v5275_v21 = vld [vmem:[%s8983_s7 + $0xd0] sm:$0xff]  ;;  %v5276_v22 = vld [vmem:[%s8983_s7 + $0xd8] sm:$0xff] }
 0x2fd   : > { %1538 = vmatprep.mubr.f32.mxu1 %v7012_v4  ;;  %1646 = vmatprep.mubr.f32.mxu0 %v7012_v4 }
 0x2fe   : > { %v1427_v62 = vadd.f32 %v5209_v52, %v1415_v56  ;;  %6687 = vmatpush1.bf16.msra.mxu1 %v6686_v50 }
 0x2ff   : > { %v1408_v1 = vpop.f32.mrb[28].mxu0  ;;  %6696 = vmatprep.subr.bf16.mxu1 %v7010_v7 }
 0x300   : > { %v1416_v2 = vadd.f32 %v1408_v1, %v1199_v26  ;;  %v5998_v3 = vpop.f32.mrb[29].mxu0  ;;  %5213 = vmatmul.mubr.msk.f32.gmra.mrb[36].mxu1 %vm883_vm1, %v1427_v62  ;;  %5230 = vmatmul.mubr.msk.f32.gmra.mrb[36].mxu0 %vm883_vm1, %v1427_v62  ;;  %v6709_v26 = vpack.c.bf16 %v2052_v25, %v2051_v24  ;;  %v5278_v24 = vld [vmem:[%s8983_s7 + $0xe8] sm:$0xff]  ;;  %v5279_v25 = vld [vmem:[%s8983_s7 + $0xf0] sm:$0xff] }
 0x301   : > { %1544 = vmatprep.mubr.f32.mxu1 %v7012_v4  ;;  %1652 = vmatprep.mubr.f32.mxu0 %v7012_v4 }
 0x302   : > { %v1428_v5 = vadd.f32 %v5209_v52, %v1416_v2  ;;  %v6712_v52 = vpack.c.bf16 %v2054_v28, %v2053_v27  ;;  %v5281_v27 = vld [vmem:[%s8983_s7 + $0x100] sm:$0xff]  ;;  %v5282_v28 = vld [vmem:[%s8983_s7 + $0x108] sm:$0xff] }
 0x304   : > { %5214 = vmatmul.mubr.msk.f32.gmra.mrb[38].mxu1 %vm883_vm1, %v1428_v5  ;;  %5231 = vmatmul.mubr.msk.f32.gmra.mrb[38].mxu0 %vm883_vm1, %v1428_v5 }
 0x305   : > { %1837 = vmatprep.mubr.f32.mxu1 %v7012_v4  ;;  %1729 = vmatprep.mubr.f32.mxu0 %v7012_v4 }
 0x308   : > { %5251 = vmatmul.mubr.msk.f32.vlgmr.msra.gmra.mrb[40].mxu1 %vm883_vm1, %v1424_v31  ;;  %v2059_v31 = vld [vmem:[%s8983_s7 + $0x80] sm:$0xff] }
 0x309   : > { %1843 = vmatprep.mubr.f32.mxu1 %v7012_v4  ;;  %6698 = vmatpush1.bf16.msra.mxu1 %v6697_v9  ;;  %v6721_v33 = vpack.c.bf16 %v2060_v32, %v2059_v31  ;;  %v5289_v31 = vld [vmem:[%s8983_s7 + $0x140] sm:$0xff]  ;;  %v5290_v32 = vld [vmem:[%s8983_s7 + $0x148] sm:$0xff] }
 0x30a   : > { %6699 = vmatprep.subr.bf16.mxu1 %v7010_v7 }
 0x30c   : > { %5252 = vmatmul.mubr.msk.f32.gmra.mrb[42].mxu1 %vm883_vm1, %v1425_v41 }
 0x30d   : > { %1849 = vmatprep.mubr.f32.mxu1 %v7012_v4  ;;  %6701 = vmatpush1.bf16.msra.mxu1 %v6700_v12  ;;  %v5273_v12 = vld [vmem:[%s8983_s7 + $0xc0] sm:$0xff] }
 0x30e   : > { %6702 = vmatprep.subr.bf16.mxu1 %v7010_v7 }
 0x310   : > { %5253 = vmatmul.mubr.msk.f32.gmra.mrb[44].mxu1 %vm883_vm1, %v1426_v49 }
 0x311   : > { %1855 = vmatprep.mubr.f32.mxu1 %v7012_v4  ;;  %6704 = vmatpush1.bf16.msra.mxu1 %v6703_v15  ;;  %v6733_v15 = vpack.c.bf16 %v5274_v13, %v5273_v12 }
 0x312   : > { %6705 = vmatprep.subr.bf16.mxu1 %v7010_v7 }
 0x314   : > { %5254 = vmatmul.mubr.msk.f32.gmra.mrb[46].mxu1 %vm883_vm1, %v1427_v62 }
 0x315   : > { %1861 = vmatprep.mubr.f32.mxu1 %v7012_v4  ;;  %6707 = vmatpush1.bf16.msra.mxu1 %v6706_v23  ;;  %v5277_v23 = vld [vmem:[%s8983_s7 + $0xe0] sm:$0xff] }
 0x316   : > { %6708 = vmatprep.subr.bf16.mxu1 %v7010_v7 }
 0x318   : > { %5255 = vmatmul.mubr.msk.f32.gmra.mrb[48].mxu1 %vm883_vm1, %v1428_v5 }
 0x319   : > { %6710 = vmatpush1.bf16.msra.mxu1 %v6709_v26  ;;  %v5280_v26 = vld [vmem:[%s8983_s7 + $0xf8] sm:$0xff] }
 0x31a   : > { %6711 = vmatprep.subr.bf16.mxu1 %v7010_v7 }
 0x31d   : > { %6713 = vmatpush1.bf16.msra.mxu1 %v6712_v52  ;;  %v5283_v52 = vld [vmem:[%s8983_s7 + $0x110] sm:$0xff] }
 0x31e   : > { %6714 = vmatprep.subr.bf16.mxu1 %v7010_v7  ;;  %v6748_v58 = vpack.c.bf16 %v5284_v55, %v5283_v52 }
 0x321   : > { %6716 = vmatpush1.bf16.msra.mxu1 %v6715_v29  ;;  %v5286_v29 = vld [vmem:[%s8983_s7 + $0x128] sm:$0xff] }
 0x322   : > { %6717 = vmatprep.subr.bf16.mxu1 %v7010_v7 }
 0x325   : > { %6719 = vmatpush1.bf16.msra.mxu1 %v6718_v30 }
 0x326   : > { %6720 = vmatprep.subr.bf16.mxu1 %v7010_v7 }
 0x329   : > { %6722 = vmatpush1.bf16.msra.mxu1 %v6721_v33  ;;  %v6757_v33 = vpack.c.bf16 %v5290_v32, %v5289_v31 }
 0x32a   : > { %6723 = vmatprep.subr.bf16.mxu1 %v7010_v7 }
 0x32d   : > { %6725 = vmatpush1.bf16.msra.mxu1 %v6724_v36  ;;  %v6760_v36 = vpack.c.bf16 %v5292_v35, %v5291_v34 }
 0x32e   : > { %6726 = vmatprep.subr.bf16.mxu1 %v7010_v7 }
 0x3c7   : > { %v1522_v37 = vpop.f32.mrb[30].mxu1 }
 0x3c8   : > { %v1524_v38 = vpop.f32.mrb[31].mxu1 }
 0x3cb   : > { %v1528_v39 = vpop.f32.mrb[32].mxu1 }
 0x3cc   : > { %v6670_v40 = vpack.c.bf16 %v1528_v39, %v1522_v37  ;;  %v1530_v41 = vpop.f32.mrb[33].mxu1  ;;  %v2063_v37 = vld [vmem:[%s8983_s7 + $0xa0] sm:$0xff] }
 0x3cd   : > { %v6668_v42 = vpack.c.bf16 %v1530_v41, %v1524_v38  ;;  %v2064_v38 = vld [vmem:[%s8983_s7 + $0xa8] sm:$0xff] }
 0x3ce   : > { %v6727_v39 = vpack.c.bf16 %v2064_v38, %v2063_v37  ;;  %v5294_v41 = vld [vmem:[%s8983_s7 + $0x168] sm:$0xff] }
 0x3cf   : > { %v1534_v43 = vpop.f32.mrb[34].mxu1  ;;  %6669 = vmatprep.subr.bf16.mxu0 %v6668_v42 }
 0x3d0   : > { %v1536_v44 = vpop.f32.mrb[35].mxu1  ;;  %6671 = vmatpush1.bf16.msra.mxu0 %v6670_v40  ;;  %v5293_v40 = vld [vmem:[%s8983_s7 + $0x160] sm:$0xff]  ;;  %6728 = vmatpush1.bf16.msra.mxu1 %v6727_v39 }
 0x3d1   : > { %v6763_v42 = vpack.c.bf16 %v5294_v41, %v5293_v40  ;;  %6729 = vmatprep.subr.bf16.mxu1 %v7010_v7 }
 0x3d3   : > { %v1540_v45 = vpop.f32.mrb[36].mxu1 }
 0x3d4   : > { %v6674_v46 = vpack.c.bf16 %v1540_v45, %v1534_v43  ;;  %v1542_v47 = vpop.f32.mrb[37].mxu1  ;;  %v2065_v43 = vld [vmem:[%s8983_s7 + $0xb0] sm:$0xff] }
 0x3d5   : > { %v6672_v48 = vpack.c.bf16 %v1542_v47, %v1536_v44  ;;  %v2066_v44 = vld [vmem:[%s8983_s7 + $0xb8] sm:$0xff]  ;;  %v5295_v45 = vld [vmem:[%s8983_s7 + $0x170] sm:$0xff] }
 0x3d6   : > { %v5296_v47 = vld [vmem:[%s8983_s7 + $0x178] sm:$0xff] }
 0x3d7   : > { %v1546_v49 = vpop.f32.mrb[38].mxu1  ;;  %6673 = vmatprep.subr.bf16.mxu0 %v6672_v48  ;;  %v6766_v48 = vpack.c.bf16 %v5296_v47, %v5295_v45 }
 0x3d8   : > { %v1548_v50 = vpop.f32.mrb[39].mxu1  ;;  %6675 = vmatpush1.bf16.msra.mxu0 %v6674_v46  ;;  %v6730_v46 = vpack.c.bf16 %v2066_v44, %v2065_v43 }
 0x3d9   : > { %5232 = vmatprep.subr.msk.mxu0 %vm1108_vm2, %v1548_v50 }
 0x3da   : > { %6731 = vmatpush1.bf16.msra.mxu1 %v6730_v46 }
 0x3db   : > { %v1839_v53 = vpop.f32.mrb[40].mxu1  ;;  %6768 = vmatprep.subr.bf16.mxu1 %v7010_v7 }
 0x3dc   : > { %5233 = vmatpush1.msk.msra.mxu0 %vm1108_vm2, %v1546_v49  ;;  %v1841_v56 = vpop.f32.mrb[41].mxu1  ;;  %v1981_v49 = vlaneseq }
 0x3dd   : > { %5234 = vmatmul.mubr.msk.f32.vlgmr.msra.gmra.mrb[30].mxu0 %vm1092_vm3, %v7369_v51 }
 0x3de   : > { %1735 = vmatprep.mubr.f32.mxu0 %v7012_v4  ;;  %v1982_v50 = vshrl.u32 %v1981_v49, 7 }
 0x3df   : > { %v1845_v59 = vpop.f32.mrb[42].mxu1 }
 0x3e0   : > { %v6690_v62 = vpack.c.bf16 %v1845_v59, %v1839_v53  ;;  %v1847_v1 = vpop.f32.mrb[43].mxu1  ;;  %v1983_v53 = vsub.s32 0, %v1982_v50  ;;  %v1987_v59 = vsub.s32 1, %v1982_v50 }
 0x3e1   : > { %v6688_v2 = vpack.c.bf16 %v1847_v1, %v1841_v56  ;;  %5235 = vmatmul.mubr.msk.f32.gmra.mrb[32].mxu0 %vm1092_vm3, %v7382_v54  ;;  %v1979_v56 = vld [vmem:[%s9021_s22] sm:$0x3] }
 0x3e2   : > { %1741 = vmatprep.mubr.f32.mxu0 %v7012_v4  ;;  %v7821_v1 = vrot.slane %v1979_v56, %v1987_v59 }
 0x3e3   : > { %v1851_v3 = vpop.f32.mrb[44].mxu1  ;;  %6689 = vmatprep.subr.bf16.mxu0 %v6688_v2 }
 0x3e4   : > { %v1853_v5 = vpop.f32.mrb[45].mxu1  ;;  %6691 = vmatpush1.bf16.msra.mxu0 %v6690_v62  ;;  %v1984_v62 = vrot.slane %v1979_v56, %v1983_v53 }
 0x3e5   : > { %5236 = vmatmul.mubr.msk.f32.gmra.mrb[34].mxu0 %vm1092_vm3, %v7393_v57 }
 0x3e6   : > { %1747 = vmatprep.mubr.f32.mxu0 %v7012_v4 }
 0x3e7   : > { %v1857_v6 = vpop.f32.mrb[46].mxu1 }
 0x3e8   : > { %v6694_v8 = vpack.c.bf16 %v1857_v6, %v1851_v3  ;;  %v1859_v9 = vpop.f32.mrb[47].mxu1 }
 0x3e9   : > { %v6692_v10 = vpack.c.bf16 %v1859_v9, %v1853_v5  ;;  %5237 = vmatmul.mubr.msk.f32.gmra.mrb[36].mxu0 %vm1092_vm3, %v7404_v60 }
 0x3ea   : > { %1753 = vmatprep.mubr.f32.mxu0 %v7012_v4 }
 0x3eb   : > { %v1863_v11 = vpop.f32.mrb[48].mxu1  ;;  %6693 = vmatprep.subr.bf16.mxu0 %v6692_v10 }
 0x3ec   : > { %v1865_v14 = vpop.f32.mrb[49].mxu1  ;;  %6695 = vmatpush1.bf16.msra.mxu0 %v6694_v8 }
 0x3ed   : > { %5238 = vmatmul.mubr.msk.f32.gmra.mrb[38].mxu0 %vm1092_vm3, %v7415_v63  ;;  %5256 = vmatprep.subr.msk.mxu0 %vm1108_vm2, %v1865_v14  ;;  %v6736_v63 = vpack.c.bf16 %v5276_v22, %v5275_v21 }
 0x3ee   : > { %1938 = vmatprep.mubr.f32.mxu0 %v7012_v4 }
 0x3f0   : > { %5257 = vmatpush1.msk.msra.mxu0 %vm1108_vm2, %v1863_v11 }
 0x3f1   : > { %5258 = vmatmul.mubr.msk.f32.vlgmr.msra.gmra.mrb[30].mxu0 %vm1092_vm3, %v7428_v16  ;;  %6732 = vmatprep.subr.bf16.mxu0 %v7010_v7  ;;  %v6739_v16 = vpack.c.bf16 %v5278_v24, %v5277_v23 }
 0x3f2   : > { %1944 = vmatprep.mubr.f32.mxu0 %v7012_v4  ;;  %6734 = vmatpush1.bf16.msra.mxu0 %v6733_v15 }
 0x3f3   : > { %6735 = vmatprep.subr.bf16.mxu0 %v7010_v7 }
 0x3f5   : > { %5259 = vmatmul.mubr.msk.f32.gmra.mrb[32].mxu0 %vm1092_vm3, %v7438_v17  ;;  %v6742_v17 = vpack.c.bf16 %v5280_v26, %v5279_v25 }
 0x3f6   : > { %1950 = vmatprep.mubr.f32.mxu0 %v7012_v4  ;;  %6737 = vmatpush1.bf16.msra.mxu0 %v6736_v63 }
 0x3f7   : > { %6738 = vmatprep.subr.bf16.mxu0 %v7010_v7 }
 0x3f9   : > { %5260 = vmatmul.mubr.msk.f32.gmra.mrb[34].mxu0 %vm1092_vm3, %v7447_v18  ;;  %v6745_v18 = vpack.c.bf16 %v5282_v28, %v5281_v27 }
 0x3fa   : > { %1956 = vmatprep.mubr.f32.mxu0 %v7012_v4  ;;  %6740 = vmatpush1.bf16.msra.mxu0 %v6739_v16 }
 0x3fb   : > { %6741 = vmatprep.subr.bf16.mxu0 %v7010_v7 }
 0x3fd   : > { %5261 = vmatmul.mubr.msk.f32.gmra.mrb[36].mxu0 %vm1092_vm3, %v7456_v19  ;;  %v5285_v19 = vld [vmem:[%s8983_s7 + $0x120] sm:$0xff] }
 0x3fe   : > { %1962 = vmatprep.mubr.f32.mxu0 %v7012_v4  ;;  %6743 = vmatpush1.bf16.msra.mxu0 %v6742_v17  ;;  %v6751_v61 = vpack.c.bf16 %v5286_v29, %v5285_v19 }
 0x3ff   : > { %6744 = vmatprep.subr.bf16.mxu0 %v7010_v7 }
 0x401   : > { %5262 = vmatmul.mubr.msk.f32.gmra.mrb[38].mxu0 %vm1092_vm3, %v7465_v20  ;;  %v5287_v20 = vld [vmem:[%s8983_s7 + $0x130] sm:$0xff] }
 0x402   : > { %6746 = vmatpush1.bf16.msra.mxu0 %v6745_v18  ;;  %v6754_v30 = vpack.c.bf16 %v5288_v0, %v5287_v20 }
 0x403   : > { %6747 = vmatprep.subr.bf16.mxu0 %v7010_v7 }
 0x406   : > { %6749 = vmatpush1.bf16.msra.mxu0 %v6748_v58 }
 0x407   : > { %6750 = vmatprep.subr.bf16.mxu0 %v7010_v7 }
 0x40a   : > { %6752 = vmatpush1.bf16.msra.mxu0 %v6751_v61 }
 0x40b   : > { %6753 = vmatprep.subr.bf16.mxu0 %v7010_v7 }
 0x40e   : > { %6755 = vmatpush1.bf16.msra.mxu0 %v6754_v30 }
 0x40f   : > { %6756 = vmatprep.subr.bf16.mxu0 %v7010_v7 }
 0x412   : > { %6758 = vmatpush1.bf16.msra.mxu0 %v6757_v33 }
 0x413   : > { %6759 = vmatprep.subr.bf16.mxu0 %v7010_v7 }
 0x416   : > { %6761 = vmatpush1.bf16.msra.mxu0 %v6760_v36 }
 0x417   : > { %6762 = vmatprep.subr.bf16.mxu0 %v7010_v7 }
 0x41a   : > { %6764 = vmatpush1.bf16.msra.mxu0 %v6763_v42 }
 0x41b   : > { %6765 = vmatprep.subr.bf16.mxu0 %v7010_v7 }
 0x41e   : > { %6767 = vmatpush1.bf16.msra.mxu0 %v6766_v48 }
 0x41f   : > { %6810 = vmatprep.subr.bf16.mxu0 %v7010_v7 }
 0x4c4   : > { %v1940_v2 = vpop.f32.mrb[30].mxu0 }
 0x4c5   : > { %v1991_v3 = vadd.f32 %v1984_v62, %v1940_v2  ;;  %v1942_v5 = vpop.f32.mrb[31].mxu0  ;;  %v5308_v2 = vld [vmem:[%s8983_s7 + $0x180] sm:$0xff] }
 0x4c6   : > { %v1992_v6 = vadd.f32 %v7821_v1, %v1942_v5 }
 0x4c7   : > { %vm2001_vm4 = vcmp.gt.f32.partialorder %v1991_v3, 0.0  ;;  %v2011_v8 = vmul.f32 0.1, %v1991_v3 }
 0x4c8   : > { %vm2002_vm5 = vcmp.gt.f32.partialorder %v1992_v6, 0.0  ;;  %v2012_v9 = vmul.f32 0.1, %v1992_v6  ;;  %v1946_v10 = vpop.f32.mrb[32].mxu0 }
 0x4c9   : > { %v7831_v11 = vsel %vm2001_vm4, %v1991_v3, %v2011_v8  ;;  %v1993_v12 = vadd.f32 %v1984_v62, %v1946_v10  ;;  %v1948_v13 = vpop.f32.mrb[33].mxu0  ;;  %v5309_v3 = vld [vmem:[%s8983_s7 + $0x188] sm:$0xff] }
 0x4ca   : > { %2031 = vst [vmem:[%s7829_s5] sm:$0xff] %v7831_v11  ;;  %v1994_v14 = vadd.f32 %v7821_v1, %v1948_v13  ;;  %v7836_v15 = vsel %vm2002_vm5, %v1992_v6, %v2012_v9  ;;  %v6775_v10 = vpack.c.bf16 %v5309_v3, %v5308_v2  ;;  %v5311_v13 = vld [vmem:[%s8983_s7 + $0x198] sm:$0xff]  ;;  %vm2660_vm5 = vcmask 785408  }
 0x4cb   : > { %vm2003_vm7 = vcmp.gt.f32.partialorder %v1993_v12, 0.0  ;;  %v2013_v21 = vmul.f32 0.1, %v1993_v12  ;;  %2033 = vst.msk [vmem:[%s7829_s5 + $0x8] sm:$0xff] %vm2032_vm6, %v7836_v15  ;;  %5263 = vmatprep.mubr.msk.f32.mxu1 %vm2032_vm6, %v7836_v15  ;;  %5297 = vmatprep.mubr.msk.f32.mxu0 %vm2032_vm6, %v7836_v15 }
 0x4cc   : > { %vm2004_vm8 = vcmp.gt.f32.partialorder %v1994_v14, 0.0  ;;  %v2014_v22 = vmul.f32 0.1, %v1994_v14  ;;  %v1952_v63 = vpop.f32.mrb[34].mxu0  ;;  %2147 = vmatmul.mubr.f32.vlgmr.msra.gmra.mrb[50].mxu1 %v7831_v11  ;;  %2267 = vmatmul.mubr.f32.vlgmr.msra.gmra.mrb[40].mxu0 %v7831_v11 }
 0x4cd   : > { %v1995_v23 = vadd.f32 %v1984_v62, %v1952_v63  ;;  %v1954_v24 = vpop.f32.mrb[35].mxu0  ;;  %v7847_v16 = vsel %vm2003_vm7, %v1993_v12, %v2013_v21  ;;  %v5310_v12 = vld [vmem:[%s8983_s7 + $0x190] sm:$0xff]  ;;  %v5312_v21 = vld [vmem:[%s8983_s7 + $0x1a0] sm:$0xff] }
 0x4ce   : > { %v1996_v25 = vadd.f32 %v7821_v1, %v1954_v24  ;;  %v7850_v26 = vsel %vm2004_vm8, %v1994_v14, %v2014_v22  ;;  %2034 = vst [vmem:[%s7829_s5 + $0x10] sm:$0xff] %v7847_v16  ;;  %v6778_v14 = vpack.c.bf16 %v5311_v13, %v5310_v12  ;;  %v5313_v22 = vld [vmem:[%s8983_s7 + $0x1a8] sm:$0xff]  ;;  %v5314_v63 = vld [vmem:[%s8983_s7 + $0x1b0] sm:$0xff]  ;;  %v5316_v24 = vld [vmem:[%s8983_s7 + $0x1c0] sm:$0xff] }
 0x4cf   : > { %vm2005_vm9 = vcmp.gt.f32.partialorder %v1995_v23, 0.0  ;;  %v2015_v17 = vmul.f32 0.1, %v1995_v23  ;;  %2035 = vst.msk [vmem:[%s7829_s5 + $0x18] sm:$0xff] %vm2032_vm6, %v7850_v26  ;;  %5264 = vmatprep.mubr.msk.f32.mxu1 %vm2032_vm6, %v7850_v26  ;;  %5298 = vmatprep.mubr.msk.f32.mxu0 %vm2032_vm6, %v7850_v26 }
 0x4d0   : > { %vm2006_vm10 = vcmp.gt.f32.partialorder %v1996_v25, 0.0  ;;  %v2016_v27 = vmul.f32 0.1, %v1996_v25  ;;  %v1958_v28 = vpop.f32.mrb[36].mxu0  ;;  %2152 = vmatmul.mubr.f32.gmra.mrb[52].mxu1 %v7847_v16  ;;  %2272 = vmatmul.mubr.f32.gmra.mrb[42].mxu0 %v7847_v16 }
 0x4d1   : > { %v1997_v18 = vadd.f32 %v1984_v62, %v1958_v28  ;;  %v1960_v52 = vpop.f32.mrb[37].mxu0  ;;  %v7863_v55 = vsel %vm2005_vm9, %v1995_v23, %v2015_v17  ;;  %v5315_v23 = vld [vmem:[%s8983_s7 + $0x1b8] sm:$0xff] }
 0x4d2   : > { %v1998_v58 = vadd.f32 %v7821_v1, %v1960_v52  ;;  %v7866_v19 = vsel %vm2006_vm10, %v1996_v25, %v2016_v27  ;;  %2036 = vst [vmem:[%s7829_s5 + $0x20] sm:$0xff] %v7863_v55  ;;  %v5317_v25 = vld [vmem:[%s8983_s7 + $0x1c8] sm:$0xff]  ;;  %v5318_v27 = vld [vmem:[%s8983_s7 + $0x1d0] sm:$0xff]  ;;  %v5319_v28 = vld [vmem:[%s8983_s7 + $0x1d8] sm:$0xff]  ;;  %vm2665_vm10 = vcmask 778240  }
 0x4d3   : > { %vm2007_vm11 = vcmp.gt.f32.partialorder %v1997_v18, 0.0  ;;  %v2017_v29 = vmul.f32 0.1, %v1997_v18  ;;  %2037 = vst.msk [vmem:[%s7829_s5 + $0x28] sm:$0xff] %vm2032_vm6, %v7866_v19  ;;  %5265 = vmatprep.mubr.msk.f32.mxu1 %vm2032_vm6, %v7866_v19  ;;  %5299 = vmatprep.mubr.msk.f32.mxu0 %vm2032_vm6, %v7866_v19  ;;  %v6787_v17 = vpack.c.bf16 %v5317_v25, %v5316_v24  ;;  %v5321_v52 = vld [vmem:[%s8983_s7 + $0x1e8] sm:$0xff]  ;;  %v2667_v25 = vld [vmem:[%s8985_s9] sm:$0xff] }
 0x4d4   : > { %vm2008_vm12 = vcmp.gt.f32.partialorder %v1998_v58, 0.0  ;;  %v2018_v61 = vmul.f32 0.1, %v1998_v58  ;;  %v1964_v20 = vpop.f32.mrb[38].mxu0  ;;  %2157 = vmatmul.mubr.f32.gmra.mrb[54].mxu1 %v7863_v55  ;;  %2277 = vmatmul.mubr.f32.gmra.mrb[44].mxu0 %v7863_v55 }
 0x4d5   : > { %v1999_v0 = vadd.f32 %v1984_v62, %v1964_v20  ;;  %v1966_v30 = vpop.f32.mrb[39].mxu0  ;;  %v7879_v31 = vsel %vm2007_vm11, %v1997_v18, %v2017_v29  ;;  %v5320_v18 = vld [vmem:[%s8983_s7 + $0x1e0] sm:$0xff]  ;;  %v5322_v29 = vld [vmem:[%s8983_s7 + $0x1f0] sm:$0xff] }
 0x4d6   : > { %v2000_v32 = vadd.f32 %v7821_v1, %v1966_v30  ;;  %v7882_v33 = vsel %vm2008_vm12, %v1998_v58, %v2018_v61  ;;  %2038 = vst [vmem:[%s7829_s5 + $0x30] sm:$0xff] %v7879_v31  ;;  %v6793_v58 = vpack.c.bf16 %v5321_v52, %v5320_v18  ;;  %v5324_v20 = vld [vmem:[%s8983_s7 + $0x200] sm:$0xff]  ;;  %v2670_v18 = vld [vmem:[%s8985_s9 + $0x18] sm:$0xff]  ;;  %v2516_v52 = vld [vmem:[%s9018_s2 + $0x8] sm:$0xff] }
 0x4d7   : > { %vm2009_vm13 = vcmp.gt.f32.partialorder %v1999_v0, 0.0  ;;  %v2019_v34 = vmul.f32 0.1, %v1999_v0  ;;  %2039 = vst.msk [vmem:[%s7829_s5 + $0x38] sm:$0xff] %vm2032_vm6, %v7882_v33  ;;  %5266 = vmatprep.mubr.msk.f32.mxu1 %vm2032_vm6, %v7882_v33  ;;  %5300 = vmatprep.mubr.msk.f32.mxu0 %vm2032_vm6, %v7882_v33 }
 0x4d8   : > { %vm2010_vm14 = vcmp.gt.f32.partialorder %v2000_v32, 0.0  ;;  %v2020_v35 = vmul.f32 0.1, %v2000_v32  ;;  %2162 = vmatmul.mubr.f32.gmra.mrb[56].mxu1 %v7879_v31  ;;  %2282 = vmatmul.mubr.f32.gmra.mrb[46].mxu0 %v7879_v31 }
 0x4d9   : > { %v7895_v36 = vsel %vm2009_vm13, %v1999_v0, %v2019_v34  ;;  %v5325_v0 = vld [vmem:[%s8983_s7 + $0x208] sm:$0xff]  ;;  %v5327_v34 = vld [vmem:[%s8983_s7 + $0x218] sm:$0xff] }
 0x4da   : > { %v7897_v37 = vsel %vm2010_vm14, %v2000_v32, %v2020_v35  ;;  %2040 = vst [vmem:[%s7829_s5 + $0x40] sm:$0x1] %v7895_v36  ;;  %v6799_v30 = vpack.c.bf16 %v5325_v0, %v5324_v20  ;;  %v5326_v32 = vld [vmem:[%s8983_s7 + $0x210] sm:$0xff] }
 0x4db   : > { %2042 = vst.msk [vmem:[%s7829_s5 + $0x48] sm:$0x1] %vm2041_vm15, %v7897_v37  ;;  %5267 = vmatprep.mubr.msk.f32.mxu1 %vm2032_vm6, %v7897_v37  ;;  %5301 = vmatprep.mubr.msk.f32.mxu0 %vm2032_vm6, %v7897_v37  ;;  %v6802_v35 = vpack.c.bf16 %v5327_v34, %v5326_v32  ;;  %v2673_v0 = vld [vmem:[%s8985_s9 + $0x30] sm:$0xff]  ;;  %v2518_v32 = vld [vmem:[%s9018_s2 + $0x18] sm:$0xff] }
 0x4dc   : > { %2167 = vmatmul.mubr.f32.gmra.mrb[58].mxu1 %v7895_v36  ;;  %2287 = vmatmul.mubr.f32.gmra.mrb[48].mxu0 %v7895_v36 }
 0x4dd   : > { %6009 = vmatprep.mubr.msk.f32.mxu1 %vm7011_vm0, %v7012_v4  ;;  %6034 = vmatprep.mubr.msk.f32.mxu0 %vm7011_vm0, %v7012_v4 }
 0x59f   : > { %v2148_v38 = vpop.f32.mrb[50].mxu1  ;;  %v7913_v39 = vpop.f32.mrb[40].mxu0 }
 0x5a0   : > { %v2150_v40 = vpop.f32.mrb[51].mxu1  ;;  %v2270_v41 = vpop.f32.mrb[41].mxu0 }
 0x5a1   : > { %v5329_v40 = vld [vmem:[%s8983_s7 + $0x228] sm:$0xff] }
 0x5a3   : > { %v2153_v42 = vpop.f32.mrb[52].mxu1  ;;  %v7915_v43 = vpop.f32.mrb[42].mxu0 }
 0x5a4   : > { %v6769_v44 = vpack.c.bf16 %v2153_v42, %v2148_v38  ;;  %v2155_v45 = vpop.f32.mrb[53].mxu1  ;;  %v2275_v46 = vpop.f32.mrb[43].mxu0  ;;  %v5328_v38 = vld [vmem:[%s8983_s7 + $0x220] sm:$0xff]  ;;  %v5330_v42 = vld [vmem:[%s8983_s7 + $0x230] sm:$0xff] }
 0x5a5   : > { %v6805_v41 = vpack.c.bf16 %v5329_v40, %v5328_v38  ;;  %v5360_v46 = vld [vmem:[%s8985_s9 + $0x90] sm:$0xff]  ;;  %v5362_v38 = vld [vmem:[%s8985_s9 + $0xa0] sm:$0xff]  ;;  %v5363_v40 = vld [vmem:[%s8985_s9 + $0xa8] sm:$0xff] }
 0x5a6   : > { %6770 = vmatpush3.bf16.msra.mxu1 %v6769_v44  ;;  %v5331_v44 = vld [vmem:[%s8983_s7 + $0x238] sm:$0xff] }
 0x5a7   : > { %v2158_v47 = vpop.f32.mrb[54].mxu1  ;;  %v7917_v48 = vpop.f32.mrb[44].mxu0  ;;  %6771 = vmatprep.subr.bf16.mxu1 %v7010_v7  ;;  %v6808_v45 = vpack.c.bf16 %v5331_v44, %v5330_v42  ;;  %v2675_v42 = vld [vmem:[%s8985_s9 + $0x40] sm:$0xff]  ;;  %v2676_v44 = vld [vmem:[%s8985_s9 + $0x48] sm:$0xff] }
 0x5a8   : > { %v2160_v49 = vpop.f32.mrb[55].mxu1  ;;  %v2280_v50 = vpop.f32.mrb[45].mxu0 }
 0x5ab   : > { %v2163_v53 = vpop.f32.mrb[56].mxu1  ;;  %v7920_v56 = vpop.f32.mrb[46].mxu0 }
 0x5ac   : > { %v6772_v59 = vpack.c.bf16 %v2163_v53, %v2158_v47  ;;  %v2165_v62 = vpop.f32.mrb[57].mxu1  ;;  %v2285_v1 = vpop.f32.mrb[47].mxu0  ;;  %v5361_v47 = vld [vmem:[%s8985_s9 + $0x98] sm:$0xff] }
 0x5ad   : > { %v6844_v49 = vpack.c.bf16 %v5361_v47, %v5360_v46  ;;  %v5377_v47 = vld [vmem:[%s8985_s9 + $0xc0] sm:$0xff] }
 0x5ae   : > { %6773 = vmatpush3.bf16.msra.mxu1 %v6772_v59 }
 0x5af   : > { %v2168_v5 = vpop.f32.mrb[58].mxu1  ;;  %v7928_v6 = vpop.f32.mrb[48].mxu0  ;;  %6007 = vmatprep.subr.mxu1 %v7012_v4 }
 0x5b0   : > { %v2170_v8 = vpop.f32.mrb[59].mxu1  ;;  %v2290_v9 = vpop.f32.mrb[49].mxu0 }
 0x5b2   : > { %6008 = vmatpush3.msk.msra.mxu1 %vm1108_vm2, %v2168_v5 }
 0x5b3   : > { %6010 = vmatmul.mubr.msk.f32.vlgmr.msra.gmra.mrb[60].mxu1 %vm1092_vm3, %v7369_v51  ;;  %6774 = vmatprep.subr.bf16.mxu1 %v7010_v7  ;;  %v6781_v51 = vpack.c.bf16 %v5313_v22, %v5312_v21 }
 0x5b4   : > { %6776 = vmatpush1.bf16.msra.mxu1 %v6775_v10  ;;  %6012 = vmatprep.mubr.msk.f32.mxu1 %vm7011_vm0, %v7012_v4 }
 0x5b5   : > { %6777 = vmatprep.subr.bf16.mxu1 %v7010_v7 }
 0x5b7   : > { %6013 = vmatmul.mubr.msk.f32.gmra.mrb[62].mxu1 %vm1092_vm3, %v7382_v54  ;;  %v6784_v54 = vpack.c.bf16 %v5315_v23, %v5314_v63 }
 0x5b8   : > { %6779 = vmatpush1.bf16.msra.mxu1 %v6778_v14  ;;  %6015 = vmatprep.mubr.msk.f32.mxu1 %vm7011_vm0, %v7012_v4 }
 0x5b9   : > { %6780 = vmatprep.subr.bf16.mxu1 %v7010_v7 }
 0x5bb   : > { %6016 = vmatmul.mubr.msk.f32.gmra.mrb[64].mxu1 %vm1092_vm3, %v7393_v57  ;;  %v5272_v57 = vld [vmem:[%s9018_s2 + $0x48] sm:$0x1] }
 0x5bc   : > { %6782 = vmatpush1.bf16.msra.mxu1 %v6781_v51  ;;  %6018 = vmatprep.mubr.msk.f32.mxu1 %vm7011_vm0, %v7012_v4 }
 0x5bd   : > { %6783 = vmatprep.subr.bf16.mxu1 %v7010_v7 }
 0x5bf   : > { %6019 = vmatmul.mubr.msk.f32.gmra.mrb[66].mxu1 %vm1092_vm3, %v7404_v60  ;;  %v6790_v60 = vpack.c.bf16 %v5319_v28, %v5318_v27  ;;  %v2515_v27 = vld [vmem:[%s9018_s2] sm:$0xff] }
 0x5c0   : > { %6785 = vmatpush1.bf16.msra.mxu1 %v6784_v54  ;;  %6021 = vmatprep.mubr.msk.f32.mxu1 %vm7011_vm0, %v7012_v4 }
 0x5c1   : > { %6786 = vmatprep.subr.bf16.mxu1 %v7010_v7 }
 0x5c3   : > { %6022 = vmatmul.mubr.msk.f32.gmra.mrb[68].mxu1 %vm1092_vm3, %v5272_v57 }
 0x5c4   : > { %6788 = vmatpush1.bf16.msra.mxu1 %v6787_v17  ;;  %5332 = vmatprep.mubr.msk.f32.mxu1 %vm2032_vm6, %v7836_v15  ;;  %v5323_v15 = vld [vmem:[%s8983_s7 + $0x1f8] sm:$0xff] }
 0x5c5   : > { %6789 = vmatprep.subr.bf16.mxu1 %v7010_v7  ;;  %v6796_v61 = vpack.c.bf16 %v5323_v15, %v5322_v29  ;;  %v2671_v29 = vld [vmem:[%s8985_s9 + $0x20] sm:$0xff]  ;;  %v2672_v15 = vld [vmem:[%s8985_s9 + $0x28] sm:$0xff] }
 0x5c6   : > { %v6823_v20 = vpack.c.bf16 %v2672_v15, %v2671_v29 }
 0x5c8   : > { %6791 = vmatpush1.bf16.msra.mxu1 %v6790_v60  ;;  %v2669_v60 = vld [vmem:[%s8985_s9 + $0x10] sm:$0xff] }
 0x5c9   : > { %6792 = vmatprep.subr.bf16.mxu1 %v7010_v7 }
 0x5cc   : > { %6794 = vmatpush1.bf16.msra.mxu1 %v6793_v58  ;;  %v6820_v58 = vpack.c.bf16 %v2670_v18, %v2669_v60 }
 0x5cd   : > { %6795 = vmatprep.subr.bf16.mxu1 %v7010_v7 }
 0x5d0   : > { %6797 = vmatpush1.bf16.msra.mxu1 %v6796_v61  ;;  %v2517_v61 = vld [vmem:[%s9018_s2 + $0x10] sm:$0xff] }
 0x5d1   : > { %6798 = vmatprep.subr.bf16.mxu1 %v7010_v7 }
 0x5d4   : > { %6800 = vmatpush1.bf16.msra.mxu1 %v6799_v30  ;;  %v2674_v30 = vld [vmem:[%s8985_s9 + $0x38] sm:$0xff] }
 0x5d5   : > { %6801 = vmatprep.subr.bf16.mxu1 %v7010_v7  ;;  %v6826_v34 = vpack.c.bf16 %v2674_v30, %v2673_v0  ;;  %v5387_v0 = vld [vmem:[%s8985_s9 + $0x110] sm:$0xff]  ;;  %v5388_v30 = vld [vmem:[%s8985_s9 + $0x118] sm:$0xff] }
 0x5d8   : > { %6803 = vmatpush1.bf16.msra.mxu1 %v6802_v35  ;;  %v2519_v35 = vld [vmem:[%s9018_s2 + $0x20] sm:$0x1] }
 0x5d9   : > { %6804 = vmatprep.subr.bf16.mxu1 %v7010_v7 }
 0x5dc   : > { %6806 = vmatpush1.bf16.msra.mxu1 %v6805_v41  ;;  %v6847_v41 = vpack.c.bf16 %v5363_v40, %v5362_v38 }
 0x5dd   : > { %6807 = vmatprep.subr.bf16.mxu1 %v7010_v7 }
 0x5e0   : > { %6809 = vmatpush1.bf16.msra.mxu1 %v6808_v45  ;;  %v6829_v45 = vpack.c.bf16 %v2676_v44, %v2675_v42 }
 0x5e1   : > { %6834 = vmatprep.subr.bf16.mxu1 %v7010_v7 }
 0x5e3   : > { %2490 = vmatmul.mubr.f32.vlgmr.msra.gmra.mrb[70].mxu1 %v7831_v11  ;;  %v5354_v11 = vld [vmem:[%s8985_s9 + $0x60] sm:$0xff] }
 0x5e4   : > { %5333 = vmatprep.mubr.msk.f32.mxu1 %vm2032_vm6, %v7850_v26 }
 0x5e7   : > { %2495 = vmatmul.mubr.f32.gmra.mrb[72].mxu1 %v7847_v16  ;;  %v5355_v16 = vld [vmem:[%s8985_s9 + $0x68] sm:$0xff] }
 0x5e8   : > { %5334 = vmatprep.mubr.msk.f32.mxu1 %vm2032_vm6, %v7866_v19  ;;  %v6835_v26 = vpack.c.bf16 %v5355_v16, %v5354_v11  ;;  %v5357_v19 = vld [vmem:[%s8985_s9 + $0x78] sm:$0xff]  ;;  %v5364_v11 = vld [vmem:[%s8985_s9 + $0xb0] sm:$0xff] }
 0x5e9   : > { %v5365_v16 = vld [vmem:[%s8985_s9 + $0xb8] sm:$0xff] }
 0x5ea   : > { %6836 = vmatpush3.bf16.msra.mxu1 %v6835_v26  ;;  %v6850_v26 = vpack.c.bf16 %v5365_v16, %v5364_v11 }
 0x5eb   : > { %2500 = vmatmul.mubr.f32.gmra.mrb[74].mxu1 %v7863_v55  ;;  %v5356_v55 = vld [vmem:[%s8985_s9 + $0x70] sm:$0xff]  ;;  %6837 = vmatprep.subr.bf16.mxu1 %v7010_v7 }
 0x5ec   : > { %5335 = vmatprep.mubr.msk.f32.mxu1 %vm2032_vm6, %v7882_v33  ;;  %v5358_v33 = vld [vmem:[%s8985_s9 + $0x80] sm:$0xff] }
 0x5ef   : > { %2505 = vmatmul.mubr.f32.gmra.mrb[76].mxu1 %v7879_v31  ;;  %v6838_v31 = vpack.c.bf16 %v5357_v19, %v5356_v55  ;;  %v2677_v55 = vld [vmem:[%s8985_s9 + $0x50] sm:$0xff]  ;;  %v2678_v19 = vld [vmem:[%s8985_s9 + $0x58] sm:$0xff] }
 0x5f0   : > { %5336 = vmatprep.mubr.msk.f32.mxu1 %vm2032_vm6, %v7897_v37 }
 0x5f1   : > { %6839 = vmatpush3.bf16.msra.mxu1 %v6838_v31  ;;  %v6832_v31 = vpack.c.bf16 %v2678_v19, %v2677_v55 }
 0x5f2   : > { %6840 = vmatprep.subr.bf16.mxu1 %v7010_v7 }
 0x5f3   : > { %2510 = vmatmul.mubr.f32.gmra.mrb[78].mxu1 %v7895_v36  ;;  %v5359_v36 = vld [vmem:[%s8985_s9 + $0x88] sm:$0xff] }
 0x5f4   : > { %6112 = vmatprep.mubr.msk.f32.mxu1 %vm7011_vm0, %v7012_v4  ;;  %v6841_v37 = vpack.c.bf16 %v5359_v36, %v5358_v33  ;;  %v8184_v36 = vld [vmem:[%s8984_s8] ss:$0 sm:$0xff] }
 0x5f6   : > { %6842 = vmatpush3.bf16.msra.mxu1 %v6841_v37 }
 0x5f7   : > { %6843 = vmatprep.subr.bf16.mxu1 %v7010_v7 }
 0x5fa   : > { %6845 = vmatpush3.bf16.msra.mxu1 %v6844_v49  ;;  %v5378_v49 = vld [vmem:[%s8985_s9 + $0xc8] sm:$0xff] }
 0x5fb   : > { %6846 = vmatprep.subr.bf16.mxu1 %v7010_v7 }
 0x5fe   : > { %6848 = vmatpush3.bf16.msra.mxu1 %v6847_v41 }
 0x5ff   : > { %6849 = vmatprep.subr.bf16.mxu1 %v7010_v7 }
 0x602   : > { %6851 = vmatpush3.bf16.msra.mxu1 %v6850_v26 }
 0x603   : > { %6858 = vmatprep.subr.bf16.mxu1 %v7010_v7 }
 0x686   : > { %v2376_v50 = vpop.f32.mrb[60].mxu1 }
 0x687   : > { %v8077_v53 = vadd.f32 %v2376_v50, %v7913_v39  ;;  %v6011_v59 = vpop.f32.mrb[61].mxu1 }
 0x68a   : > { %v2381_v62 = vpop.f32.mrb[62].mxu1 }
 0x68b   : > { %v8080_v1 = vadd.f32 %v2381_v62, %v7915_v43  ;;  %v6014_v2 = vpop.f32.mrb[63].mxu1  ;;  %v6859_v62 = vpack.c.bf16 %v5378_v49, %v5377_v47 }
 0x68e   : > { %v2386_v3 = vpop.f32.mrb[64].mxu1 }
 0x68f   : > { %v8083_v5 = vadd.f32 %v2386_v3, %v7917_v48  ;;  %v6017_v8 = vpop.f32.mrb[65].mxu1 }
 0x690   : > { %v5379_v8 = vld [vmem:[%s8985_s9 + $0xd0] sm:$0xff] }
 0x692   : > { %v2391_v9 = vpop.f32.mrb[66].mxu1 }
 0x693   : > { %v8086_v10 = vadd.f32 %v2391_v9, %v7920_v56  ;;  %v6020_v12 = vpop.f32.mrb[67].mxu1  ;;  %v5380_v9 = vld [vmem:[%s8985_s9 + $0xd8] sm:$0xff] }
 0x696   : > { %v2396_v13 = vpop.f32.mrb[68].mxu1 }
 0x697   : > { %v8089_v39 = vadd.f32 %v2396_v13, %v7928_v6  ;;  %v6023_v14 = vpop.f32.mrb[69].mxu1  ;;  %v2668_v6 = vld [vmem:[%s8985_s9 + $0x8] sm:$0xff] }
 0x698   : > { %v6817_v28 = vpack.c.bf16 %v2668_v6, %v2667_v25  ;;  %v5383_v6 = vld [vmem:[%s8985_s9 + $0xf0] sm:$0xff] }
 0x6b6   : > { %v2491_v21 = vpop.f32.mrb[70].mxu1 }
 0x6b7   : > { %v2493_v22 = vpop.f32.mrb[71].mxu1 }
 0x6ba   : > { %v2496_v43 = vpop.f32.mrb[72].mxu1 }
 0x6bb   : > { %v6811_v51 = vpack.c.bf16 %v2496_v43, %v2491_v21  ;;  %v2498_v63 = vpop.f32.mrb[73].mxu1  ;;  %v6862_v43 = vpack.c.bf16 %v5380_v9, %v5379_v8  ;;  %v5351_v9 = vld [vmem:[%s9018_s2 + $0x88] sm:$0xff] }
 0x6bd   : > { %6812 = vmatpush3.bf16.msra.mxu0 %v6811_v51  ;;  %v5381_v51 = vld [vmem:[%s8985_s9 + $0xe0] sm:$0xff] }
 0x6be   : > { %v2501_v23 = vpop.f32.mrb[74].mxu1  ;;  %6813 = vmatprep.subr.bf16.mxu0 %v7010_v7 }
 0x6bf   : > { %v2503_v48 = vpop.f32.mrb[75].mxu1 }
 0x6c2   : > { %v2506_v54 = vpop.f32.mrb[76].mxu1 }
 0x6c3   : > { %v6814_v24 = vpack.c.bf16 %v2506_v54, %v2501_v23  ;;  %v2508_v56 = vpop.f32.mrb[77].mxu1 }
 0x6c5   : > { %6815 = vmatpush3.bf16.msra.mxu0 %v6814_v24 }
 0x6c6   : > { %v2511_v57 = vpop.f32.mrb[78].mxu1  ;;  %6032 = vmatprep.subr.mxu0 %v7012_v4 }
 0x6c7   : > { %v2513_v17 = vpop.f32.mrb[79].mxu1 }
 0x6c9   : > { %6033 = vmatpush3.msk.msra.mxu0 %vm1108_vm2, %v2511_v57 }
 0x6ca   : > { %6035 = vmatmul.mubr.msk.f32.vlgmr.msra.gmra.mrb[50].mxu0 %vm1092_vm3, %v2515_v27  ;;  %6816 = vmatprep.subr.bf16.mxu0 %v7010_v7 }
 0x6cb   : > { %6037 = vmatprep.mubr.msk.f32.mxu0 %vm7011_vm0, %v7012_v4  ;;  %6818 = vmatpush3.bf16.msra.mxu0 %v6817_v28 }
 0x6cc   : > { %6819 = vmatprep.subr.bf16.mxu0 %v7010_v7 }
 0x6ce   : > { %6038 = vmatmul.mubr.msk.f32.gmra.mrb[52].mxu0 %vm1092_vm3, %v2516_v52 }
 0x6cf   : > { %6040 = vmatprep.mubr.msk.f32.mxu0 %vm7011_vm0, %v7012_v4  ;;  %6821 = vmatpush3.bf16.msra.mxu0 %v6820_v58  ;;  %v5385_v58 = vld [vmem:[%s8985_s9 + $0x100] sm:$0xff] }
 0x6d0   : > { %6822 = vmatprep.subr.bf16.mxu0 %v7010_v7 }
 0x6d2   : > { %6041 = vmatmul.mubr.msk.f32.gmra.mrb[54].mxu0 %vm1092_vm3, %v2517_v61 }
 0x6d3   : > { %6043 = vmatprep.mubr.msk.f32.mxu0 %vm7011_vm0, %v7012_v4  ;;  %6824 = vmatpush3.bf16.msra.mxu0 %v6823_v20 }
 0x6d4   : > { %6825 = vmatprep.subr.bf16.mxu0 %v7010_v7 }
 0x6d6   : > { %6044 = vmatmul.mubr.msk.f32.gmra.mrb[56].mxu0 %vm1092_vm3, %v2518_v32 }
 0x6d7   : > { %6046 = vmatprep.mubr.msk.f32.mxu0 %vm7011_vm0, %v7012_v4  ;;  %6827 = vmatpush3.bf16.msra.mxu0 %v6826_v34  ;;  %v6874_v34 = vpack.c.bf16 %v5388_v30, %v5387_v0  ;;  %v5420_v0 = vld [vmem:[%s8987_s11 + $0x50] sm:$0xff] }
 0x6d8   : > { %6828 = vmatprep.subr.bf16.mxu0 %v7010_v7 }
 0x6da   : > { %6047 = vmatmul.mubr.msk.f32.gmra.mrb[58].mxu0 %vm1092_vm3, %v2519_v35 }
 0x6db   : > { %6073 = vmatprep.mubr.msk.f32.mxu0 %vm7011_vm0, %v7012_v4  ;;  %6830 = vmatpush3.bf16.msra.mxu0 %v6829_v45 }
 0x6dc   : > { %6831 = vmatprep.subr.bf16.mxu0 %v7010_v7 }
 0x6df   : > { %6833 = vmatpush3.bf16.msra.mxu0 %v6832_v31 }
 0x6e0   : > { %6852 = vmatprep.subr.bf16.mxu0 %v7010_v7 }
 0x79d   : > { %v2604_v33 = vpop.f32.mrb[50].mxu0 }
 0x79e   : > { %v2628_v37 = vadd.f32 %v2604_v33, %v8077_v53  ;;  %v6036_v46 = vpop.f32.mrb[51].mxu0 }
 0x7a0   : > { %v2640_v50 = vadd.f32 %v8184_v36, %v2628_v37 }
 0x7a1   : > { %v2609_v59 = vpop.f32.mrb[52].mxu0 }
 0x7a2   : > { %vm2645_vm4 = vcmp.gt.f32.partialorder %v2640_v50, 0.0  ;;  %v2650_v53 = vmul.f32 0.1, %v2640_v50  ;;  %v2629_v2 = vadd.f32 %v2609_v59, %v8080_v1  ;;  %v6039_v3 = vpop.f32.mrb[53].mxu0 }
 0x7a4   : > { %v8210_v12 = vsel %vm2645_vm4, %v2640_v50, %v2650_v53  ;;  %v2641_v13 = vadd.f32 %v8184_v36, %v2629_v2  ;;  %v5349_v53 = vld [vmem:[%s9018_s2 + $0x78] sm:$0xff]  ;;  %v5350_v2 = vld [vmem:[%s9018_s2 + $0x80] sm:$0xff]  ;;  %vm3254_vm4 = vcmask 385024  }
 0x7a5   : > { %2661 = vst.msk [vmem:[%s8201_s28] sm:$0xff] %vm2660_vm5, %v8210_v12  ;;  %v2614_v14 = vpop.f32.mrb[54].mxu0  ;;  %6074 = vmatmul.mubr.msk.f32.vlgmr.msra.gmra.mrb[60].mxu0 %vm2660_vm5, %v8210_v12  ;;  %6113 = vmatmul.mubr.msk.f32.vlgmr.msra.gmra.mrb[80].mxu1 %vm2660_vm5, %v8210_v12 }
 0x7a6   : > { %v2651_v1 = vmul.f32 0.1, %v2641_v13  ;;  %v2630_v21 = vadd.f32 %v2614_v14, %v8083_v5  ;;  %6860 = vmatpush3.bf16.msra.mxu1 %v6859_v62  ;;  %v6042_v22 = vpop.f32.mrb[55].mxu0  ;;  %6076 = vmatprep.mubr.msk.f32.mxu0 %vm7011_vm0, %v7012_v4  ;;  %vm2646_vm6 = vcmp.gt.f32.partialorder %v2641_v13, 0.0  ;;  %v5382_v5 = vld [vmem:[%s8985_s9 + $0xe8] sm:$0xff] }
 0x7a7   : > { %6115 = vmatprep.mubr.msk.f32.mxu1 %vm7011_vm0, %v7012_v4  ;;  %6861 = vmatprep.subr.bf16.mxu1 %v7010_v7  ;;  %v6865_v25 = vpack.c.bf16 %v5382_v5, %v5381_v51 }
 0x7a8   : > { %v2642_v63 = vadd.f32 %v8184_v36, %v2630_v21  ;;  %v2656_v23 = vsel %vm2646_vm6, %v2641_v13, %v2651_v1  ;;  %v5352_v1 = vld [vmem:[%s9018_s2 + $0x90] sm:$0xff] }
 0x7a9   : > { %v2619_v48 = vpop.f32.mrb[56].mxu0  ;;  %2662 = vst.msk [vmem:[%s8201_s28 + $0x8] sm:$0xff] %vm2660_vm5, %v2656_v23  ;;  %6077 = vmatmul.mubr.msk.f32.gmra.mrb[62].mxu0 %vm2660_vm5, %v2656_v23  ;;  %6116 = vmatmul.mubr.msk.f32.gmra.mrb[82].mxu1 %vm2660_vm5, %v2656_v23 }
 0x7aa   : > { %v2652_v54 = vmul.f32 0.1, %v2642_v63  ;;  %v2631_v24 = vadd.f32 %v2619_v48, %v8086_v10  ;;  %6863 = vmatpush3.bf16.msra.mxu1 %v6862_v43  ;;  %v6045_v56 = vpop.f32.mrb[57].mxu0  ;;  %6079 = vmatprep.mubr.msk.f32.mxu0 %vm7011_vm0, %v7012_v4  ;;  %vm2647_vm7 = vcmp.gt.f32.partialorder %v2642_v63, 0.0  ;;  %v5384_v10 = vld [vmem:[%s8985_s9 + $0xf8] sm:$0xff] }
 0x7ab   : > { %6118 = vmatprep.mubr.msk.f32.mxu1 %vm7011_vm0, %v7012_v4  ;;  %6864 = vmatprep.subr.bf16.mxu1 %v7010_v7  ;;  %v6868_v52 = vpack.c.bf16 %v5384_v10, %v5383_v6  ;;  %v5353_v43 = vld [vmem:[%s9018_s2 + $0x98] sm:$0x1]  ;;  %v5396_v56 = vld [vmem:[%s9018_s2 + $0x60] sm:$0xff]  ;;  %v5398_v6 = vld [vmem:[%s9018_s2 + $0x70] sm:$0x1] }
 0x7ac   : > { %v2643_v57 = vadd.f32 %v8184_v36, %v2631_v24  ;;  %v2657_v17 = vsel %vm2647_vm7, %v2642_v63, %v2652_v54  ;;  %v5394_v54 = vld [vmem:[%s9018_s2 + $0x50] sm:$0xff]  ;;  %v5395_v24 = vld [vmem:[%s9018_s2 + $0x58] sm:$0xff] }
 0x7ad   : > { %v2624_v27 = vpop.f32.mrb[58].mxu0  ;;  %2663 = vst.msk [vmem:[%s8201_s28 + $0x10] sm:$0xff] %vm2660_vm5, %v2657_v17  ;;  %6080 = vmatmul.mubr.msk.f32.gmra.mrb[64].mxu0 %vm2660_vm5, %v2657_v17  ;;  %6119 = vmatmul.mubr.msk.f32.gmra.mrb[84].mxu1 %vm2660_vm5, %v2657_v17  ;;  %v5416_v10 = vld [vmem:[%s8987_s11 + $0x30] sm:$0xff] }
 0x7ae   : > { %v2653_v28 = vmul.f32 0.1, %v2643_v57  ;;  %v2632_v60 = vadd.f32 %v2624_v27, %v8089_v39  ;;  %6866 = vmatpush3.bf16.msra.mxu1 %v6865_v25  ;;  %v6048_v18 = vpop.f32.mrb[59].mxu0  ;;  %6082 = vmatprep.mubr.msk.f32.mxu0 %vm7011_vm0, %v7012_v4  ;;  %vm2648_vm8 = vcmp.gt.f32.partialorder %v2643_v57, 0.0  ;;  %v5386_v39 = vld [vmem:[%s8985_s9 + $0x108] sm:$0xff] }
 0x7af   : > { %6121 = vmatprep.mubr.msk.f32.mxu1 %vm7011_vm0, %v7012_v4  ;;  %6867 = vmatprep.subr.bf16.mxu1 %v7010_v7  ;;  %v6871_v20 = vpack.c.bf16 %v5386_v39, %v5385_v58  ;;  %v5397_v25 = vld [vmem:[%s9018_s2 + $0x68] sm:$0xff]  ;;  %v3258_v18 = vld [vmem:[%s8987_s11 + $0x10] sm:$0xff]  ;;  %v5418_v58 = vld [vmem:[%s8987_s11 + $0x40] sm:$0xff] }
 0x7b0   : > { %v2644_v29 = vadd.f32 %v8184_v36, %v2632_v60  ;;  %v2658_v15 = vsel %vm2648_vm8, %v2643_v57, %v2653_v28  ;;  %v5417_v57 = vld [vmem:[%s8987_s11 + $0x38] sm:$0xff]  ;;  %v3257_v28 = vld [vmem:[%s8987_s11 + $0x8] sm:$0xff] }
 0x7b1   : > { %2664 = vst.msk [vmem:[%s8201_s28 + $0x18] sm:$0xff] %vm2660_vm5, %v2658_v15  ;;  %6083 = vmatmul.mubr.msk.f32.gmra.mrb[66].mxu0 %vm2660_vm5, %v2658_v15  ;;  %6122 = vmatmul.mubr.msk.f32.gmra.mrb[86].mxu1 %vm2660_vm5, %v2658_v15  ;;  %v6892_v27 = vpack.c.bf16 %v5417_v57, %v5416_v10 }
 0x7b2   : > { %v2654_v61 = vmul.f32 0.1, %v2644_v29  ;;  %6869 = vmatpush3.bf16.msra.mxu1 %v6868_v52  ;;  %6085 = vmatprep.mubr.msk.f32.mxu0 %vm7011_vm0, %v7012_v4  ;;  %vm2649_vm9 = vcmp.gt.f32.partialorder %v2644_v29, 0.0  ;;  %v3259_v52 = vld [vmem:[%s8987_s11 + $0x18] sm:$0xff] }
 0x7b3   : > { %6124 = vmatprep.mubr.msk.f32.mxu1 %vm7011_vm0, %v7012_v4  ;;  %6870 = vmatprep.subr.bf16.mxu1 %v7010_v7  ;;  %v6886_v39 = vpack.c.bf16 %v3259_v52, %v3258_v18 }
 0x7b4   : > { %v2659_v32 = vsel %vm2649_vm9, %v2644_v29, %v2654_v61  ;;  %v5419_v29 = vld [vmem:[%s8987_s11 + $0x48] sm:$0xff]  ;;  %v3260_v61 = vld [vmem:[%s8987_s11 + $0x20] sm:$0xff] }
 0x7b5   : > { %2666 = vst.msk [vmem:[%s8201_s28 + $0x20] sm:$0x1] %vm2665_vm10, %v2659_v32  ;;  %6086 = vmatmul.mubr.msk.f32.gmra.mrb[68].mxu0 %vm2660_vm5, %v2659_v32  ;;  %6125 = vmatmul.mubr.msk.f32.gmra.mrb[88].mxu1 %vm2660_vm5, %v2659_v32  ;;  %vm3826_vm10 = vcmask 188416  }
 0x7b6   : > { %6872 = vmatpush3.bf16.msra.mxu1 %v6871_v20  ;;  %6176 = vmatprep.mubr.msk.f32.mxu1 %vm7011_vm0, %v7012_v4  ;;  %v3261_v20 = vld [vmem:[%s8987_s11 + $0x28] sm:$0xff] }
 0x7b7   : > { %6873 = vmatprep.subr.bf16.mxu1 %v7010_v7  ;;  %6137 = vmatprep.mubr.msk.f32.mxu0 %vm7011_vm0, %v7012_v4  ;;  %v6889_v30 = vpack.c.bf16 %v3261_v20, %v3260_v61 }
 0x7ba   : > { %6875 = vmatpush3.bf16.msra.mxu1 %v6874_v34 }
 0x7bb   : > { %6882 = vmatprep.subr.bf16.mxu1 %v7010_v7 }
 0x7bd   : > { %6177 = vmatmul.mubr.msk.f32.vlgmr.msra.gmra.mrb[90].mxu1 %vm2660_vm5, %v8210_v12 }
 0x7be   : > { %6179 = vmatprep.mubr.msk.f32.mxu1 %vm7011_vm0, %v7012_v4 }
 0x7c1   : > { %6180 = vmatmul.mubr.msk.f32.gmra.mrb[92].mxu1 %vm2660_vm5, %v2656_v23 }
 0x7c2   : > { %6182 = vmatprep.mubr.msk.f32.mxu1 %vm7011_vm0, %v7012_v4 }
 0x7c5   : > { %6183 = vmatmul.mubr.msk.f32.gmra.mrb[94].mxu1 %vm2660_vm5, %v2657_v17  ;;  %v3256_v17 = vld [vmem:[%s8987_s11] sm:$0xff] }
 0x7c6   : > { %6185 = vmatprep.mubr.msk.f32.mxu1 %vm7011_vm0, %v7012_v4  ;;  %v6883_v60 = vpack.c.bf16 %v3257_v28, %v3256_v17 }
 0x7c8   : > { %6884 = vmatpush3.bf16.msra.mxu1 %v6883_v60 }
 0x7c9   : > { %6186 = vmatmul.mubr.msk.f32.gmra.mrb[96].mxu1 %vm2660_vm5, %v2658_v15  ;;  %6885 = vmatprep.subr.bf16.mxu1 %v7010_v7  ;;  %v6895_v15 = vpack.c.bf16 %v5419_v29, %v5418_v58 }
 0x7ca   : > { %6188 = vmatprep.mubr.msk.f32.mxu1 %vm7011_vm0, %v7012_v4 }
 0x7cc   : > { %6887 = vmatpush3.bf16.msra.mxu1 %v6886_v39 }
 0x7cd   : > { %6189 = vmatmul.mubr.msk.f32.gmra.mrb[98].mxu1 %vm2660_vm5, %v2659_v32  ;;  %6888 = vmatprep.subr.bf16.mxu1 %v7010_v7  ;;  %v5421_v32 = vld [vmem:[%s8987_s11 + $0x58] sm:$0xff] }
 0x7ce   : > { %6228 = vmatprep.mubr.msk.f32.mxu1 %vm7011_vm0, %v7012_v4  ;;  %v6898_v34 = vpack.c.bf16 %v5421_v32, %v5420_v0 }
 0x7d0   : > { %6890 = vmatpush3.bf16.msra.mxu1 %v6889_v30 }
 0x7d1   : > { %6900 = vmatprep.subr.bf16.mxu1 %v7010_v7 }
 0x878   : > { %v2760_v35 = vpop.f32.mrb[60].mxu0  ;;  %v8307_v38 = vpop.f32.mrb[80].mxu1 }
 0x879   : > { %v6075_v40 = vpop.f32.mrb[61].mxu0  ;;  %v6114_v41 = vpop.f32.mrb[81].mxu1 }
 0x87c   : > { %v2765_v42 = vpop.f32.mrb[62].mxu0  ;;  %v8309_v44 = vpop.f32.mrb[82].mxu1 }
 0x87d   : > { %v6853_v45 = vpack.c.bf16 %v2765_v42, %v2760_v35  ;;  %v6078_v11 = vpop.f32.mrb[63].mxu0  ;;  %v6117_v16 = vpop.f32.mrb[83].mxu1 }
 0x87f   : > { %6854 = vmatpush3.bf16.msra.mxu0 %v6853_v45 }
 0x880   : > { %v2770_v26 = vpop.f32.mrb[64].mxu0  ;;  %v8311_v55 = vpop.f32.mrb[84].mxu1  ;;  %6855 = vmatprep.subr.bf16.mxu0 %v7010_v7 }
 0x881   : > { %v6081_v19 = vpop.f32.mrb[65].mxu0  ;;  %v6120_v31 = vpop.f32.mrb[85].mxu1 }
 0x884   : > { %v2775_v33 = vpop.f32.mrb[66].mxu0  ;;  %v8314_v36 = vpop.f32.mrb[86].mxu1 }
 0x885   : > { %v6856_v37 = vpack.c.bf16 %v2775_v33, %v2770_v26  ;;  %v6084_v46 = vpop.f32.mrb[67].mxu0  ;;  %v6123_v47 = vpop.f32.mrb[87].mxu1 }
 0x887   : > { %6857 = vmatpush3.bf16.msra.mxu0 %v6856_v37 }
 0x888   : > { %v2780_v49 = vpop.f32.mrb[68].mxu0  ;;  %v8316_v50 = vpop.f32.mrb[88].mxu1  ;;  %6135 = vmatprep.subr.mxu0 %v7012_v4 }
 0x889   : > { %v6087_v59 = vpop.f32.mrb[69].mxu0  ;;  %v6126_v62 = vpop.f32.mrb[89].mxu1 }
 0x88b   : > { %6136 = vmatpush3.msk.msra.mxu0 %vm1108_vm2, %v2780_v49 }
 0x88c   : > { %6138 = vmatmul.mubr.msk.f32.vlgmr.msra.gmra.mrb[70].mxu0 %vm1092_vm3, %v5349_v53  ;;  %6876 = vmatprep.subr.bf16.mxu0 %v7010_v7 }
 0x88d   : > { %6140 = vmatprep.mubr.msk.f32.mxu0 %vm7011_vm0, %v7012_v4 }
 0x890   : > { %v3080_v3 = vpop.f32.mrb[90].mxu1  ;;  %6141 = vmatmul.mubr.msk.f32.gmra.mrb[72].mxu0 %vm1092_vm3, %v5350_v2 }
 0x891   : > { %v6178_v8 = vpop.f32.mrb[91].mxu1  ;;  %6143 = vmatprep.mubr.msk.f32.mxu0 %vm7011_vm0, %v7012_v4 }
 0x894   : > { %v3085_v12 = vpop.f32.mrb[92].mxu1  ;;  %6144 = vmatmul.mubr.msk.f32.gmra.mrb[74].mxu0 %vm1092_vm3, %v5351_v9 }
 0x895   : > { %v6877_v13 = vpack.c.bf16 %v3085_v12, %v3080_v3  ;;  %v6181_v14 = vpop.f32.mrb[93].mxu1  ;;  %6146 = vmatprep.mubr.msk.f32.mxu0 %vm7011_vm0, %v7012_v4 }
 0x896   : > { %v5435_v14 = vld [vmem:[%s8987_s11 + $0x70] sm:$0xff] }
 0x897   : > { %6878 = vmatpush3.bf16.msra.mxu0 %v6877_v13 }
 0x898   : > { %v3090_v21 = vpop.f32.mrb[94].mxu1  ;;  %6147 = vmatmul.mubr.msk.f32.gmra.mrb[76].mxu0 %vm1092_vm3, %v5352_v1  ;;  %6879 = vmatprep.subr.bf16.mxu0 %v7010_v7  ;;  %v5436_v1 = vld [vmem:[%s8987_s11 + $0x78] sm:$0xff] }
 0x899   : > { %v6184_v22 = vpop.f32.mrb[95].mxu1  ;;  %6149 = vmatprep.mubr.msk.f32.mxu0 %vm7011_vm0, %v7012_v4 }
 0x89c   : > { %v3095_v51 = vpop.f32.mrb[96].mxu1  ;;  %6150 = vmatmul.mubr.msk.f32.gmra.mrb[78].mxu0 %vm1092_vm3, %v5353_v43 }
 0x89d   : > { %v6880_v5 = vpack.c.bf16 %v3095_v51, %v3090_v21  ;;  %v6187_v63 = vpop.f32.mrb[97].mxu1  ;;  %6201 = vmatprep.mubr.msk.f32.mxu0 %vm7011_vm0, %v7012_v4 }
 0x89f   : > { %6881 = vmatpush3.bf16.msra.mxu0 %v6880_v5  ;;  %v6910_v5 = vpack.c.bf16 %v5436_v1, %v5435_v14  ;;  %v5415_v14 = vld [vmem:[%s9018_s2 + $0xe8] sm:$0x1] }
 0x8a0   : > { %v3100_v23 = vpop.f32.mrb[98].mxu1  ;;  %6199 = vmatprep.subr.mxu0 %v7012_v4 }
 0x8a1   : > { %v6190_v48 = vpop.f32.mrb[99].mxu1 }
 0x8a2   : > { %v5437_v48 = vld [vmem:[%s8987_s11 + $0x80] sm:$0xff] }
 0x8a3   : > { %6200 = vmatpush3.msk.msra.mxu0 %vm1108_vm2, %v3100_v23 }
 0x8a4   : > { %6202 = vmatmul.mubr.msk.f32.vlgmr.msra.gmra.mrb[80].mxu0 %vm1092_vm3, %v5394_v54  ;;  %6891 = vmatprep.subr.bf16.mxu0 %v7010_v7  ;;  %v5438_v54 = vld [vmem:[%s8987_s11 + $0x88] sm:$0xff] }
 0x8a5   : > { %6204 = vmatprep.mubr.msk.f32.mxu0 %vm7011_vm0, %v7012_v4  ;;  %6893 = vmatpush3.bf16.msra.mxu0 %v6892_v27  ;;  %v6913_v10 = vpack.c.bf16 %v5438_v54, %v5437_v48  ;;  %v5467_v48 = vld [vmem:[%s8989_s13 + $0x20] sm:$0xff] }
 0x8a6   : > { %6894 = vmatprep.subr.bf16.mxu0 %v7010_v7  ;;  %v3828_v54 = vld [vmem:[%s8989_s13] sm:$0xff] }
 0x8a8   : > { %6205 = vmatmul.mubr.msk.f32.gmra.mrb[82].mxu0 %vm1092_vm3, %v5395_v24 }
 0x8a9   : > { %6207 = vmatprep.mubr.msk.f32.mxu0 %vm7011_vm0, %v7012_v4  ;;  %6896 = vmatpush3.bf16.msra.mxu0 %v6895_v15 }
 0x8aa   : > { %6897 = vmatprep.subr.bf16.mxu0 %v7010_v7 }
 0x8ac   : > { %6208 = vmatmul.mubr.msk.f32.gmra.mrb[84].mxu0 %vm1092_vm3, %v5396_v56 }
 0x8ad   : > { %6210 = vmatprep.mubr.msk.f32.mxu0 %vm7011_vm0, %v7012_v4  ;;  %6899 = vmatpush3.bf16.msra.mxu0 %v6898_v34 }
 0x8ae   : > { %6906 = vmatprep.subr.bf16.mxu0 %v7010_v7 }
 0x8b0   : > { %6211 = vmatmul.mubr.msk.f32.gmra.mrb[86].mxu0 %vm1092_vm3, %v5397_v25 }
 0x8b1   : > { %6213 = vmatprep.mubr.msk.f32.mxu0 %vm7011_vm0, %v7012_v4 }
 0x8b4   : > { %6214 = vmatmul.mubr.msk.f32.gmra.mrb[88].mxu0 %vm1092_vm3, %v5398_v6 }
 0x8b5   : > { %6255 = vmatprep.mubr.msk.f32.mxu0 %vm7011_vm0, %v7012_v4 }
 0x95f   : > { %v2977_v35 = vpop.f32.mrb[70].mxu0 }
 0x960   : > { %v2978_v40 = vadd.f32 %v2977_v35, %v8307_v38  ;;  %v6139_v41 = vpop.f32.mrb[71].mxu0  ;;  %v5405_v38 = vld [vmem:[%s8986_s10] ss:$0 sm:$0xff] }
 0x963   : > { %v2982_v42 = vpop.f32.mrb[72].mxu0 }
 0x964   : > { %v2983_v45 = vadd.f32 %v2982_v42, %v8309_v44  ;;  %v6142_v11 = vpop.f32.mrb[73].mxu0 }
 0x967   : > { %v2987_v16 = vpop.f32.mrb[74].mxu0 }
 0x968   : > { %v2988_v26 = vadd.f32 %v2987_v16, %v8311_v55  ;;  %v6145_v19 = vpop.f32.mrb[75].mxu0  ;;  %v5433_v55 = vld [vmem:[%s8987_s11 + $0x60] sm:$0xff] }
 0x96b   : > { %v2992_v31 = vpop.f32.mrb[76].mxu0 }
 0x96c   : > { %v2993_v33 = vadd.f32 %v2992_v31, %v8314_v36  ;;  %v6148_v37 = vpop.f32.mrb[77].mxu0  ;;  %v5434_v36 = vld [vmem:[%s8987_s11 + $0x68] sm:$0xff] }
 0x96d   : > { %v6907_v9 = vpack.c.bf16 %v5434_v36, %v5433_v55 }
 0x96f   : > { %v2997_v46 = vpop.f32.mrb[78].mxu0 }
 0x970   : > { %v2998_v47 = vadd.f32 %v2997_v46, %v8316_v50  ;;  %v6151_v49 = vpop.f32.mrb[79].mxu0 }
 0x977   : > { %v3194_v59 = vpop.f32.mrb[80].mxu0 }
 0x978   : > { %v3218_v44 = vadd.f32 %v3194_v59, %v2978_v40  ;;  %v6203_v62 = vpop.f32.mrb[81].mxu0  ;;  %v5411_v59 = vld [vmem:[%s9018_s2 + $0xc8] sm:$0xff] }
 0x979   : > { %v5412_v62 = vld [vmem:[%s9018_s2 + $0xd0] sm:$0xff] }
 0x97a   : > { %v3230_v53 = vadd.f32 %v5405_v38, %v3218_v44 }
 0x97b   : > { %v3199_v2 = vpop.f32.mrb[82].mxu0 }
 0x97c   : > { %vm3235_vm11 = vcmp.gt.f32.partialorder %v3230_v53, 0.0  ;;  %v3240_v50 = vmul.f32 0.1, %v3230_v53  ;;  %v3219_v3 = vadd.f32 %v3199_v2, %v2983_v45  ;;  %v6206_v8 = vpop.f32.mrb[83].mxu0  ;;  %v5413_v2 = vld [vmem:[%s9018_s2 + $0xd8] sm:$0xff] }
 0x97d   : > { %v5414_v8 = vld [vmem:[%s9018_s2 + $0xe0] sm:$0xff] }
 0x97e   : > { %v8447_v12 = vsel %vm3235_vm11, %v3230_v53, %v3240_v50  ;;  %v3231_v13 = vadd.f32 %v5405_v38, %v3219_v3 }
 0x97f   : > { %3250 = vst.msk [vmem:[%s8445_s29] sm:$0xff] %vm883_vm1, %v8447_v12  ;;  %v3204_v21 = vpop.f32.mrb[84].mxu0  ;;  %6229 = vmatmul.mubr.msk.f32.vlgmr.msra.gmra.mrb[100].mxu1 %vm883_vm1, %v8447_v12  ;;  %6256 = vmatmul.mubr.msk.f32.vlgmr.msra.gmra.mrb[90].mxu0 %vm883_vm1, %v8447_v12 }
 0x980   : > { %v3241_v22 = vmul.f32 0.1, %v3231_v13  ;;  %v3220_v43 = vadd.f32 %v3204_v21, %v2988_v26  ;;  %v6209_v51 = vpop.f32.mrb[85].mxu0  ;;  %6231 = vmatprep.mubr.msk.f32.mxu1 %vm7011_vm0, %v7012_v4  ;;  %6258 = vmatprep.mubr.msk.f32.mxu0 %vm7011_vm0, %v7012_v4  ;;  %vm3236_vm12 = vcmp.gt.f32.partialorder %v3231_v13, 0.0 }
 0x981   : > { %6908 = vmatpush3.bf16.msra.mxu0 %v6907_v9  ;;  %v5446_v51 = vld [vmem:[%s9018_s2 + $0xb0] sm:$0xff] }
 0x982   : > { %v3232_v63 = vadd.f32 %v5405_v38, %v3220_v43  ;;  %v3246_v23 = vsel %vm3236_vm12, %v3231_v13, %v3241_v22  ;;  %6909 = vmatprep.subr.bf16.mxu0 %v7010_v7  ;;  %v5444_v22 = vld [vmem:[%s9018_s2 + $0xa0] sm:$0xff]  ;;  %v5445_v43 = vld [vmem:[%s9018_s2 + $0xa8] sm:$0xff] }
 0x983   : > { %v3209_v24 = vpop.f32.mrb[86].mxu0  ;;  %3251 = vst.msk [vmem:[%s8445_s29 + $0x8] sm:$0xff] %vm883_vm1, %v3246_v23  ;;  %6232 = vmatmul.mubr.msk.f32.gmra.mrb[102].mxu1 %vm883_vm1, %v3246_v23  ;;  %6259 = vmatmul.mubr.msk.f32.gmra.mrb[92].mxu0 %vm883_vm1, %v3246_v23 }
 0x984   : > { %v3242_v56 = vmul.f32 0.1, %v3232_v63  ;;  %v3221_v25 = vadd.f32 %v3209_v24, %v2993_v33  ;;  %v6212_v6 = vpop.f32.mrb[87].mxu0  ;;  %6234 = vmatprep.mubr.msk.f32.mxu1 %vm7011_vm0, %v7012_v4  ;;  %6261 = vmatprep.mubr.msk.f32.mxu0 %vm7011_vm0, %v7012_v4  ;;  %vm3237_vm13 = vcmp.gt.f32.partialorder %v3232_v63, 0.0 }
 0x985   : > { %6911 = vmatpush3.bf16.msra.mxu0 %v6910_v5  ;;  %v5447_v5 = vld [vmem:[%s9018_s2 + $0xb8] sm:$0xff]  ;;  %v3830_v6 = vld [vmem:[%s8989_s13 + $0x10] sm:$0xff] }
 0x986   : > { %v3233_v57 = vadd.f32 %v5405_v38, %v3221_v25  ;;  %v3247_v17 = vsel %vm3237_vm13, %v3232_v63, %v3242_v56  ;;  %6912 = vmatprep.subr.bf16.mxu0 %v7010_v7  ;;  %v5448_v63 = vld [vmem:[%s9018_s2 + $0xc0] sm:$0x1]  ;;  %v3829_v56 = vld [vmem:[%s8989_s13 + $0x8] sm:$0xff] }
 0x987   : > { %v3214_v27 = vpop.f32.mrb[88].mxu0  ;;  %3252 = vst.msk [vmem:[%s8445_s29 + $0x10] sm:$0xff] %vm883_vm1, %v3247_v17  ;;  %6235 = vmatmul.mubr.msk.f32.gmra.mrb[104].mxu1 %vm883_vm1, %v3247_v17  ;;  %6262 = vmatmul.mubr.msk.f32.gmra.mrb[94].mxu0 %vm883_vm1, %v3247_v17  ;;  %v6922_v25 = vpack.c.bf16 %v3829_v56, %v3828_v54 }
 0x988   : > { %v3243_v28 = vmul.f32 0.1, %v3233_v57  ;;  %v3222_v60 = vadd.f32 %v3214_v27, %v2998_v47  ;;  %v6215_v18 = vpop.f32.mrb[89].mxu0  ;;  %6237 = vmatprep.mubr.msk.f32.mxu1 %vm7011_vm0, %v7012_v4  ;;  %6264 = vmatprep.mubr.msk.f32.mxu0 %vm7011_vm0, %v7012_v4  ;;  %vm3238_vm14 = vcmp.gt.f32.partialorder %v3233_v57, 0.0 }
 0x989   : > { %6914 = vmatpush3.bf16.msra.mxu0 %v6913_v10  ;;  %v5468_v10 = vld [vmem:[%s8989_s13 + $0x28] sm:$0xff] }
 0x98a   : > { %v3234_v52 = vadd.f32 %v5405_v38, %v3222_v60  ;;  %v3248_v58 = vsel %vm3238_vm14, %v3233_v57, %v3243_v28  ;;  %6915 = vmatprep.subr.bf16.mxu0 %v7010_v7 }
 0x98b   : > { %3253 = vst.msk [vmem:[%s8445_s29 + $0x18] sm:$0xff] %vm883_vm1, %v3248_v58  ;;  %6238 = vmatmul.mubr.msk.f32.gmra.mrb[106].mxu1 %vm883_vm1, %v3248_v58  ;;  %6265 = vmatmul.mubr.msk.f32.gmra.mrb[96].mxu0 %vm883_vm1, %v3248_v58 }
 0x98c   : > { %v3244_v39 = vmul.f32 0.1, %v3234_v52  ;;  %6240 = vmatprep.mubr.msk.f32.mxu1 %vm7011_vm0, %v7012_v4  ;;  %6267 = vmatprep.mubr.msk.f32.mxu0 %vm7011_vm0, %v7012_v4  ;;  %vm3239_vm15 = vcmp.gt.f32.partialorder %v3234_v52, 0.0 }
 0x98e   : > { %v3249_v29 = vsel %vm3239_vm15, %v3234_v52, %v3244_v39 }
 0x98f   : > { %3255 = vst.msk [vmem:[%s8445_s29 + $0x20] sm:$0x1] %vm3254_vm4, %v3249_v29  ;;  %6241 = vmatmul.mubr.msk.f32.gmra.mrb[108].mxu1 %vm883_vm1, %v3249_v29  ;;  %6268 = vmatmul.mubr.msk.f32.gmra.mrb[98].mxu0 %vm883_vm1, %v3249_v29 }
 0x990   : > { %6307 = vmatprep.mubr.msk.f32.mxu0 %vm7011_vm0, %v7012_v4  ;;  %6280 = vmatprep.mubr.msk.f32.mxu1 %vm7011_vm0, %v7012_v4 }
 0x993   : > { %6308 = vmatmul.mubr.msk.f32.vlgmr.msra.gmra.mrb[100].mxu0 %vm883_vm1, %v8447_v12 }
 0x994   : > { %6310 = vmatprep.mubr.msk.f32.mxu0 %vm7011_vm0, %v7012_v4 }
 0x997   : > { %6311 = vmatmul.mubr.msk.f32.gmra.mrb[102].mxu0 %vm883_vm1, %v3246_v23  ;;  %v5466_v23 = vld [vmem:[%s8989_s13 + $0x18] sm:$0xff] }
 0x998   : > { %6313 = vmatprep.mubr.msk.f32.mxu0 %vm7011_vm0, %v7012_v4  ;;  %v6925_v24 = vpack.c.bf16 %v5467_v48, %v5466_v23 }
 0x99b   : > { %6314 = vmatmul.mubr.msk.f32.gmra.mrb[104].mxu0 %vm883_vm1, %v3247_v17 }
 0x99c   : > { %6316 = vmatprep.mubr.msk.f32.mxu0 %vm7011_vm0, %v7012_v4 }
 0x99f   : > { %6317 = vmatmul.mubr.msk.f32.gmra.mrb[106].mxu0 %vm883_vm1, %v3248_v58 }
 0x9a0   : > { %6319 = vmatprep.mubr.msk.f32.mxu0 %vm7011_vm0, %v7012_v4 }
 0x9a3   : > { %6320 = vmatmul.mubr.msk.f32.gmra.mrb[108].mxu0 %vm883_vm1, %v3249_v29  ;;  %vm3821_vm1 = vcmask 195584  }
 0x9a4   : > { %6332 = vmatprep.mubr.msk.f32.mxu0 %vm7011_vm0, %v7012_v4 }
 0xa52   : > { %v3343_v15 = vpop.f32.mrb[100].mxu1  ;;  %v8522_v61 = vpop.f32.mrb[90].mxu0 }
 0xa53   : > { %v6230_v20 = vpop.f32.mrb[101].mxu1  ;;  %v6257_v0 = vpop.f32.mrb[91].mxu0 }
 0xa56   : > { %v3348_v30 = vpop.f32.mrb[102].mxu1  ;;  %v8524_v32 = vpop.f32.mrb[92].mxu0 }
 0xa57   : > { %v6901_v34 = vpack.c.bf16 %v3348_v30, %v3343_v15  ;;  %v6233_v35 = vpop.f32.mrb[103].mxu1  ;;  %v6260_v40 = vpop.f32.mrb[93].mxu0 }
 0xa59   : > { %6902 = vmatpush3.bf16.msra.mxu1 %v6901_v34 }
 0xa5a   : > { %v3353_v41 = vpop.f32.mrb[104].mxu1  ;;  %v8526_v42 = vpop.f32.mrb[94].mxu0  ;;  %6903 = vmatprep.subr.bf16.mxu1 %v7010_v7 }
 0xa5b   : > { %v6236_v45 = vpop.f32.mrb[105].mxu1  ;;  %v6263_v11 = vpop.f32.mrb[95].mxu0 }
 0xa5e   : > { %v3358_v16 = vpop.f32.mrb[106].mxu1  ;;  %v8529_v26 = vpop.f32.mrb[96].mxu0 }
 0xa5f   : > { %v6904_v19 = vpack.c.bf16 %v3358_v16, %v3353_v41  ;;  %v6239_v31 = vpop.f32.mrb[107].mxu1  ;;  %v6266_v33 = vpop.f32.mrb[97].mxu0 }
 0xa61   : > { %6905 = vmatpush3.bf16.msra.mxu1 %v6904_v19  ;;  %v5481_v19 = vld [vmem:[%s8989_s13 + $0x38] sm:$0xff] }
 0xa62   : > { %v3363_v37 = vpop.f32.mrb[108].mxu1  ;;  %v8531_v46 = vpop.f32.mrb[98].mxu0  ;;  %6278 = vmatprep.subr.mxu1 %v7012_v4 }
 0xa63   : > { %v6242_v47 = vpop.f32.mrb[109].mxu1  ;;  %v6269_v49 = vpop.f32.mrb[99].mxu0 }
 0xa65   : > { %6279 = vmatpush3.msk.msra.mxu1 %vm1108_vm2, %v3363_v37 }
 0xa66   : > { %6281 = vmatmul.mubr.msk.f32.vlgmr.msra.gmra.mrb[110].mxu1 %vm1092_vm3, %v5411_v59  ;;  %v3651_v38 = vpop.f32.mrb[100].mxu0  ;;  %6963 = vmatprep.subr.bf16.mxu1 %v7010_v7 }
 0xa67   : > { %v6309_v44 = vpop.f32.mrb[101].mxu0  ;;  %6283 = vmatprep.mubr.msk.f32.mxu1 %vm7011_vm0, %v7012_v4 }
 0xa6a   : > { %6284 = vmatmul.mubr.msk.f32.gmra.mrb[112].mxu1 %vm1092_vm3, %v5412_v62  ;;  %v3656_v53 = vpop.f32.mrb[102].mxu0 }
 0xa6b   : > { %v6916_v55 = vpack.c.bf16 %v3656_v53, %v3651_v38  ;;  %v6312_v36 = vpop.f32.mrb[103].mxu0  ;;  %6286 = vmatprep.mubr.msk.f32.mxu1 %vm7011_vm0, %v7012_v4 }
 0xa6d   : > { %6917 = vmatpush3.bf16.msra.mxu0 %v6916_v55  ;;  %6966 = vmatpush3.bf16.msra.mxu1 %v6916_v55 }
 0xa6e   : > { %6287 = vmatmul.mubr.msk.f32.gmra.mrb[114].mxu1 %vm1092_vm3, %v5413_v2  ;;  %v3661_v50 = vpop.f32.mrb[104].mxu0  ;;  %6918 = vmatprep.subr.bf16.mxu0 %v7010_v7 }
 0xa6f   : > { %v6315_v3 = vpop.f32.mrb[105].mxu0  ;;  %6289 = vmatprep.mubr.msk.f32.mxu1 %vm7011_vm0, %v7012_v4  ;;  %6964 = vmatprep.subr.bf16.mxu1 %v7010_v7 }
 0xa70   : > { %v5482_v3 = vld [vmem:[%s8989_s13 + $0x40] sm:$0xff] }
 0xa72   : > { %6290 = vmatmul.mubr.msk.f32.gmra.mrb[116].mxu1 %vm1092_vm3, %v5414_v8  ;;  %v3666_v9 = vpop.f32.mrb[106].mxu0 }
 0xa73   : > { %v6919_v12 = vpack.c.bf16 %v3666_v9, %v3661_v50  ;;  %v6318_v13 = vpop.f32.mrb[107].mxu0  ;;  %6292 = vmatprep.mubr.msk.f32.mxu1 %vm7011_vm0, %v7012_v4 }
 0xa75   : > { %6920 = vmatpush3.bf16.msra.mxu0 %v6919_v12  ;;  %6967 = vmatpush3.bf16.msra.mxu1 %v6919_v12 }
 0xa76   : > { %6293 = vmatmul.mubr.msk.f32.gmra.mrb[118].mxu1 %vm1092_vm3, %v5415_v14  ;;  %v3671_v1 = vpop.f32.mrb[108].mxu0  ;;  %6330 = vmatprep.subr.mxu0 %v7012_v4 }
 0xa77   : > { %v6321_v21 = vpop.f32.mrb[109].mxu0  ;;  %6965 = vmatprep.subr.mxu1 %v7012_v4  ;;  %6335 = vmatprep.mubr.msk.f32.mxu1 %vm7011_vm0, %v7012_v4 }
 0xa79   : > { %6331 = vmatpush3.msk.msra.mxu0 %vm1108_vm2, %v3671_v1  ;;  %6968 = vmatpush3.msk.msra.mxu1 %vm1108_vm2, %v3671_v1 }
 0xa7a   : > { %6333 = vmatmul.mubr.msk.f32.vlgmr.msra.gmra.mrb[110].mxu0 %vm1092_vm3, %v5444_v22  ;;  %6336 = vmatmul.mubr.msk.f32.vlgmr.msra.gmra.mrb[120].mxu1 %vm1092_vm3, %v5445_v43 }
 0xa7b   : > { %6338 = vmatprep.mubr.msk.f32.mxu1 %vm7011_vm0, %v7012_v4  ;;  %6924 = vmatprep.subr.bf16.mxu1 %v7010_v7 }
 0xa7c   : > { %6921 = vmatprep.subr.bf16.mxu0 %v7010_v7  ;;  %6353 = vmatprep.mubr.msk.f32.mxu0 %vm7011_vm0, %v7012_v4 }
 0xa7d   : > { %6926 = vmatpush3.bf16.msra.mxu1 %v6925_v24  ;;  %6923 = vmatpush3.bf16.msra.mxu0 %v6922_v25 }
 0xa7e   : > { %6339 = vmatmul.mubr.msk.f32.gmra.mrb[122].mxu1 %vm1092_vm3, %v5446_v51  ;;  %6372 = vmatprep.subr.mxu1 %v7012_v4 }
 0xa7f   : > { %6341 = vmatprep.mubr.msk.f32.mxu1 %vm7011_vm0, %v7012_v4  ;;  %6351 = vmatprep.subr.mxu0 %v7012_v4 }
 0xa81   : > { %6373 = vmatpush3.msra.mxu1 %v5468_v10  ;;  %6352 = vmatpush3.msra.mxu0 %v3830_v6 }
 0xa82   : > { %6342 = vmatmul.mubr.msk.f32.gmra.mrb[124].mxu1 %vm1092_vm3, %v5447_v5  ;;  %6933 = vmatprep.subr.bf16.mxu1 %v7010_v7 }
 0xa83   : > { %6344 = vmatprep.mubr.msk.f32.mxu1 %vm7011_vm0, %v7012_v4  ;;  %6927 = vmatprep.subr.bf16.mxu0 %v7010_v7 }
 0xa86   : > { %6345 = vmatmul.mubr.msk.f32.gmra.mrb[126].mxu1 %vm1092_vm3, %v5448_v63 }
 0xa87   : > { %6374 = vmatprep.mubr.msk.f32.mxu1 %vm7011_vm0, %v7012_v4 }
 0xb39   : > { %v3554_v57 = vpop.f32.mrb[110].mxu1 }
 0xb3a   : > { %v3555_v17 = vadd.f32 %v3554_v57, %v8522_v61  ;;  %v6282_v27 = vpop.f32.mrb[111].mxu1  ;;  %v5455_v61 = vld [vmem:[%s8988_s12] ss:$0 sm:$0xff] }
 0xb3d   : > { %v3559_v28 = vpop.f32.mrb[112].mxu1 }
 0xb3e   : > { %v3560_v60 = vadd.f32 %v3559_v28, %v8524_v32  ;;  %v6285_v18 = vpop.f32.mrb[113].mxu1 }
 0xb41   : > { %v3564_v52 = vpop.f32.mrb[114].mxu1 }
 0xb42   : > { %v3565_v58 = vadd.f32 %v3564_v52, %v8526_v42  ;;  %v6288_v39 = vpop.f32.mrb[115].mxu1 }
 0xb45   : > { %v3569_v29 = vpop.f32.mrb[116].mxu1 }
 0xb46   : > { %v3570_v15 = vadd.f32 %v3569_v29, %v8529_v26  ;;  %v6291_v20 = vpop.f32.mrb[117].mxu1  ;;  %v5480_v26 = vld [vmem:[%s8989_s13 + $0x30] sm:$0xff] }
 0xb47   : > { %v6934_v49 = vpack.c.bf16 %v5481_v19, %v5480_v26  ;;  %v5465_v26 = vld [vmem:[%s9018_s2 + $0x48] sm:$0x1] }
 0xb49   : > { %v3574_v0 = vpop.f32.mrb[118].mxu1 }
 0xb4a   : > { %v3575_v30 = vadd.f32 %v3574_v0, %v8531_v46  ;;  %v6294_v34 = vpop.f32.mrb[119].mxu1 }
 0xb4d   : > { %v3765_v35 = vpop.f32.mrb[110].mxu0  ;;  %v3770_v40 = vpop.f32.mrb[120].mxu1 }
 0xb4e   : > { %v3789_v32 = vadd.f32 %v3765_v35, %v3555_v17  ;;  %v3790_v41 = vadd.f32 %v3770_v40, %v3560_v60  ;;  %v6334_v45 = vpop.f32.mrb[111].mxu0  ;;  %v6337_v42 = vpop.f32.mrb[121].mxu1  ;;  %v8741_v40 = vld [vmem:[%s9018_s2 + $0x38] sm:$0xff] }
 0xb4f   : > { %v8751_v45 = vld [vmem:[%s9018_s2 + $0x40] sm:$0xff] }
 0xb50   : > { %v3801_v11 = vadd.f32 %v5455_v61, %v3789_v32  ;;  %v3802_v16 = vadd.f32 %v5455_v61, %v3790_v41 }
 0xb51   : > { %v3775_v31 = vpop.f32.mrb[122].mxu1 }
 0xb52   : > { %vm3806_vm5 = vcmp.gt.f32.partialorder %v3801_v11, 0.0  ;;  %v3811_v33 = vmul.f32 0.1, %v3801_v11  ;;  %v3812_v37 = vmul.f32 0.1, %v3802_v16  ;;  %v3791_v46 = vadd.f32 %v3775_v31, %v3565_v58  ;;  %v6340_v47 = vpop.f32.mrb[123].mxu1 }
 0xb53   : > { %vm3807_vm6 = vcmp.gt.f32.partialorder %v3802_v16, 0.0  ;;  %v8796_v47 = vld [vmem:[%s9018_s2 + $0x18] sm:$0xff] }
 0xb54   : > { %v3803_v59 = vadd.f32 %v5455_v61, %v3791_v46  ;;  %v3816_v38 = vsel %vm3806_vm5, %v3801_v11, %v3811_v33  ;;  %v3817_v44 = vsel %vm3807_vm6, %v3802_v16, %v3812_v37  ;;  %v8767_v33 = vld [vmem:[%s9018_s2] sm:$0xff]  ;;  %v8778_v37 = vld [vmem:[%s9018_s2 + $0x8] sm:$0xff]  ;;  %v8787_v46 = vld [vmem:[%s9018_s2 + $0x10] sm:$0xff] }
 0xb55   : > { %v3780_v62 = vpop.f32.mrb[124].mxu1  ;;  %3822 = vst.msk [vmem:[%s8644_s0] sm:$0xff] %vm3821_vm1, %v3816_v38  ;;  %6354 = vmatmul.mubr.msk.f32.vlgmr.msra.gmra.mrb[112].mxu0 %vm3821_vm1, %v3816_v38  ;;  %6375 = vmatmul.mubr.msk.f32.vlgmr.msra.gmra.mrb[128].mxu1 %vm3821_vm1, %v3816_v38  ;;  %3823 = vst.msk [vmem:[%s8644_s0 + $0x8] sm:$0xff] %vm3821_vm1, %v3817_v44 }
 0xb56   : > { %v3813_v53 = vmul.f32 0.1, %v3803_v59  ;;  %v3792_v55 = vadd.f32 %v3780_v62, %v3570_v15  ;;  %v6343_v36 = vpop.f32.mrb[125].mxu1  ;;  %6356 = vmatprep.mubr.msk.f32.mxu0 %vm7011_vm0, %v7012_v4  ;;  %6377 = vmatprep.mubr.msk.f32.mxu1 %vm7011_vm0, %v7012_v4  ;;  %vm3808_vm7 = vcmp.gt.f32.partialorder %v3803_v59, 0.0  ;;  %v8721_v15 = vld [vmem:[%s9018_s2 + $0x28] sm:$0xff] }
 0xb57   : > { %6935 = vmatpush3.bf16.msra.mxu1 %v6934_v49  ;;  %v4241_v49 = vld [vmem:[%s9018_s2 + $0x20] sm:$0x1]  ;;  %v4389_v36 = vld [vmem:[%s8991_s15 + $0x10] sm:$0xff] }
 0xb58   : > { %v3804_v2 = vadd.f32 %v5455_v61, %v3792_v55  ;;  %v3818_v50 = vsel %vm3808_vm7, %v3803_v59, %v3813_v53  ;;  %6418 = vmatprep.subr.mxu1 %v7012_v4  ;;  %v4387_v59 = vld [vmem:[%s8991_s15] sm:$0xff] }
 0xb59   : > { %v3785_v8 = vpop.f32.mrb[126].mxu1  ;;  %6357 = vmatmul.mubr.msk.f32.gmra.mrb[114].mxu0 %vm3821_vm1, %v3817_v44  ;;  %6378 = vmatmul.mubr.msk.f32.gmra.mrb[130].mxu1 %vm3821_vm1, %v3817_v44  ;;  %3824 = vst.msk [vmem:[%s8644_s0 + $0x10] sm:$0xff] %vm3821_vm1, %v3818_v50  ;;  %v5506_v53 = vld [vmem:[%s8991_s15 + $0x20] sm:$0xff] }
 0xb5a   : > { %v3814_v9 = vmul.f32 0.1, %v3804_v2  ;;  %v3793_v12 = vadd.f32 %v3785_v8, %v3575_v30  ;;  %6359 = vmatprep.mubr.msk.f32.mxu0 %vm7011_vm0, %v7012_v4  ;;  %6380 = vmatprep.mubr.msk.f32.mxu1 %vm7011_vm0, %v7012_v4  ;;  %v6346_v13 = vpop.f32.mrb[127].mxu1  ;;  %vm3809_vm8 = vcmp.gt.f32.partialorder %v3804_v2, 0.0  ;;  %v8732_v30 = vld [vmem:[%s9018_s2 + $0x30] sm:$0xff] }
 0xb5b   : > { %6419 = vmatpush3.msra.mxu1 %v5482_v3 }
 0xb5c   : > { %v3805_v14 = vadd.f32 %v5455_v61, %v3793_v12  ;;  %v3819_v1 = vsel %vm3809_vm8, %v3804_v2, %v3814_v9  ;;  %6942 = vmatprep.subr.bf16.mxu1 %v7010_v7  ;;  %v5507_v2 = vld [vmem:[%s8991_s15 + $0x28] sm:$0xff] }
 0xb5d   : > { %6360 = vmatmul.mubr.msk.f32.gmra.mrb[116].mxu0 %vm3821_vm1, %v3818_v50  ;;  %6381 = vmatmul.mubr.msk.f32.gmra.mrb[132].mxu1 %vm3821_vm1, %v3818_v50  ;;  %3825 = vst.msk [vmem:[%s8644_s0 + $0x18] sm:$0xff] %vm3821_vm1, %v3819_v1 }
 0xb5e   : > { %v3815_v21 = vmul.f32 0.1, %v3805_v14  ;;  %6362 = vmatprep.mubr.msk.f32.mxu0 %vm7011_vm0, %v7012_v4  ;;  %6383 = vmatprep.mubr.msk.f32.mxu1 %vm7011_vm0, %v7012_v4  ;;  %vm3810_vm9 = vcmp.gt.f32.partialorder %v3805_v14, 0.0 }
 0xb60   : > { %v3820_v22 = vsel %vm3810_vm9, %v3805_v14, %v3815_v21 }
 0xb61   : > { %6363 = vmatmul.mubr.msk.f32.gmra.mrb[118].mxu0 %vm3821_vm1, %v3819_v1  ;;  %6384 = vmatmul.mubr.msk.f32.gmra.mrb[134].mxu1 %vm3821_vm1, %v3819_v1  ;;  %3827 = vst.msk [vmem:[%s8644_s0 + $0x20] sm:$0x1] %vm3826_vm10, %v3820_v22 }
 0xb62   : > { %6365 = vmatprep.mubr.msk.f32.mxu0 %vm7011_vm0, %v7012_v4  ;;  %6386 = vmatprep.mubr.msk.f32.mxu1 %vm7011_vm0, %v7012_v4 }
 0xb65   : > { %6366 = vmatmul.mubr.msk.f32.gmra.mrb[120].mxu0 %vm3821_vm1, %v3820_v22  ;;  %6387 = vmatmul.mubr.msk.f32.gmra.mrb[136].mxu1 %vm3821_vm1, %v3820_v22 }
 0xb66   : > { %6420 = vmatprep.mubr.msk.f32.mxu1 %vm7011_vm0, %v7012_v4  ;;  %6399 = vmatprep.mubr.msk.f32.mxu0 %vm7011_vm0, %v7012_v4 }
 0xb69   : > { %6421 = vmatmul.mubr.msk.f32.vlgmr.msra.gmra.mrb[138].mxu1 %vm3821_vm1, %v3816_v38  ;;  %v4388_v38 = vld [vmem:[%s8991_s15 + $0x8] sm:$0xff] }
 0xb6a   : > { %6423 = vmatprep.mubr.msk.f32.mxu1 %vm7011_vm0, %v7012_v4  ;;  %v6943_v62 = vpack.c.bf16 %v4388_v38, %v4387_v59 }
 0xb6c   : > { %6944 = vmatpush3.bf16.msra.mxu1 %v6943_v62 }
 0xb6d   : > { %6424 = vmatmul.mubr.msk.f32.gmra.mrb[140].mxu1 %vm3821_vm1, %v3817_v44  ;;  %v5505_v44 = vld [vmem:[%s8991_s15 + $0x18] sm:$0xff]  ;;  %6464 = vmatprep.subr.mxu1 %v7012_v4 }
 0xb6e   : > { %6426 = vmatprep.mubr.msk.f32.mxu1 %vm7011_vm0, %v7012_v4  ;;  %v6946_v55 = vpack.c.bf16 %v5506_v53, %v5505_v44 }
 0xb70   : > { %6465 = vmatpush3.msra.mxu1 %v4389_v36 }
 0xb71   : > { %6427 = vmatmul.mubr.msk.f32.gmra.mrb[142].mxu1 %vm3821_vm1, %v3818_v50  ;;  %6948 = vmatprep.subr.bf16.mxu1 %v7010_v7 }
 0xb72   : > { %6429 = vmatprep.mubr.msk.f32.mxu1 %vm7011_vm0, %v7012_v4 }
 0xb75   : > { %6430 = vmatmul.mubr.msk.f32.gmra.mrb[144].mxu1 %vm3821_vm1, %v3819_v1 }
 0xb76   : > { %6432 = vmatprep.mubr.msk.f32.mxu1 %vm7011_vm0, %v7012_v4 }
 0xb79   : > { %6433 = vmatmul.mubr.msk.f32.gmra.mrb[146].mxu1 %vm3821_vm1, %v3820_v22 }
 0xb7a   : > { %6466 = vmatprep.mubr.msk.f32.mxu1 %vm7011_vm0, %v7012_v4 }
 0xc28   : > { %v3912_v43 = vpop.f32.mrb[112].mxu0  ;;  %v8706_v51 = vpop.f32.mrb[128].mxu1 }
 0xc29   : > { %v6355_v5 = vpop.f32.mrb[113].mxu0  ;;  %v6376_v63 = vpop.f32.mrb[129].mxu1 }
 0xc2c   : > { %v3917_v23 = vpop.f32.mrb[114].mxu0  ;;  %v8708_v48 = vpop.f32.mrb[130].mxu1 }
 0xc2d   : > { %v6928_v54 = vpack.c.bf16 %v3917_v23, %v3912_v43  ;;  %v6358_v24 = vpop.f32.mrb[115].mxu0  ;;  %v6379_v56 = vpop.f32.mrb[131].mxu1 }
 0xc2f   : > { %6929 = vmatpush3.bf16.msra.mxu0 %v6928_v54 }
 0xc30   : > { %v3922_v25 = vpop.f32.mrb[116].mxu0  ;;  %v8710_v6 = vpop.f32.mrb[132].mxu1  ;;  %6930 = vmatprep.subr.bf16.mxu0 %v7010_v7 }
 0xc31   : > { %v6361_v10 = vpop.f32.mrb[117].mxu0  ;;  %v6382_v57 = vpop.f32.mrb[133].mxu1 }
 0xc32   : > { %v5520_v10 = vld [vmem:[%s8991_s15 + $0x38] sm:$0xff] }
 0xc34   : > { %v3927_v17 = vpop.f32.mrb[118].mxu0  ;;  %v8713_v27 = vpop.f32.mrb[134].mxu1 }
 0xc35   : > { %v6931_v28 = vpack.c.bf16 %v3927_v17, %v3922_v25  ;;  %v6364_v60 = vpop.f32.mrb[119].mxu0  ;;  %v6385_v18 = vpop.f32.mrb[135].mxu1 }
 0xc37   : > { %6932 = vmatpush3.bf16.msra.mxu0 %v6931_v28 }
 0xc38   : > { %v3932_v52 = vpop.f32.mrb[120].mxu0  ;;  %v8715_v58 = vpop.f32.mrb[136].mxu1  ;;  %6397 = vmatprep.subr.mxu0 %v7012_v4 }
 0xc39   : > { %v6367_v39 = vpop.f32.mrb[121].mxu0  ;;  %v6388_v29 = vpop.f32.mrb[137].mxu1 }
 0xc3b   : > { %6398 = vmatpush3.msk.msra.mxu0 %vm1108_vm2, %v3932_v52 }
 0xc3c   : > { %6400 = vmatmul.mubr.msk.f32.vlgmr.msra.gmra.mrb[122].mxu0 %vm1092_vm3, %v8721_v15  ;;  %v4213_v20 = vpop.f32.mrb[138].mxu1  ;;  %6936 = vmatprep.subr.bf16.mxu0 %v7010_v7 }
 0xc3d   : > { %v6422_v0 = vpop.f32.mrb[139].mxu1  ;;  %6402 = vmatprep.mubr.msk.f32.mxu0 %vm7011_vm0, %v7012_v4 }
 0xc40   : > { %6403 = vmatmul.mubr.msk.f32.gmra.mrb[124].mxu0 %vm1092_vm3, %v8732_v30  ;;  %v4218_v34 = vpop.f32.mrb[140].mxu1 }
 0xc41   : > { %v6937_v35 = vpack.c.bf16 %v4218_v34, %v4213_v20  ;;  %v6425_v61 = vpop.f32.mrb[141].mxu1  ;;  %6405 = vmatprep.mubr.msk.f32.mxu0 %vm7011_vm0, %v7012_v4 }
 0xc43   : > { %6938 = vmatpush3.bf16.msra.mxu0 %v6937_v35  ;;  %v5521_v35 = vld [vmem:[%s8991_s15 + $0x40] sm:$0xff] }
 0xc44   : > { %6406 = vmatmul.mubr.msk.f32.gmra.mrb[126].mxu0 %vm1092_vm3, %v8741_v40  ;;  %v4223_v32 = vpop.f32.mrb[142].mxu1  ;;  %6939 = vmatprep.subr.bf16.mxu0 %v7010_v7 }
 0xc45   : > { %v6428_v41 = vpop.f32.mrb[143].mxu1  ;;  %6408 = vmatprep.mubr.msk.f32.mxu0 %vm7011_vm0, %v7012_v4 }
 0xc48   : > { %6409 = vmatmul.mubr.msk.f32.gmra.mrb[128].mxu0 %vm1092_vm3, %v8751_v45  ;;  %v4228_v42 = vpop.f32.mrb[144].mxu1 }
 0xc49   : > { %v6940_v11 = vpack.c.bf16 %v4228_v42, %v4223_v32  ;;  %v6431_v16 = vpop.f32.mrb[145].mxu1  ;;  %6411 = vmatprep.mubr.msk.f32.mxu0 %vm7011_vm0, %v7012_v4 }
 0xc4b   : > { %6941 = vmatpush3.bf16.msra.mxu0 %v6940_v11 }
 0xc4c   : > { %6412 = vmatmul.mubr.msk.f32.gmra.mrb[130].mxu0 %vm1092_vm3, %v5465_v26  ;;  %v4233_v19 = vpop.f32.mrb[146].mxu1  ;;  %6443 = vmatprep.subr.mxu0 %v7012_v4 }
 0xc4d   : > { %v6434_v31 = vpop.f32.mrb[147].mxu1  ;;  %6445 = vmatprep.mubr.msk.f32.mxu0 %vm7011_vm0, %v7012_v4 }
 0xc4f   : > { %6444 = vmatpush3.msk.msra.mxu0 %vm1108_vm2, %v4233_v19 }
 0xc50   : > { %6446 = vmatmul.mubr.msk.f32.vlgmr.msra.gmra.mrb[132].mxu0 %vm1092_vm3, %v8767_v33  ;;  %6945 = vmatprep.subr.bf16.mxu0 %v7010_v7 }
 0xc51   : > { %6448 = vmatprep.mubr.msk.f32.mxu0 %vm7011_vm0, %v7012_v4  ;;  %6947 = vmatpush3.bf16.msra.mxu0 %v6946_v55 }
 0xc52   : > { %6485 = vmatprep.subr.mxu0 %v7012_v4 }
 0xc54   : > { %6449 = vmatmul.mubr.msk.f32.gmra.mrb[134].mxu0 %vm1092_vm3, %v8778_v37 }
 0xc55   : > { %6451 = vmatprep.mubr.msk.f32.mxu0 %vm7011_vm0, %v7012_v4  ;;  %6486 = vmatpush3.msra.mxu0 %v5507_v2 }
 0xc56   : > { %6954 = vmatprep.subr.bf16.mxu0 %v7010_v7 }
 0xc58   : > { %6452 = vmatmul.mubr.msk.f32.gmra.mrb[136].mxu0 %vm1092_vm3, %v8787_v46 }
 0xc59   : > { %6454 = vmatprep.mubr.msk.f32.mxu0 %vm7011_vm0, %v7012_v4 }
 0xc5c   : > { %6455 = vmatmul.mubr.msk.f32.gmra.mrb[138].mxu0 %vm1092_vm3, %v8796_v47 }
 0xc5d   : > { %6457 = vmatprep.mubr.msk.f32.mxu0 %vm7011_vm0, %v7012_v4 }
 0xc60   : > { %6458 = vmatmul.mubr.msk.f32.gmra.mrb[140].mxu0 %vm1092_vm3, %v4241_v49 }
 0xc61   : > { %6487 = vmatprep.mubr.msk.f32.mxu0 %vm7011_vm0, %v7012_v4 }
 0xd0f   : > { %v4119_v50 = vpop.f32.mrb[122].mxu0 }
 0xd10   : > { %v4120_v3 = vadd.f32 %v4119_v50, %v8706_v51  ;;  %v6401_v8 = vpop.f32.mrb[123].mxu0  ;;  %v5494_v51 = vld [vmem:[%s8990_s14] ss:$0 sm:$0xff] }
 0xd13   : > { %v4124_v9 = vpop.f32.mrb[124].mxu0 }
 0xd14   : > { %v4125_v12 = vadd.f32 %v4124_v9, %v8708_v48  ;;  %v6404_v13 = vpop.f32.mrb[125].mxu0 }
 0xd17   : > { %v4129_v14 = vpop.f32.mrb[126].mxu0 }
 0xd18   : > { %v4130_v1 = vadd.f32 %v4129_v14, %v8710_v6  ;;  %v6407_v21 = vpop.f32.mrb[127].mxu0  ;;  %v5519_v6 = vld [vmem:[%s8991_s15 + $0x30] sm:$0xff] }
 0xd19   : > { %v6955_v60 = vpack.c.bf16 %v5520_v10, %v5519_v6 }
 0xd1b   : > { %v4134_v22 = vpop.f32.mrb[128].mxu0 }
 0xd1c   : > { %v4135_v43 = vadd.f32 %v4134_v22, %v8713_v27  ;;  %v6410_v5 = vpop.f32.mrb[129].mxu0 }
 0xd1f   : > { %v4139_v63 = vpop.f32.mrb[130].mxu0 }
 0xd20   : > { %v4140_v23 = vadd.f32 %v4139_v63, %v8715_v58  ;;  %v6413_v54 = vpop.f32.mrb[131].mxu0 }
 0xd23   : > { %v4326_v24 = vpop.f32.mrb[132].mxu0 }
 0xd24   : > { %v4350_v48 = vadd.f32 %v4326_v24, %v4120_v3  ;;  %v6447_v56 = vpop.f32.mrb[133].mxu0 }
 0xd26   : > { %v4362_v25 = vadd.f32 %v5494_v51, %v4350_v48 }
 0xd27   : > { %v4331_v57 = vpop.f32.mrb[134].mxu0 }
 0xd28   : > { %vm4367_vm11 = vcmp.gt.f32.partialorder %v4362_v25, 0.0  ;;  %v4372_v17 = vmul.f32 0.1, %v4362_v25  ;;  %v4351_v27 = vadd.f32 %v4331_v57, %v4125_v12  ;;  %v6450_v28 = vpop.f32.mrb[135].mxu0 }
 0xd2a   : > { %v4377_v18 = vsel %vm4367_vm11, %v4362_v25, %v4372_v17  ;;  %v4363_v52 = vadd.f32 %v5494_v51, %v4351_v27 }
 0xd2b   : > { %4382 = vst.msk [vmem:[%s8848_s25] sm:$0xff] %vm3821_vm1, %v4377_v18  ;;  %v4336_v58 = vpop.f32.mrb[136].mxu0  ;;  %6467 = vmatmul.mubr.msk.f32.vlgmr.msra.gmra.mrb[148].mxu1 %vm3821_vm1, %v4377_v18  ;;  %6488 = vmatmul.mubr.msk.f32.vlgmr.msra.gmra.mrb[142].mxu0 %vm3821_vm1, %v4377_v18 }
 0xd2c   : > { %v4373_v39 = vmul.f32 0.1, %v4363_v52  ;;  %v4352_v29 = vadd.f32 %v4336_v58, %v4130_v1  ;;  %v6453_v20 = vpop.f32.mrb[137].mxu0  ;;  %6469 = vmatprep.mubr.msk.f32.mxu1 %vm7011_vm0, %v7012_v4  ;;  %6490 = vmatprep.mubr.msk.f32.mxu0 %vm7011_vm0, %v7012_v4  ;;  %vm4368_vm12 = vcmp.gt.f32.partialorder %v4363_v52, 0.0 }
 0xd2d   : > { %6956 = vmatpush3.bf16.msra.mxu0 %v6955_v60 }
 0xd2e   : > { %v4364_v0 = vadd.f32 %v5494_v51, %v4352_v29  ;;  %v4378_v34 = vsel %vm4368_vm12, %v4363_v52, %v4373_v39  ;;  %6531 = vmatprep.subr.mxu0 %v7012_v4 }
 0xd2f   : > { %v4341_v61 = vpop.f32.mrb[138].mxu0  ;;  %4383 = vst.msk [vmem:[%s8848_s25 + $0x8] sm:$0xff] %vm3821_vm1, %v4378_v34  ;;  %6470 = vmatmul.mubr.msk.f32.gmra.mrb[150].mxu1 %vm3821_vm1, %v4378_v34  ;;  %6491 = vmatmul.mubr.msk.f32.gmra.mrb[144].mxu0 %vm3821_vm1, %v4378_v34 }
 0xd30   : > { %v4374_v32 = vmul.f32 0.1, %v4364_v0  ;;  %v4353_v41 = vadd.f32 %v4341_v61, %v4135_v43  ;;  %v6456_v42 = vpop.f32.mrb[139].mxu0  ;;  %6472 = vmatprep.mubr.msk.f32.mxu1 %vm7011_vm0, %v7012_v4  ;;  %6493 = vmatprep.mubr.msk.f32.mxu0 %vm7011_vm0, %v7012_v4  ;;  %vm4369_vm13 = vcmp.gt.f32.partialorder %v4364_v0, 0.0 }
 0xd31   : > { %6532 = vmatpush3.msra.mxu0 %v5521_v35 }
 0xd32   : > { %v4365_v11 = vadd.f32 %v5494_v51, %v4353_v41  ;;  %v4379_v16 = vsel %vm4369_vm13, %v4364_v0, %v4374_v32  ;;  %v5533_v41 = vld [vmem:[%s8992_s16] ss:$0 sm:$0xff] }
 0xd33   : > { %v4346_v26 = vpop.f32.mrb[140].mxu0  ;;  %4384 = vst.msk [vmem:[%s8848_s25 + $0x10] sm:$0xff] %vm3821_vm1, %v4379_v16  ;;  %6473 = vmatmul.mubr.msk.f32.gmra.mrb[152].mxu1 %vm3821_vm1, %v4379_v16  ;;  %6494 = vmatmul.mubr.msk.f32.gmra.mrb[146].mxu0 %vm3821_vm1, %v4379_v16 }
 0xd34   : > { %v4375_v19 = vmul.f32 0.1, %v4365_v11  ;;  %v4354_v31 = vadd.f32 %v4346_v26, %v4140_v23  ;;  %v6459_v49 = vpop.f32.mrb[141].mxu0  ;;  %6475 = vmatprep.mubr.msk.f32.mxu1 %vm7011_vm0, %v7012_v4  ;;  %6496 = vmatprep.mubr.msk.f32.mxu0 %vm7011_vm0, %v7012_v4  ;;  %vm4370_vm14 = vcmp.gt.f32.partialorder %v4365_v11, 0.0 }
 0xd36   : > { %v4366_v59 = vadd.f32 %v5494_v51, %v4354_v31  ;;  %v4380_v38 = vsel %vm4370_vm14, %v4365_v11, %v4375_v19 }
 0xd37   : > { %4385 = vst.msk [vmem:[%s8848_s25 + $0x18] sm:$0xff] %vm3821_vm1, %v4380_v38  ;;  %6476 = vmatmul.mubr.msk.f32.gmra.mrb[154].mxu1 %vm3821_vm1, %v4380_v38  ;;  %6497 = vmatmul.mubr.msk.f32.gmra.mrb[148].mxu0 %vm3821_vm1, %v4380_v38 }
 0xd38   : > { %v4376_v44 = vmul.f32 0.1, %v4366_v59  ;;  %6478 = vmatprep.mubr.msk.f32.mxu1 %vm7011_vm0, %v7012_v4  ;;  %6499 = vmatprep.mubr.msk.f32.mxu0 %vm7011_vm0, %v7012_v4  ;;  %vm4371_vm15 = vcmp.gt.f32.partialorder %v4366_v59, 0.0 }
 0xd3a   : > { %v4381_v62 = vsel %vm4371_vm15, %v4366_v59, %v4376_v44 }
 0xd3b   : > { %4386 = vst.msk [vmem:[%s8848_s25 + $0x20] sm:$0x1] %vm3826_vm10, %v4381_v62  ;;  %6479 = vmatmul.mubr.msk.f32.gmra.mrb[156].mxu1 %vm3821_vm1, %v4381_v62  ;;  %6500 = vmatmul.mubr.msk.f32.gmra.mrb[150].mxu0 %vm3821_vm1, %v4381_v62  ;;  %s9023_s25 = sld [smem:[#allocation10_spill]] }
 0xd3c   : > { %6533 = vmatprep.mubr.msk.f32.mxu0 %vm7011_vm0, %v7012_v4  ;;  %6512 = vmatprep.mubr.msk.f32.mxu1 %vm7011_vm0, %v7012_v4 }
 0xd3f   : > { %6534 = vmatmul.mubr.msk.f32.vlgmr.msra.gmra.mrb[152].mxu0 %vm3821_vm1, %v4377_v18 }
 0xd40   : > { %6536 = vmatprep.mubr.msk.f32.mxu0 %vm7011_vm0, %v7012_v4 }
 0xd41   : > { %s744_s0 = scalar_lea.vmem %s9023_s25, %s8187_s6 }
 0xd43   : > { %6537 = vmatmul.mubr.msk.f32.gmra.mrb[154].mxu0 %vm3821_vm1, %v4378_v34 }
 0xd44   : > { %6539 = vmatprep.mubr.msk.f32.mxu0 %vm7011_vm0, %v7012_v4 }
 0xd47   : > { %6540 = vmatmul.mubr.msk.f32.gmra.mrb[156].mxu0 %vm3821_vm1, %v4379_v16 }
 0xd48   : > { %6542 = vmatprep.mubr.msk.f32.mxu0 %vm7011_vm0, %v7012_v4 }
 0xd4b   : > { %6543 = vmatmul.mubr.msk.f32.gmra.mrb[158].mxu0 %vm3821_vm1, %v4380_v38 }
 0xd4c   : > { %6545 = vmatprep.mubr.msk.f32.mxu0 %vm7011_vm0, %v7012_v4 }
 0xd4f   : > { %6546 = vmatmul.mubr.msk.f32.gmra.mrb[160].mxu0 %vm3821_vm1, %v4381_v62 }
 0xdfe   : > { %v4471_v53 = vpop.f32.mrb[148].mxu1  ;;  %v8907_v55 = vpop.f32.mrb[142].mxu0 }
 0xdff   : > { %v6468_v36 = vpop.f32.mrb[149].mxu1  ;;  %v6489_v2 = vpop.f32.mrb[143].mxu0 }
 0xe02   : > { %v4476_v50 = vpop.f32.mrb[150].mxu1  ;;  %v8909_v3 = vpop.f32.mrb[144].mxu0 }
 0xe03   : > { %v6949_v8 = vpack.c.bf16 %v4476_v50, %v4471_v53  ;;  %v6471_v9 = vpop.f32.mrb[151].mxu1  ;;  %v6492_v12 = vpop.f32.mrb[145].mxu0 }
 0xe05   : > { %6950 = vmatpush3.bf16.msra.mxu1 %v6949_v8 }
 0xe06   : > { %v4481_v13 = vpop.f32.mrb[152].mxu1  ;;  %v4580_v14 = vpop.f32.mrb[146].mxu0  ;;  %6951 = vmatprep.subr.bf16.mxu1 %v7010_v7 }
 0xe07   : > { %v6474_v1 = vpop.f32.mrb[153].mxu1  ;;  %v6495_v21 = vpop.f32.mrb[147].mxu0 }
 0xe0a   : > { %v4486_v22 = vpop.f32.mrb[154].mxu1  ;;  %v4585_v43 = vpop.f32.mrb[148].mxu0 }
 0xe0b   : > { %v6952_v5 = vpack.c.bf16 %v4486_v22, %v4481_v13  ;;  %v6477_v63 = vpop.f32.mrb[155].mxu1  ;;  %v6498_v23 = vpop.f32.mrb[149].mxu0 }
 0xe0d   : > { %6953 = vmatpush3.bf16.msra.mxu1 %v6952_v5 }
 0xe0e   : > { %v4491_v54 = vpop.f32.mrb[156].mxu1  ;;  %v4590_v24 = vpop.f32.mrb[150].mxu0  ;;  %6510 = vmatprep.subr.mxu1 %v7012_v4 }
 0xe0f   : > { %v6480_v51 = vpop.f32.mrb[157].mxu1  ;;  %v6501_v48 = vpop.f32.mrb[151].mxu0 }
 0xe11   : > { %6511 = vmatpush3.msk.msra.mxu1 %vm1108_vm2, %v4491_v54 }
 0xe12   : > { %6513 = vmatmul.mubr.msk.f32.vlgmr.msra.gmra.mrb[158].mxu1 %vm1092_vm3, %v8721_v15  ;;  %v4772_v56 = vpop.f32.mrb[152].mxu0  ;;  %6957 = vmatprep.subr.bf16.mxu1 %v7010_v7 }
 0xe13   : > { %v6535_v25 = vpop.f32.mrb[153].mxu0  ;;  %6515 = vmatprep.mubr.msk.f32.mxu1 %vm7011_vm0, %v7012_v4 }
 0xe16   : > { %6516 = vmatmul.mubr.msk.f32.gmra.mrb[160].mxu1 %vm1092_vm3, %v8732_v30  ;;  %v4777_v6 = vpop.f32.mrb[154].mxu0 }
 0xe17   : > { %v6958_v10 = vpack.c.bf16 %v4777_v6, %v4772_v56  ;;  %v6538_v57 = vpop.f32.mrb[155].mxu0  ;;  %6518 = vmatprep.mubr.msk.f32.mxu1 %vm7011_vm0, %v7012_v4 }
 0xe19   : > { %6959 = vmatpush3.bf16.msra.mxu1 %v6958_v10 }
 0xe1a   : > { %6519 = vmatmul.mubr.msk.f32.gmra.mrb[162].mxu1 %vm1092_vm3, %v8741_v40  ;;  %v4782_v15 = vpop.f32.mrb[156].mxu0  ;;  %6960 = vmatprep.subr.bf16.mxu1 %v7010_v7  ;;  %v5504_v40 = vld [vmem:[%s9018_s2 + $0x48] sm:$0x1] }
 0xe1b   : > { %v6541_v17 = vpop.f32.mrb[157].mxu0  ;;  %6521 = vmatprep.mubr.msk.f32.mxu1 %vm7011_vm0, %v7012_v4 }
 0xe1e   : > { %6522 = vmatmul.mubr.msk.f32.gmra.mrb[164].mxu1 %vm1092_vm3, %v8751_v45  ;;  %v4787_v30 = vpop.f32.mrb[158].mxu0  ;;  %v4800_v45 = vld [vmem:[%s9018_s2 + $0x20] sm:$0x1] }
 0xe1f   : > { %v6961_v27 = vpack.c.bf16 %v4787_v30, %v4782_v15  ;;  %v6544_v28 = vpop.f32.mrb[159].mxu0  ;;  %6524 = vmatprep.mubr.msk.f32.mxu1 %vm7011_vm0, %v7012_v4 }
 0xe21   : > { %6962 = vmatpush3.bf16.msra.mxu1 %v6961_v27 }
 0xe22   : > { %6525 = vmatmul.mubr.msk.f32.gmra.mrb[166].mxu1 %vm1092_vm3, %v5504_v40  ;;  %v4792_v7 = vpop.f32.mrb[160].mxu0  ;;  %6556 = vmatprep.subr.mxu1 %v7012_v4 }
 0xe23   : > { %v6547_v60 = vpop.f32.mrb[161].mxu0  ;;  %6558 = vmatprep.mubr.msk.f32.mxu1 %vm7011_vm0, %v7012_v4 }
 0xe25   : > { %6557 = vmatpush3.msk.msra.mxu1 %vm1108_vm2, %v4792_v7  ;;  %vm4931_vm2 = vcmask 16384  }
 0xe26   : > { %6559 = vmatmul.mubr.msk.f32.vlgmr.msra.gmra.mrb[168].mxu1 %vm1092_vm3, %v8767_v33 }
 0xe27   : > { %6561 = vmatprep.mubr.msk.f32.mxu1 %vm7011_vm0, %v7012_v4 }
 0xe2a   : > { %6562 = vmatmul.mubr.msk.f32.gmra.mrb[170].mxu1 %vm1092_vm3, %v8778_v37 }
 0xe2b   : > { %6564 = vmatprep.mubr.msk.f32.mxu1 %vm7011_vm0, %v7012_v4 }
 0xe2e   : > { %6565 = vmatmul.mubr.msk.f32.gmra.mrb[172].mxu1 %vm1092_vm3, %v8787_v46 }
 0xe2f   : > { %6567 = vmatprep.mubr.msk.f32.mxu1 %vm7011_vm0, %v7012_v4 }
 0xe32   : > { %6568 = vmatmul.mubr.msk.f32.gmra.mrb[174].mxu1 %vm1092_vm3, %v8796_v47 }
 0xe33   : > { %6570 = vmatprep.mubr.msk.f32.mxu1 %vm7011_vm0, %v7012_v4  ;;  %vm4926_vm0 = vcmask 23552  }
 0xe36   : > { %6571 = vmatmul.mubr.msk.f32.gmra.mrb[176].mxu1 %vm1092_vm3, %v4800_v45 }
 0xee5   : > { %v4678_v33 = vpop.f32.mrb[158].mxu1 }
 0xee6   : > { %v4679_v37 = vadd.f32 %v4678_v33, %v8907_v55  ;;  %v6514_v18 = vpop.f32.mrb[159].mxu1 }
 0xee9   : > { %v4683_v46 = vpop.f32.mrb[160].mxu1 }
 0xeea   : > { %v4684_v52 = vadd.f32 %v4683_v46, %v8909_v3  ;;  %v6517_v58 = vpop.f32.mrb[161].mxu1 }
 0xeed   : > { %v4688_v39 = vpop.f32.mrb[162].mxu1 }
 0xeee   : > { %v4689_v47 = vadd.f32 %v4688_v39, %v4580_v14  ;;  %v6520_v29 = vpop.f32.mrb[163].mxu1 }
 0xef1   : > { %v4693_v20 = vpop.f32.mrb[164].mxu1 }
 0xef2   : > { %v4694_v4 = vadd.f32 %v4693_v20, %v4585_v43  ;;  %v6523_v0 = vpop.f32.mrb[165].mxu1 }
 0xef5   : > { %v4698_v34 = vpop.f32.mrb[166].mxu1 }
 0xef6   : > { %v4699_v35 = vadd.f32 %v4698_v34, %v4590_v24  ;;  %v6526_v61 = vpop.f32.mrb[167].mxu1 }
 0xef9   : > { %v4885_v32 = vpop.f32.mrb[168].mxu1 }
 0xefa   : > { %v4909_v42 = vadd.f32 %v4885_v32, %v4679_v37  ;;  %v6560_v11 = vpop.f32.mrb[169].mxu1 }
 0xefc   : > { %v4921_v16 = vadd.f32 %v5533_v41, %v4909_v42 }
 0xefd   : > { %v4890_v26 = vpop.f32.mrb[170].mxu1 }
 0xefe   : > { %4927 = vst.msk [vmem:[%s744_s0] sm:$0xff] %vm4926_vm0, %v4921_v16  ;;  %v4910_v19 = vadd.f32 %v4890_v26, %v4684_v52  ;;  %v6563_v31 = vpop.f32.mrb[171].mxu1 }
 0xf00   : > { %v4922_v49 = vadd.f32 %v5533_v41, %v4910_v19 }
 0xf01   : > { %v4895_v59 = vpop.f32.mrb[172].mxu1 }
 0xf02   : > { %4928 = vst.msk [vmem:[%s744_s0 + $0x8] sm:$0xff] %vm4926_vm0, %v4922_v49  ;;  %v4911_v38 = vadd.f32 %v4895_v59, %v4689_v47  ;;  %v6566_v44 = vpop.f32.mrb[173].mxu1 }
 0xf04   : > { %v4923_v62 = vadd.f32 %v5533_v41, %v4911_v38 }
 0xf05   : > { %v4900_v53 = vpop.f32.mrb[174].mxu1 }
 0xf06   : > { %4929 = vst.msk [vmem:[%s744_s0 + $0x10] sm:$0xff] %vm4926_vm0, %v4923_v62  ;;  %v4912_v55 = vadd.f32 %v4900_v53, %v4694_v4  ;;  %v6569_v36 = vpop.f32.mrb[175].mxu1 }
 0xf08   : > { %v4924_v2 = vadd.f32 %v5533_v41, %v4912_v55 }
 0xf09   : > { %v4905_v50 = vpop.f32.mrb[176].mxu1 }
 0xf0a   : > { %4930 = vst.msk [vmem:[%s744_s0 + $0x18] sm:$0xff] %vm4926_vm0, %v4924_v2  ;;  %v4913_v3 = vadd.f32 %v4905_v50, %v4699_v35  ;;  %v6572_v8 = vpop.f32.mrb[177].mxu1 }
 0xf0c   : > { %v4925_v9 = vadd.f32 %v5533_v41, %v4913_v3 }
 0xf0e   : > { %4932 = vst.msk [vmem:[%s744_s0 + $0x20] sm:$0x1] %vm4931_vm2, %v4925_v9 }
 0xf0f PF: > { %s9024_s6 = sld [smem:[#allocation2_spill]] }
 0xf15   : > { %s33_s3 = sadd.s32 1, %s9024_s6  }
 0xf16   : > { %p30_p4 = scmp.ge.s32.totalorder %s33_s3, 4  }
 0xf18   :  { %32 = sbr.rel (!%p30_p4) target bundleno = 9 (0x9), region = 197 }

</bundles_post_ra>
